<compile_context>
chip_gen: v5e
topology: v5e:2x2
jax: 0.10.0
libtpu: 0.0.40
codegen_flags: <defaults>
</compile_context>

<pallas_src>
import numpy as np
import jax
import jax.numpy as jnp
from jax.experimental import pallas as pl
from jax.experimental.pallas import tpu as pltpu


# ----------------------------- in-kernel helpers -----------------------------

def _sigmoid(x):
    # single-EUP form of the logistic (mathematically identical to 1/(1+e^-x)).
    return 0.5 * jnp.tanh(0.5 * x) + 0.5


def _softplus(x):
    # torch.nn.Softplus(beta=1, threshold=20), log1p form.
    return jnp.where(x > 20.0, x, jnp.log1p(jnp.exp(jnp.minimum(x, 20.0))))


# ------------------------- fused forward-pass kernel --------------------------

def make_hhf_kernel(nlayer, T, H, Jmax):
    """Builds the fused kernel; all shapes / trip counts are static (closure)."""
    eps = 1e-9

    def kernel(x0_ref, x1_ref, wx_ref, whh_ref, wln_ref,
               asum_ref, asumT_ref, e0_ref, leaf_ref, mT_ref, war_ref, eye_ref,
               w4_ref,                        # SMEM (nlayer, 3)
               ret_ref, dpd_ref):             # outputs
        x0 = x0_ref[...]                      # (Np, T)  node-major, padded
        x1 = x1_ref[...]                      # (Np, T)
        asum = asum_ref[...]                  # (Np, Np) child <- parent gather
        asumT = asumT_ref[...]                # (Np, Np) parent <- children sum
        e0 = e0_ref[...]                      # (Np, 1)  root indicator
        leaf = leaf_ref[...]                  # (Np, 1)  leaf-node indicator
        eye = eye_ref[...]                    # (T, T)   one-hot rows
        Np = x0.shape[0]

        for i in range(nlayer):               # static layer loop (distinct weights)
            wx = wx_ref[i]                    # (2, 4H) = Wproj @ Wih (pre-folded)
            whh = whh_ref[i]                  # (H, 4H)
            wl = wln_ref[i]                   # (2, H)  rows: lns1 | lns2
            w0x = wx[0:1, :]
            w1x = wx[1:2, :]
            wl1 = wl[0:1, :]
            wl2 = wl[1:2, :]

            # ---- LSTM recurrence (fully unrolled, bias-free, gates i,f,g,o) --
            h = jnp.zeros((Np, H), jnp.float32)
            c = jnp.zeros((Np, H), jnp.float32)
            h_seq = []
            for t in range(T):
                row_t = eye[t:t + 1, :]                                # (1, T)
                x0c = jnp.sum(x0 * row_t, axis=1, keepdims=True)       # (Np, 1)
                x1c = jnp.sum(x1 * row_t, axis=1, keepdims=True)
                # non-recurrent input term: two VPU broadcast-FMAs (K=2).
                gx = x0c * w0x + x1c * w1x                             # (Np, 4H)
                g = gx + jnp.dot(h, whh, preferred_element_type=jnp.float32)
                i_g = _sigmoid(g[:, 0:H])
                f_g = _sigmoid(g[:, H:2 * H])
                g_g = jnp.tanh(g[:, 2 * H:3 * H])
                o_g = _sigmoid(g[:, 3 * H:4 * H])
                c = f_g * c + i_g * g_g
                h = o_g * jnp.tanh(c)
                h_seq.append(h)

            # ---- lns1/lns2 heads, hoisted out of the recurrence --------------
            # weighted lane reductions (H -> 1), assembled into lane-dense
            # (Np, T) blocks, one softplus per block.
            f_pre = jnp.zeros((Np, T), jnp.float32)
            b_pre = jnp.zeros((Np, T), jnp.float32)
            for t in range(T):
                ht = h_seq[t]
                row_t = eye[t:t + 1, :]
                f_pre = f_pre + jnp.sum(ht * wl1, axis=1, keepdims=True) * row_t
                b_pre = b_pre + jnp.sum(ht * wl2, axis=1, keepdims=True) * row_t
            F = _softplus(f_pre)                                       # (Np, T)
            B = _softplus(b_pre)                                       # (Np, T)

            # ---- hierarchy glue (build_DPD / normalization / reverse_DPD) ----
            psum_F = jnp.dot(asumT, F, preferred_element_type=jnp.float32)
            F_BU = psum_F + leaf * F                   # bottom-up aggregate
            psum_B = jnp.dot(asumT, B, preferred_element_type=jnp.float32)
            denom = jnp.dot(asum, psum_B,
                            preferred_element_type=jnp.float32) + Jmax * eps
            dpd = (B + eps) / denom                    # valid on rows 1..N-1
            F_par = jnp.dot(asum, F, preferred_element_type=jnp.float32)
            F_TD = e0 * F + F_par * dpd                # top-down disaggregate
            dpd_ref[i] = dpd

            # ---- lns4 combine + residual add ---------------------------------
            x0 = (x0 + w4_ref[i, 0] * F_TD + w4_ref[i, 1] * F
                  + w4_ref[i, 2] * F_BU)

            if i == nlayer - 1:
                # coherency: relu then x0 <- M^T @ x0 (node-major equivalent
                # of (x0.T @ M).T).  This is the cor_tag != 0 path.
                x0 = jnp.maximum(x0, 0.0)
                x0 = jnp.dot(mT_ref[...], x0, preferred_element_type=jnp.float32)
                # TODO(synk): cor_tag==0 data-dependent while-loop re-projection
                # is not implemented.

        # ---- autoregressive head: (Np, T) @ (T, horizon) ----------------------
        ret_ref[...] = jnp.dot(x0, war_ref[...],
                               preferred_element_type=jnp.float32)

    return kernel


_VMEM = pl.BlockSpec(memory_space=pltpu.MemorySpace.VMEM)
_SMEM = pl.BlockSpec(memory_space=pltpu.MemorySpace.SMEM)


def forward(x_nt2, params, pnl, bottom_num, nlayer, horizon, cor_tag=1):
    """HHFResNet forward. x_nt2: (N, time_step, 2), node-major as in the module."""
    N, T, _ = x_nt2.shape
    P = len(pnl)
    Jmax = int(max(pnl))
    TN_LN = N - int(np.sum(np.array(pnl)[-bottom_num:]))
    assert TN_LN == P, "one parents-list entry per internal node (as in reference)"
    Np = max(((N + 7) // 8) * 8, 8)
    H = params['whh'].shape[1]

    # Static hierarchy structure -> small padded scatter/gather matrices.
    asum_np = np.zeros((Np, Np), np.float32)   # asum[1+c, p] = 1 (child c of parent p)
    stop = 0
    for p, j in enumerate(pnl):
        asum_np[1 + stop:1 + stop + j, p] = 1.0
        stop += j
    e0_np = np.zeros((Np, 1), np.float32)
    e0_np[0, 0] = 1.0
    leaf_np = np.zeros((Np, 1), np.float32)
    leaf_np[P:N, 0] = 1.0
    eye_np = np.eye(T, dtype=np.float32)

    # Pad node axis ONCE; everything stays padded until the final slice.
    padN = ((0, Np - N), (0, 0))
    xf = x_nt2.astype(jnp.float32)
    x0 = jnp.pad(xf[:, :, 0], padN)                               # (Np, T)
    x1 = jnp.pad(xf[:, :, 1], padN)                               # (Np, T)
    mT = jnp.pad(params['M'].astype(jnp.float32).T,
                 ((0, Np - N), (0, Np - N)))                      # (Np, Np)
    # Fold proj into W_ih once (linear composition): (nlayer, 2, 4H).
    wx_all = jnp.einsum('ku,lug->lkg', params['wproj'], params['wih'],
                        precision=jax.lax.Precision.HIGHEST)

    kernel = make_hhf_kernel(nlayer=nlayer, T=T, H=H, Jmax=Jmax)
    ret, dpd = pl.pallas_call(
        kernel,
        out_shape=(jax.ShapeDtypeStruct((Np, horizon), jnp.float32),
                   jax.ShapeDtypeStruct((nlayer, Np, T), jnp.float32)),
        in_specs=[_VMEM] * 12 + [_SMEM],
        out_specs=(_VMEM, _VMEM),
    )(x0, x1, wx_all, params['whh'], params['wln'],
      jnp.asarray(asum_np), jnp.asarray(asum_np.T.copy()), jnp.asarray(e0_np),
      jnp.asarray(leaf_np), mT, params['war'], jnp.asarray(eye_np),
      params['w4'])

    # Slice away padding exactly once, at the very end.
    ret_x = ret[:N]                                               # (N, horizon)
    dpd_overall = jnp.concatenate([dpd[i, 1:N, :] for i in range(nlayer)],
                                  axis=1)                         # (N-1, T*nlayer)
    return jnp.squeeze(ret_x), jnp.squeeze(dpd_overall)


# ----------------- plain-JAX reference (direct torch translation) -------------

def _reference_forward(x_nt2, params, pnl, bottom_num, nlayer, horizon):
    N, T, _ = x_nt2.shape
    P = len(pnl)
    Jmax = int(max(pnl))
    TN_LN = N - int(np.sum(np.array(pnl)[-bottom_num:]))
    H = params['whh'].shape[1]

    def build_dpd(xT):                       # (T, N-1) -> (T, P, Jmax)
        cols, stop = [], 0
        for j in pnl:
            seg = jnp.pad(xT[:, stop:stop + j], ((0, 0), (0, Jmax - j)))
            cols.append(seg[:, None, :])
            stop += j
        return jnp.concatenate(cols, axis=1)

    def reverse_dpd(a):                      # (T, P, Jmax) -> (N-1, T)
        return jnp.concatenate([a[:, i, :j] for i, j in enumerate(pnl)], axis=1).T

    def normalization(a):
        a = a + 1e-9
        return a / a.sum(axis=-1, keepdims=True)

    with jax.default_matmul_precision("highest"):
        x = x_nt2.astype(jnp.float32)
        dpd_overall = None
        for i in range(nlayer):
            rnn_in = jnp.einsum('ntk,ku->ntu', x, params['wproj'])
            wih, whh = params['wih'][i], params['whh'][i]
            h = jnp.zeros((N, H), jnp.float32)
            c = jnp.zeros((N, H), jnp.float32)
            hs = []
            for t in range(T):
                g = rnn_in[:, t, :] @ wih + h @ whh
                i_g = jax.nn.sigmoid(g[:, :H])
                f_g = jax.nn.sigmoid(g[:, H:2 * H])
                g_g = jnp.tanh(g[:, 2 * H:3 * H])
                o_g = jax.nn.sigmoid(g[:, 3 * H:])
                c = f_g * c + i_g * g_g
                h = o_g * jnp.tanh(c)
                hs.append(h)
            hseq = jnp.stack(hs, axis=1)                          # (N, T, H)
            F = jax.nn.softplus(hseq @ params['wln'][i, 0])       # (N, T)
            B = jax.nn.softplus(hseq @ params['wln'][i, 1])       # (N, T)
            F_struc_sum = build_dpd(F[1:].T).sum(axis=-1).T       # (P, T)
            F_BU = jnp.concatenate([F_struc_sum, F[P:]], axis=0)
            DPD_struc = normalization(build_dpd(B[1:].T))         # (T, P, Jmax)
            recon = F[:TN_LN].T[:, :, None] * DPD_struc
            F_TD = jnp.concatenate([F[0:1], reverse_dpd(recon)], axis=0)
            DPD_rev = reverse_dpd(DPD_struc)
            w4 = params['w4'][i]
            x0 = x[:, :, 0] + w4[0] * F_TD + w4[1] * F + w4[2] * F_BU
            dpd_overall = (DPD_rev if i == 0
                           else jnp.concatenate([dpd_overall, DPD_rev], axis=1))
            if i == nlayer - 1:
                x0 = jnp.maximum(x0, 0.0)
                x0 = (x0.T @ params['M']).T
            x = jnp.concatenate([x0[:, :, None], x[:, :, 1:]], axis=2)
        ret = x[:, :, 0] @ params['war']
    return jnp.squeeze(ret), jnp.squeeze(dpd_overall)


# ----------------------------------- main --------------------------------------

if __name__ == "__main__":
    # Small hierarchy: root -> 2 internal nodes -> 3 leaves each.
    pnl = [2, 3, 3]              # parents_number_list_
    bottom_num = 2
    N = 1 + sum(pnl)             # 9 nodes
    T = 8                        # time_step
    horizon = 4
    U0, H = 16, 32               # units = [16, 32]
    nlayer = 2

    key = jax.random.PRNGKey(0)
    k = jax.random.split(key, 8)
    params = {
        'wproj': 0.1 * jax.random.normal(k[0], (2, U0), jnp.float32),
        'wih':   0.1 * jax.random.normal(k[1], (nlayer, U0, 4 * H), jnp.float32),
        'whh':   0.1 * jax.random.normal(k[2], (nlayer, H, 4 * H), jnp.float32),
        'wln':   0.1 * jax.random.normal(k[3], (nlayer, 2, H), jnp.float32),
        'w4':    0.1 * jax.random.normal(k[4], (nlayer, 3), jnp.float32),
        'war':   0.1 * jax.random.normal(k[5], (T, horizon), jnp.float32),
        'M':     0.1 * jax.random.normal(k[6], (N, N), jnp.float32),
    }
    # Positive hierarchical time-series values, shape (N, time_step, 2).
    x = jnp.abs(0.5 * jax.random.normal(k[7], (N, T, 2), jnp.float32)) + 0.1

    ret_x, ret_dpd = forward(x, params, pnl, bottom_num, nlayer, horizon)
    ret_x, ret_dpd = jax.block_until_ready((ret_x, ret_dpd))

    assert ret_x.shape == (N, horizon), ret_x.shape
    assert ret_dpd.shape == (N - 1, T * nlayer), ret_dpd.shape
    assert bool(jnp.all(jnp.isfinite(ret_x))) and bool(jnp.all(jnp.isfinite(ret_dpd)))

    # Cross-check against a plain-JAX translation of the PyTorch module.
    ref_x, ref_dpd = _reference_forward(x, params, pnl, bottom_num, nlayer, horizon)
    assert bool(jnp.allclose(ret_x, ref_x, rtol=1e-2, atol=1e-2)), \
        float(jnp.max(jnp.abs(ret_x - ref_x)))
    assert bool(jnp.allclose(ret_dpd, ref_dpd, rtol=1e-2, atol=1e-2)), \
        float(jnp.max(jnp.abs(ret_dpd - ref_dpd)))

    print("KERNEL_OK")
</pallas_src>

<mosaic_0001>
module attributes {stable_mosaic.version = 11 : i64} {
  func.func @kernel(%arg0: memref<16x8xf32, #tpu.memory_space<vmem>>, %arg1: memref<16x8xf32, #tpu.memory_space<vmem>>, %arg2: memref<2x2x128xf32, #tpu.memory_space<vmem>>, %arg3: memref<2x32x128xf32, #tpu.memory_space<vmem>>, %arg4: memref<2x2x32xf32, #tpu.memory_space<vmem>>, %arg5: memref<16x16xf32, #tpu.memory_space<vmem>>, %arg6: memref<16x16xf32, #tpu.memory_space<vmem>>, %arg7: memref<16x1xf32, #tpu.memory_space<vmem>>, %arg8: memref<16x1xf32, #tpu.memory_space<vmem>>, %arg9: memref<16x16xf32, #tpu.memory_space<vmem>>, %arg10: memref<8x4xf32, #tpu.memory_space<vmem>>, %arg11: memref<8x8xf32, #tpu.memory_space<vmem>>, %arg12: memref<2x3xf32, #tpu.memory_space<smem>>, %arg13: memref<16x4xf32, #tpu.memory_space<vmem>>, %arg14: memref<2x16x8xf32, #tpu.memory_space<vmem>>) attributes {dimension_semantics = [], scalar_prefetch = 0 : i64, scratch_operands = 0 : i64, tpu.core_type = #tpu.core_type<tc>} {
    %c0 = arith.constant 0 : index
    %c0_0 = arith.constant 0 : index
    %0 = vector.load %arg0[%c0, %c0_0] : memref<16x8xf32, #tpu.memory_space<vmem>>, vector<16x8xf32>
    %c0_1 = arith.constant 0 : index
    %c0_2 = arith.constant 0 : index
    %1 = vector.load %arg1[%c0_1, %c0_2] : memref<16x8xf32, #tpu.memory_space<vmem>>, vector<16x8xf32>
    %c0_3 = arith.constant 0 : index
    %c0_4 = arith.constant 0 : index
    %2 = vector.load %arg5[%c0_3, %c0_4] : memref<16x16xf32, #tpu.memory_space<vmem>>, vector<16x16xf32>
    %c0_5 = arith.constant 0 : index
    %c0_6 = arith.constant 0 : index
    %3 = vector.load %arg6[%c0_5, %c0_6] : memref<16x16xf32, #tpu.memory_space<vmem>>, vector<16x16xf32>
    %c0_7 = arith.constant 0 : index
    %c0_8 = arith.constant 0 : index
    %4 = vector.load %arg7[%c0_7, %c0_8] : memref<16x1xf32, #tpu.memory_space<vmem>>, vector<16x1xf32>
    %c0_9 = arith.constant 0 : index
    %c0_10 = arith.constant 0 : index
    %5 = vector.load %arg8[%c0_9, %c0_10] : memref<16x1xf32, #tpu.memory_space<vmem>>, vector<16x1xf32>
    %c0_11 = arith.constant 0 : index
    %c0_12 = arith.constant 0 : index
    %6 = vector.load %arg11[%c0_11, %c0_12] : memref<8x8xf32, #tpu.memory_space<vmem>>, vector<8x8xf32>
    %c0_13 = arith.constant 0 : index
    %c0_14 = arith.constant 0 : index
    %c0_15 = arith.constant 0 : index
    %7 = vector.load %arg2[%c0_13, %c0_14, %c0_15] : memref<2x2x128xf32, #tpu.memory_space<vmem>>, vector<1x2x128xf32>
    %8 = vector.shape_cast %7 : vector<1x2x128xf32> to vector<2x128xf32>
    %c0_16 = arith.constant 0 : index
    %c0_17 = arith.constant 0 : index
    %c0_18 = arith.constant 0 : index
    %9 = vector.load %arg3[%c0_16, %c0_17, %c0_18] : memref<2x32x128xf32, #tpu.memory_space<vmem>>, vector<1x32x128xf32>
    %10 = vector.shape_cast %9 : vector<1x32x128xf32> to vector<32x128xf32>
    %c0_19 = arith.constant 0 : index
    %c0_20 = arith.constant 0 : index
    %c0_21 = arith.constant 0 : index
    %11 = vector.load %arg4[%c0_19, %c0_20, %c0_21] : memref<2x2x32xf32, #tpu.memory_space<vmem>>, vector<1x2x32xf32>
    %12 = vector.shape_cast %11 : vector<1x2x32xf32> to vector<2x32xf32>
    %13 = vector.extract_strided_slice %8 {offsets = [0, 0], sizes = [1, 128], strides = [1, 1]} : vector<2x128xf32> to vector<1x128xf32>
    %14 = vector.extract_strided_slice %8 {offsets = [1, 0], sizes = [1, 128], strides = [1, 1]} : vector<2x128xf32> to vector<1x128xf32>
    %15 = vector.extract_strided_slice %12 {offsets = [0, 0], sizes = [1, 32], strides = [1, 1]} : vector<2x32xf32> to vector<1x32xf32>
    %16 = vector.extract_strided_slice %12 {offsets = [1, 0], sizes = [1, 32], strides = [1, 1]} : vector<2x32xf32> to vector<1x32xf32>
    %cst = arith.constant 0.000000e+00 : f32
    %17 = vector.broadcast %cst : f32 to vector<16x32xf32>
    %cst_22 = arith.constant 0.000000e+00 : f32
    %18 = vector.broadcast %cst_22 : f32 to vector<16x32xf32>
    %19 = vector.extract_strided_slice %6 {offsets = [0, 0], sizes = [1, 8], strides = [1, 1]} : vector<8x8xf32> to vector<1x8xf32>
    %20 = vector.broadcast %19 : vector<1x8xf32> to vector<16x8xf32>
    %21 = arith.mulf %0, %20 : vector<16x8xf32>
    %cst_23 = arith.constant dense<0.000000e+00> : vector<16xf32>
    %22 = vector.multi_reduction <add>, %21, %cst_23 [1] : vector<16x8xf32> to vector<16xf32>
    %23 = vector.shape_cast %22 : vector<16xf32> to vector<16x1xf32>
    %24 = vector.broadcast %19 : vector<1x8xf32> to vector<16x8xf32>
    %25 = arith.mulf %1, %24 : vector<16x8xf32>
    %cst_24 = arith.constant dense<0.000000e+00> : vector<16xf32>
    %26 = vector.multi_reduction <add>, %25, %cst_24 [1] : vector<16x8xf32> to vector<16xf32>
    %27 = vector.shape_cast %26 : vector<16xf32> to vector<16x1xf32>
    %28 = vector.broadcast %23 : vector<16x1xf32> to vector<16x128xf32>
    %29 = vector.broadcast %13 : vector<1x128xf32> to vector<16x128xf32>
    %30 = arith.mulf %28, %29 : vector<16x128xf32>
    %31 = vector.broadcast %27 : vector<16x1xf32> to vector<16x128xf32>
    %32 = vector.broadcast %14 : vector<1x128xf32> to vector<16x128xf32>
    %33 = arith.mulf %31, %32 : vector<16x128xf32>
    %34 = arith.addf %30, %33 : vector<16x128xf32>
    %cst_25 = arith.constant dense<0.000000e+00> : vector<16x128xf32>
    %35 = tpu.matmul %17, %10, %cst_25 {dimension_numbers = #tpu.dot_dimension_numbers<[1], [0], [0], [1], [0, 0, 1, 1], [], []>} : vector<16x32xf32>, vector<32x128xf32>, vector<16x128xf32> -> vector<16x128xf32>
    %36 = arith.addf %34, %35 : vector<16x128xf32>
    %37 = vector.extract_strided_slice %36 {offsets = [0, 0], sizes = [16, 32], strides = [1, 1]} : vector<16x128xf32> to vector<16x32xf32>
    %cst_26 = arith.constant 5.000000e-01 : f32
    %38 = vector.broadcast %cst_26 : f32 to vector<16x32xf32>
    %39 = arith.mulf %38, %37 : vector<16x32xf32>
    %40 = math.tanh %39 : vector<16x32xf32>
    %cst_27 = arith.constant 5.000000e-01 : f32
    %41 = vector.broadcast %cst_27 : f32 to vector<16x32xf32>
    %42 = arith.mulf %41, %40 : vector<16x32xf32>
    %cst_28 = arith.constant 5.000000e-01 : f32
    %43 = vector.broadcast %cst_28 : f32 to vector<16x32xf32>
    %44 = arith.addf %42, %43 : vector<16x32xf32>
    %45 = vector.extract_strided_slice %36 {offsets = [0, 32], sizes = [16, 32], strides = [1, 1]} : vector<16x128xf32> to vector<16x32xf32>
    %cst_29 = arith.constant 5.000000e-01 : f32
    %46 = vector.broadcast %cst_29 : f32 to vector<16x32xf32>
    %47 = arith.mulf %46, %45 : vector<16x32xf32>
    %48 = math.tanh %47 : vector<16x32xf32>
    %cst_30 = arith.constant 5.000000e-01 : f32
    %49 = vector.broadcast %cst_30 : f32 to vector<16x32xf32>
    %50 = arith.mulf %49, %48 : vector<16x32xf32>
    %cst_31 = arith.constant 5.000000e-01 : f32
    %51 = vector.broadcast %cst_31 : f32 to vector<16x32xf32>
    %52 = arith.addf %50, %51 : vector<16x32xf32>
    %53 = vector.extract_strided_slice %36 {offsets = [0, 64], sizes = [16, 32], strides = [1, 1]} : vector<16x128xf32> to vector<16x32xf32>
    %54 = math.tanh %53 : vector<16x32xf32>
    %55 = vector.extract_strided_slice %36 {offsets = [0, 96], sizes = [16, 32], strides = [1, 1]} : vector<16x128xf32> to vector<16x32xf32>
    %cst_32 = arith.constant 5.000000e-01 : f32
    %56 = vector.broadcast %cst_32 : f32 to vector<16x32xf32>
    %57 = arith.mulf %56, %55 : vector<16x32xf32>
    %58 = math.tanh %57 : vector<16x32xf32>
    %cst_33 = arith.constant 5.000000e-01 : f32
    %59 = vector.broadcast %cst_33 : f32 to vector<16x32xf32>
    %60 = arith.mulf %59, %58 : vector<16x32xf32>
    %cst_34 = arith.constant 5.000000e-01 : f32
    %61 = vector.broadcast %cst_34 : f32 to vector<16x32xf32>
    %62 = arith.addf %60, %61 : vector<16x32xf32>
    %63 = arith.mulf %52, %18 : vector<16x32xf32>
    %64 = arith.mulf %44, %54 : vector<16x32xf32>
    %65 = arith.addf %63, %64 : vector<16x32xf32>
    %66 = math.tanh %65 : vector<16x32xf32>
    %67 = arith.mulf %62, %66 : vector<16x32xf32>
    %68 = vector.extract_strided_slice %6 {offsets = [1, 0], sizes = [1, 8], strides = [1, 1]} : vector<8x8xf32> to vector<1x8xf32>
    %69 = vector.broadcast %68 : vector<1x8xf32> to vector<16x8xf32>
    %70 = arith.mulf %0, %69 : vector<16x8xf32>
    %cst_35 = arith.constant dense<0.000000e+00> : vector<16xf32>
    %71 = vector.multi_reduction <add>, %70, %cst_35 [1] : vector<16x8xf32> to vector<16xf32>
    %72 = vector.shape_cast %71 : vector<16xf32> to vector<16x1xf32>
    %73 = vector.broadcast %68 : vector<1x8xf32> to vector<16x8xf32>
    %74 = arith.mulf %1, %73 : vector<16x8xf32>
    %cst_36 = arith.constant dense<0.000000e+00> : vector<16xf32>
    %75 = vector.multi_reduction <add>, %74, %cst_36 [1] : vector<16x8xf32> to vector<16xf32>
    %76 = vector.shape_cast %75 : vector<16xf32> to vector<16x1xf32>
    %77 = vector.broadcast %72 : vector<16x1xf32> to vector<16x128xf32>
    %78 = vector.broadcast %13 : vector<1x128xf32> to vector<16x128xf32>
    %79 = arith.mulf %77, %78 : vector<16x128xf32>
    %80 = vector.broadcast %76 : vector<16x1xf32> to vector<16x128xf32>
    %81 = vector.broadcast %14 : vector<1x128xf32> to vector<16x128xf32>
    %82 = arith.mulf %80, %81 : vector<16x128xf32>
    %83 = arith.addf %79, %82 : vector<16x128xf32>
    %cst_37 = arith.constant dense<0.000000e+00> : vector<16x128xf32>
    %84 = tpu.matmul %67, %10, %cst_37 {dimension_numbers = #tpu.dot_dimension_numbers<[1], [0], [0], [1], [0, 0, 1, 1], [], []>} : vector<16x32xf32>, vector<32x128xf32>, vector<16x128xf32> -> vector<16x128xf32>
    %85 = arith.addf %83, %84 : vector<16x128xf32>
    %86 = vector.extract_strided_slice %85 {offsets = [0, 0], sizes = [16, 32], strides = [1, 1]} : vector<16x128xf32> to vector<16x32xf32>
    %cst_38 = arith.constant 5.000000e-01 : f32
    %87 = vector.broadcast %cst_38 : f32 to vector<16x32xf32>
    %88 = arith.mulf %87, %86 : vector<16x32xf32>
    %89 = math.tanh %88 : vector<16x32xf32>
    %cst_39 = arith.constant 5.000000e-01 : f32
    %90 = vector.broadcast %cst_39 : f32 to vector<16x32xf32>
    %91 = arith.mulf %90, %89 : vector<16x32xf32>
    %cst_40 = arith.constant 5.000000e-01 : f32
    %92 = vector.broadcast %cst_40 : f32 to vector<16x32xf32>
    %93 = arith.addf %91, %92 : vector<16x32xf32>
    %94 = vector.extract_strided_slice %85 {offsets = [0, 32], sizes = [16, 32], strides = [1, 1]} : vector<16x128xf32> to vector<16x32xf32>
    %cst_41 = arith.constant 5.000000e-01 : f32
    %95 = vector.broadcast %cst_41 : f32 to vector<16x32xf32>
    %96 = arith.mulf %95, %94 : vector<16x32xf32>
    %97 = math.tanh %96 : vector<16x32xf32>
    %cst_42 = arith.constant 5.000000e-01 : f32
    %98 = vector.broadcast %cst_42 : f32 to vector<16x32xf32>
    %99 = arith.mulf %98, %97 : vector<16x32xf32>
    %cst_43 = arith.constant 5.000000e-01 : f32
    %100 = vector.broadcast %cst_43 : f32 to vector<16x32xf32>
    %101 = arith.addf %99, %100 : vector<16x32xf32>
    %102 = vector.extract_strided_slice %85 {offsets = [0, 64], sizes = [16, 32], strides = [1, 1]} : vector<16x128xf32> to vector<16x32xf32>
    %103 = math.tanh %102 : vector<16x32xf32>
    %104 = vector.extract_strided_slice %85 {offsets = [0, 96], sizes = [16, 32], strides = [1, 1]} : vector<16x128xf32> to vector<16x32xf32>
    %cst_44 = arith.constant 5.000000e-01 : f32
    %105 = vector.broadcast %cst_44 : f32 to vector<16x32xf32>
    %106 = arith.mulf %105, %104 : vector<16x32xf32>
    %107 = math.tanh %106 : vector<16x32xf32>
    %cst_45 = arith.constant 5.000000e-01 : f32
    %108 = vector.broadcast %cst_45 : f32 to vector<16x32xf32>
    %109 = arith.mulf %108, %107 : vector<16x32xf32>
    %cst_46 = arith.constant 5.000000e-01 : f32
    %110 = vector.broadcast %cst_46 : f32 to vector<16x32xf32>
    %111 = arith.addf %109, %110 : vector<16x32xf32>
    %112 = arith.mulf %101, %65 : vector<16x32xf32>
    %113 = arith.mulf %93, %103 : vector<16x32xf32>
    %114 = arith.addf %112, %113 : vector<16x32xf32>
    %115 = math.tanh %114 : vector<16x32xf32>
    %116 = arith.mulf %111, %115 : vector<16x32xf32>
    %117 = vector.extract_strided_slice %6 {offsets = [2, 0], sizes = [1, 8], strides = [1, 1]} : vector<8x8xf32> to vector<1x8xf32>
    %118 = vector.broadcast %117 : vector<1x8xf32> to vector<16x8xf32>
    %119 = arith.mulf %0, %118 : vector<16x8xf32>
    %cst_47 = arith.constant dense<0.000000e+00> : vector<16xf32>
    %120 = vector.multi_reduction <add>, %119, %cst_47 [1] : vector<16x8xf32> to vector<16xf32>
    %121 = vector.shape_cast %120 : vector<16xf32> to vector<16x1xf32>
    %122 = vector.broadcast %117 : vector<1x8xf32> to vector<16x8xf32>
    %123 = arith.mulf %1, %122 : vector<16x8xf32>
    %cst_48 = arith.constant dense<0.000000e+00> : vector<16xf32>
    %124 = vector.multi_reduction <add>, %123, %cst_48 [1] : vector<16x8xf32> to vector<16xf32>
    %125 = vector.shape_cast %124 : vector<16xf32> to vector<16x1xf32>
    %126 = vector.broadcast %121 : vector<16x1xf32> to vector<16x128xf32>
    %127 = vector.broadcast %13 : vector<1x128xf32> to vector<16x128xf32>
    %128 = arith.mulf %126, %127 : vector<16x128xf32>
    %129 = vector.broadcast %125 : vector<16x1xf32> to vector<16x128xf32>
    %130 = vector.broadcast %14 : vector<1x128xf32> to vector<16x128xf32>
    %131 = arith.mulf %129, %130 : vector<16x128xf32>
    %132 = arith.addf %128, %131 : vector<16x128xf32>
    %cst_49 = arith.constant dense<0.000000e+00> : vector<16x128xf32>
    %133 = tpu.matmul %116, %10, %cst_49 {dimension_numbers = #tpu.dot_dimension_numbers<[1], [0], [0], [1], [0, 0, 1, 1], [], []>} : vector<16x32xf32>, vector<32x128xf32>, vector<16x128xf32> -> vector<16x128xf32>
    %134 = arith.addf %132, %133 : vector<16x128xf32>
    %135 = vector.extract_strided_slice %134 {offsets = [0, 0], sizes = [16, 32], strides = [1, 1]} : vector<16x128xf32> to vector<16x32xf32>
    %cst_50 = arith.constant 5.000000e-01 : f32
    %136 = vector.broadcast %cst_50 : f32 to vector<16x32xf32>
    %137 = arith.mulf %136, %135 : vector<16x32xf32>
    %138 = math.tanh %137 : vector<16x32xf32>
    %cst_51 = arith.constant 5.000000e-01 : f32
    %139 = vector.broadcast %cst_51 : f32 to vector<16x32xf32>
    %140 = arith.mulf %139, %138 : vector<16x32xf32>
    %cst_52 = arith.constant 5.000000e-01 : f32
    %141 = vector.broadcast %cst_52 : f32 to vector<16x32xf32>
    %142 = arith.addf %140, %141 : vector<16x32xf32>
    %143 = vector.extract_strided_slice %134 {offsets = [0, 32], sizes = [16, 32], strides = [1, 1]} : vector<16x128xf32> to vector<16x32xf32>
    %cst_53 = arith.constant 5.000000e-01 : f32
    %144 = vector.broadcast %cst_53 : f32 to vector<16x32xf32>
    %145 = arith.mulf %144, %143 : vector<16x32xf32>
    %146 = math.tanh %145 : vector<16x32xf32>
    %cst_54 = arith.constant 5.000000e-01 : f32
    %147 = vector.broadcast %cst_54 : f32 to vector<16x32xf32>
    %148 = arith.mulf %147, %146 : vector<16x32xf32>
    %cst_55 = arith.constant 5.000000e-01 : f32
    %149 = vector.broadcast %cst_55 : f32 to vector<16x32xf32>
    %150 = arith.addf %148, %149 : vector<16x32xf32>
    %151 = vector.extract_strided_slice %134 {offsets = [0, 64], sizes = [16, 32], strides = [1, 1]} : vector<16x128xf32> to vector<16x32xf32>
    %152 = math.tanh %151 : vector<16x32xf32>
    %153 = vector.extract_strided_slice %134 {offsets = [0, 96], sizes = [16, 32], strides = [1, 1]} : vector<16x128xf32> to vector<16x32xf32>
    %cst_56 = arith.constant 5.000000e-01 : f32
    %154 = vector.broadcast %cst_56 : f32 to vector<16x32xf32>
    %155 = arith.mulf %154, %153 : vector<16x32xf32>
    %156 = math.tanh %155 : vector<16x32xf32>
    %cst_57 = arith.constant 5.000000e-01 : f32
    %157 = vector.broadcast %cst_57 : f32 to vector<16x32xf32>
    %158 = arith.mulf %157, %156 : vector<16x32xf32>
    %cst_58 = arith.constant 5.000000e-01 : f32
    %159 = vector.broadcast %cst_58 : f32 to vector<16x32xf32>
    %160 = arith.addf %158, %159 : vector<16x32xf32>
    %161 = arith.mulf %150, %114 : vector<16x32xf32>
    %162 = arith.mulf %142, %152 : vector<16x32xf32>
    %163 = arith.addf %161, %162 : vector<16x32xf32>
    %164 = math.tanh %163 : vector<16x32xf32>
    %165 = arith.mulf %160, %164 : vector<16x32xf32>
    %166 = vector.extract_strided_slice %6 {offsets = [3, 0], sizes = [1, 8], strides = [1, 1]} : vector<8x8xf32> to vector<1x8xf32>
    %167 = vector.broadcast %166 : vector<1x8xf32> to vector<16x8xf32>
    %168 = arith.mulf %0, %167 : vector<16x8xf32>
    %cst_59 = arith.constant dense<0.000000e+00> : vector<16xf32>
    %169 = vector.multi_reduction <add>, %168, %cst_59 [1] : vector<16x8xf32> to vector<16xf32>
    %170 = vector.shape_cast %169 : vector<16xf32> to vector<16x1xf32>
    %171 = vector.broadcast %166 : vector<1x8xf32> to vector<16x8xf32>
    %172 = arith.mulf %1, %171 : vector<16x8xf32>
    %cst_60 = arith.constant dense<0.000000e+00> : vector<16xf32>
    %173 = vector.multi_reduction <add>, %172, %cst_60 [1] : vector<16x8xf32> to vector<16xf32>
    %174 = vector.shape_cast %173 : vector<16xf32> to vector<16x1xf32>
    %175 = vector.broadcast %170 : vector<16x1xf32> to vector<16x128xf32>
    %176 = vector.broadcast %13 : vector<1x128xf32> to vector<16x128xf32>
    %177 = arith.mulf %175, %176 : vector<16x128xf32>
    %178 = vector.broadcast %174 : vector<16x1xf32> to vector<16x128xf32>
    %179 = vector.broadcast %14 : vector<1x128xf32> to vector<16x128xf32>
    %180 = arith.mulf %178, %179 : vector<16x128xf32>
    %181 = arith.addf %177, %180 : vector<16x128xf32>
    %cst_61 = arith.constant dense<0.000000e+00> : vector<16x128xf32>
    %182 = tpu.matmul %165, %10, %cst_61 {dimension_numbers = #tpu.dot_dimension_numbers<[1], [0], [0], [1], [0, 0, 1, 1], [], []>} : vector<16x32xf32>, vector<32x128xf32>, vector<16x128xf32> -> vector<16x128xf32>
    %183 = arith.addf %181, %182 : vector<16x128xf32>
    %184 = vector.extract_strided_slice %183 {offsets = [0, 0], sizes = [16, 32], strides = [1, 1]} : vector<16x128xf32> to vector<16x32xf32>
    %cst_62 = arith.constant 5.000000e-01 : f32
    %185 = vector.broadcast %cst_62 : f32 to vector<16x32xf32>
    %186 = arith.mulf %185, %184 : vector<16x32xf32>
    %187 = math.tanh %186 : vector<16x32xf32>
    %cst_63 = arith.constant 5.000000e-01 : f32
    %188 = vector.broadcast %cst_63 : f32 to vector<16x32xf32>
    %189 = arith.mulf %188, %187 : vector<16x32xf32>
    %cst_64 = arith.constant 5.000000e-01 : f32
    %190 = vector.broadcast %cst_64 : f32 to vector<16x32xf32>
    %191 = arith.addf %189, %190 : vector<16x32xf32>
    %192 = vector.extract_strided_slice %183 {offsets = [0, 32], sizes = [16, 32], strides = [1, 1]} : vector<16x128xf32> to vector<16x32xf32>
    %cst_65 = arith.constant 5.000000e-01 : f32
    %193 = vector.broadcast %cst_65 : f32 to vector<16x32xf32>
    %194 = arith.mulf %193, %192 : vector<16x32xf32>
    %195 = math.tanh %194 : vector<16x32xf32>
    %cst_66 = arith.constant 5.000000e-01 : f32
    %196 = vector.broadcast %cst_66 : f32 to vector<16x32xf32>
    %197 = arith.mulf %196, %195 : vector<16x32xf32>
    %cst_67 = arith.constant 5.000000e-01 : f32
    %198 = vector.broadcast %cst_67 : f32 to vector<16x32xf32>
    %199 = arith.addf %197, %198 : vector<16x32xf32>
    %200 = vector.extract_strided_slice %183 {offsets = [0, 64], sizes = [16, 32], strides = [1, 1]} : vector<16x128xf32> to vector<16x32xf32>
    %201 = math.tanh %200 : vector<16x32xf32>
    %202 = vector.extract_strided_slice %183 {offsets = [0, 96], sizes = [16, 32], strides = [1, 1]} : vector<16x128xf32> to vector<16x32xf32>
    %cst_68 = arith.constant 5.000000e-01 : f32
    %203 = vector.broadcast %cst_68 : f32 to vector<16x32xf32>
    %204 = arith.mulf %203, %202 : vector<16x32xf32>
    %205 = math.tanh %204 : vector<16x32xf32>
    %cst_69 = arith.constant 5.000000e-01 : f32
    %206 = vector.broadcast %cst_69 : f32 to vector<16x32xf32>
    %207 = arith.mulf %206, %205 : vector<16x32xf32>
    %cst_70 = arith.constant 5.000000e-01 : f32
    %208 = vector.broadcast %cst_70 : f32 to vector<16x32xf32>
    %209 = arith.addf %207, %208 : vector<16x32xf32>
    %210 = arith.mulf %199, %163 : vector<16x32xf32>
    %211 = arith.mulf %191, %201 : vector<16x32xf32>
    %212 = arith.addf %210, %211 : vector<16x32xf32>
    %213 = math.tanh %212 : vector<16x32xf32>
    %214 = arith.mulf %209, %213 : vector<16x32xf32>
    %215 = vector.extract_strided_slice %6 {offsets = [4, 0], sizes = [1, 8], strides = [1, 1]} : vector<8x8xf32> to vector<1x8xf32>
    %216 = vector.broadcast %215 : vector<1x8xf32> to vector<16x8xf32>
    %217 = arith.mulf %0, %216 : vector<16x8xf32>
    %cst_71 = arith.constant dense<0.000000e+00> : vector<16xf32>
    %218 = vector.multi_reduction <add>, %217, %cst_71 [1] : vector<16x8xf32> to vector<16xf32>
    %219 = vector.shape_cast %218 : vector<16xf32> to vector<16x1xf32>
    %220 = vector.broadcast %215 : vector<1x8xf32> to vector<16x8xf32>
    %221 = arith.mulf %1, %220 : vector<16x8xf32>
    %cst_72 = arith.constant dense<0.000000e+00> : vector<16xf32>
    %222 = vector.multi_reduction <add>, %221, %cst_72 [1] : vector<16x8xf32> to vector<16xf32>
    %223 = vector.shape_cast %222 : vector<16xf32> to vector<16x1xf32>
    %224 = vector.broadcast %219 : vector<16x1xf32> to vector<16x128xf32>
    %225 = vector.broadcast %13 : vector<1x128xf32> to vector<16x128xf32>
    %226 = arith.mulf %224, %225 : vector<16x128xf32>
    %227 = vector.broadcast %223 : vector<16x1xf32> to vector<16x128xf32>
    %228 = vector.broadcast %14 : vector<1x128xf32> to vector<16x128xf32>
    %229 = arith.mulf %227, %228 : vector<16x128xf32>
    %230 = arith.addf %226, %229 : vector<16x128xf32>
    %cst_73 = arith.constant dense<0.000000e+00> : vector<16x128xf32>
    %231 = tpu.matmul %214, %10, %cst_73 {dimension_numbers = #tpu.dot_dimension_numbers<[1], [0], [0], [1], [0, 0, 1, 1], [], []>} : vector<16x32xf32>, vector<32x128xf32>, vector<16x128xf32> -> vector<16x128xf32>
    %232 = arith.addf %230, %231 : vector<16x128xf32>
    %233 = vector.extract_strided_slice %232 {offsets = [0, 0], sizes = [16, 32], strides = [1, 1]} : vector<16x128xf32> to vector<16x32xf32>
    %cst_74 = arith.constant 5.000000e-01 : f32
    %234 = vector.broadcast %cst_74 : f32 to vector<16x32xf32>
    %235 = arith.mulf %234, %233 : vector<16x32xf32>
    %236 = math.tanh %235 : vector<16x32xf32>
    %cst_75 = arith.constant 5.000000e-01 : f32
    %237 = vector.broadcast %cst_75 : f32 to vector<16x32xf32>
    %238 = arith.mulf %237, %236 : vector<16x32xf32>
    %cst_76 = arith.constant 5.000000e-01 : f32
    %239 = vector.broadcast %cst_76 : f32 to vector<16x32xf32>
    %240 = arith.addf %238, %239 : vector<16x32xf32>
    %241 = vector.extract_strided_slice %232 {offsets = [0, 32], sizes = [16, 32], strides = [1, 1]} : vector<16x128xf32> to vector<16x32xf32>
    %cst_77 = arith.constant 5.000000e-01 : f32
    %242 = vector.broadcast %cst_77 : f32 to vector<16x32xf32>
    %243 = arith.mulf %242, %241 : vector<16x32xf32>
    %244 = math.tanh %243 : vector<16x32xf32>
    %cst_78 = arith.constant 5.000000e-01 : f32
    %245 = vector.broadcast %cst_78 : f32 to vector<16x32xf32>
    %246 = arith.mulf %245, %244 : vector<16x32xf32>
    %cst_79 = arith.constant 5.000000e-01 : f32
    %247 = vector.broadcast %cst_79 : f32 to vector<16x32xf32>
    %248 = arith.addf %246, %247 : vector<16x32xf32>
    %249 = vector.extract_strided_slice %232 {offsets = [0, 64], sizes = [16, 32], strides = [1, 1]} : vector<16x128xf32> to vector<16x32xf32>
    %250 = math.tanh %249 : vector<16x32xf32>
    %251 = vector.extract_strided_slice %232 {offsets = [0, 96], sizes = [16, 32], strides = [1, 1]} : vector<16x128xf32> to vector<16x32xf32>
    %cst_80 = arith.constant 5.000000e-01 : f32
    %252 = vector.broadcast %cst_80 : f32 to vector<16x32xf32>
    %253 = arith.mulf %252, %251 : vector<16x32xf32>
    %254 = math.tanh %253 : vector<16x32xf32>
    %cst_81 = arith.constant 5.000000e-01 : f32
    %255 = vector.broadcast %cst_81 : f32 to vector<16x32xf32>
    %256 = arith.mulf %255, %254 : vector<16x32xf32>
    %cst_82 = arith.constant 5.000000e-01 : f32
    %257 = vector.broadcast %cst_82 : f32 to vector<16x32xf32>
    %258 = arith.addf %256, %257 : vector<16x32xf32>
    %259 = arith.mulf %248, %212 : vector<16x32xf32>
    %260 = arith.mulf %240, %250 : vector<16x32xf32>
    %261 = arith.addf %259, %260 : vector<16x32xf32>
    %262 = math.tanh %261 : vector<16x32xf32>
    %263 = arith.mulf %258, %262 : vector<16x32xf32>
    %264 = vector.extract_strided_slice %6 {offsets = [5, 0], sizes = [1, 8], strides = [1, 1]} : vector<8x8xf32> to vector<1x8xf32>
    %265 = vector.broadcast %264 : vector<1x8xf32> to vector<16x8xf32>
    %266 = arith.mulf %0, %265 : vector<16x8xf32>
    %cst_83 = arith.constant dense<0.000000e+00> : vector<16xf32>
    %267 = vector.multi_reduction <add>, %266, %cst_83 [1] : vector<16x8xf32> to vector<16xf32>
    %268 = vector.shape_cast %267 : vector<16xf32> to vector<16x1xf32>
    %269 = vector.broadcast %264 : vector<1x8xf32> to vector<16x8xf32>
    %270 = arith.mulf %1, %269 : vector<16x8xf32>
    %cst_84 = arith.constant dense<0.000000e+00> : vector<16xf32>
    %271 = vector.multi_reduction <add>, %270, %cst_84 [1] : vector<16x8xf32> to vector<16xf32>
    %272 = vector.shape_cast %271 : vector<16xf32> to vector<16x1xf32>
    %273 = vector.broadcast %268 : vector<16x1xf32> to vector<16x128xf32>
    %274 = vector.broadcast %13 : vector<1x128xf32> to vector<16x128xf32>
    %275 = arith.mulf %273, %274 : vector<16x128xf32>
    %276 = vector.broadcast %272 : vector<16x1xf32> to vector<16x128xf32>
    %277 = vector.broadcast %14 : vector<1x128xf32> to vector<16x128xf32>
    %278 = arith.mulf %276, %277 : vector<16x128xf32>
    %279 = arith.addf %275, %278 : vector<16x128xf32>
    %cst_85 = arith.constant dense<0.000000e+00> : vector<16x128xf32>
    %280 = tpu.matmul %263, %10, %cst_85 {dimension_numbers = #tpu.dot_dimension_numbers<[1], [0], [0], [1], [0, 0, 1, 1], [], []>} : vector<16x32xf32>, vector<32x128xf32>, vector<16x128xf32> -> vector<16x128xf32>
    %281 = arith.addf %279, %280 : vector<16x128xf32>
    %282 = vector.extract_strided_slice %281 {offsets = [0, 0], sizes = [16, 32], strides = [1, 1]} : vector<16x128xf32> to vector<16x32xf32>
    %cst_86 = arith.constant 5.000000e-01 : f32
    %283 = vector.broadcast %cst_86 : f32 to vector<16x32xf32>
    %284 = arith.mulf %283, %282 : vector<16x32xf32>
    %285 = math.tanh %284 : vector<16x32xf32>
    %cst_87 = arith.constant 5.000000e-01 : f32
    %286 = vector.broadcast %cst_87 : f32 to vector<16x32xf32>
    %287 = arith.mulf %286, %285 : vector<16x32xf32>
    %cst_88 = arith.constant 5.000000e-01 : f32
    %288 = vector.broadcast %cst_88 : f32 to vector<16x32xf32>
    %289 = arith.addf %287, %288 : vector<16x32xf32>
    %290 = vector.extract_strided_slice %281 {offsets = [0, 32], sizes = [16, 32], strides = [1, 1]} : vector<16x128xf32> to vector<16x32xf32>
    %cst_89 = arith.constant 5.000000e-01 : f32
    %291 = vector.broadcast %cst_89 : f32 to vector<16x32xf32>
    %292 = arith.mulf %291, %290 : vector<16x32xf32>
    %293 = math.tanh %292 : vector<16x32xf32>
    %cst_90 = arith.constant 5.000000e-01 : f32
    %294 = vector.broadcast %cst_90 : f32 to vector<16x32xf32>
    %295 = arith.mulf %294, %293 : vector<16x32xf32>
    %cst_91 = arith.constant 5.000000e-01 : f32
    %296 = vector.broadcast %cst_91 : f32 to vector<16x32xf32>
    %297 = arith.addf %295, %296 : vector<16x32xf32>
    %298 = vector.extract_strided_slice %281 {offsets = [0, 64], sizes = [16, 32], strides = [1, 1]} : vector<16x128xf32> to vector<16x32xf32>
    %299 = math.tanh %298 : vector<16x32xf32>
    %300 = vector.extract_strided_slice %281 {offsets = [0, 96], sizes = [16, 32], strides = [1, 1]} : vector<16x128xf32> to vector<16x32xf32>
    %cst_92 = arith.constant 5.000000e-01 : f32
    %301 = vector.broadcast %cst_92 : f32 to vector<16x32xf32>
    %302 = arith.mulf %301, %300 : vector<16x32xf32>
    %303 = math.tanh %302 : vector<16x32xf32>
    %cst_93 = arith.constant 5.000000e-01 : f32
    %304 = vector.broadcast %cst_93 : f32 to vector<16x32xf32>
    %305 = arith.mulf %304, %303 : vector<16x32xf32>
    %cst_94 = arith.constant 5.000000e-01 : f32
    %306 = vector.broadcast %cst_94 : f32 to vector<16x32xf32>
    %307 = arith.addf %305, %306 : vector<16x32xf32>
    %308 = arith.mulf %297, %261 : vector<16x32xf32>
    %309 = arith.mulf %289, %299 : vector<16x32xf32>
    %310 = arith.addf %308, %309 : vector<16x32xf32>
    %311 = math.tanh %310 : vector<16x32xf32>
    %312 = arith.mulf %307, %311 : vector<16x32xf32>
    %313 = vector.extract_strided_slice %6 {offsets = [6, 0], sizes = [1, 8], strides = [1, 1]} : vector<8x8xf32> to vector<1x8xf32>
    %314 = vector.broadcast %313 : vector<1x8xf32> to vector<16x8xf32>
    %315 = arith.mulf %0, %314 : vector<16x8xf32>
    %cst_95 = arith.constant dense<0.000000e+00> : vector<16xf32>
    %316 = vector.multi_reduction <add>, %315, %cst_95 [1] : vector<16x8xf32> to vector<16xf32>
    %317 = vector.shape_cast %316 : vector<16xf32> to vector<16x1xf32>
    %318 = vector.broadcast %313 : vector<1x8xf32> to vector<16x8xf32>
    %319 = arith.mulf %1, %318 : vector<16x8xf32>
    %cst_96 = arith.constant dense<0.000000e+00> : vector<16xf32>
    %320 = vector.multi_reduction <add>, %319, %cst_96 [1] : vector<16x8xf32> to vector<16xf32>
    %321 = vector.shape_cast %320 : vector<16xf32> to vector<16x1xf32>
    %322 = vector.broadcast %317 : vector<16x1xf32> to vector<16x128xf32>
    %323 = vector.broadcast %13 : vector<1x128xf32> to vector<16x128xf32>
    %324 = arith.mulf %322, %323 : vector<16x128xf32>
    %325 = vector.broadcast %321 : vector<16x1xf32> to vector<16x128xf32>
    %326 = vector.broadcast %14 : vector<1x128xf32> to vector<16x128xf32>
    %327 = arith.mulf %325, %326 : vector<16x128xf32>
    %328 = arith.addf %324, %327 : vector<16x128xf32>
    %cst_97 = arith.constant dense<0.000000e+00> : vector<16x128xf32>
    %329 = tpu.matmul %312, %10, %cst_97 {dimension_numbers = #tpu.dot_dimension_numbers<[1], [0], [0], [1], [0, 0, 1, 1], [], []>} : vector<16x32xf32>, vector<32x128xf32>, vector<16x128xf32> -> vector<16x128xf32>
    %330 = arith.addf %328, %329 : vector<16x128xf32>
    %331 = vector.extract_strided_slice %330 {offsets = [0, 0], sizes = [16, 32], strides = [1, 1]} : vector<16x128xf32> to vector<16x32xf32>
    %cst_98 = arith.constant 5.000000e-01 : f32
    %332 = vector.broadcast %cst_98 : f32 to vector<16x32xf32>
    %333 = arith.mulf %332, %331 : vector<16x32xf32>
    %334 = math.tanh %333 : vector<16x32xf32>
    %cst_99 = arith.constant 5.000000e-01 : f32
    %335 = vector.broadcast %cst_99 : f32 to vector<16x32xf32>
    %336 = arith.mulf %335, %334 : vector<16x32xf32>
    %cst_100 = arith.constant 5.000000e-01 : f32
    %337 = vector.broadcast %cst_100 : f32 to vector<16x32xf32>
    %338 = arith.addf %336, %337 : vector<16x32xf32>
    %339 = vector.extract_strided_slice %330 {offsets = [0, 32], sizes = [16, 32], strides = [1, 1]} : vector<16x128xf32> to vector<16x32xf32>
    %cst_101 = arith.constant 5.000000e-01 : f32
    %340 = vector.broadcast %cst_101 : f32 to vector<16x32xf32>
    %341 = arith.mulf %340, %339 : vector<16x32xf32>
    %342 = math.tanh %341 : vector<16x32xf32>
    %cst_102 = arith.constant 5.000000e-01 : f32
    %343 = vector.broadcast %cst_102 : f32 to vector<16x32xf32>
    %344 = arith.mulf %343, %342 : vector<16x32xf32>
    %cst_103 = arith.constant 5.000000e-01 : f32
    %345 = vector.broadcast %cst_103 : f32 to vector<16x32xf32>
    %346 = arith.addf %344, %345 : vector<16x32xf32>
    %347 = vector.extract_strided_slice %330 {offsets = [0, 64], sizes = [16, 32], strides = [1, 1]} : vector<16x128xf32> to vector<16x32xf32>
    %348 = math.tanh %347 : vector<16x32xf32>
    %349 = vector.extract_strided_slice %330 {offsets = [0, 96], sizes = [16, 32], strides = [1, 1]} : vector<16x128xf32> to vector<16x32xf32>
    %cst_104 = arith.constant 5.000000e-01 : f32
    %350 = vector.broadcast %cst_104 : f32 to vector<16x32xf32>
    %351 = arith.mulf %350, %349 : vector<16x32xf32>
    %352 = math.tanh %351 : vector<16x32xf32>
    %cst_105 = arith.constant 5.000000e-01 : f32
    %353 = vector.broadcast %cst_105 : f32 to vector<16x32xf32>
    %354 = arith.mulf %353, %352 : vector<16x32xf32>
    %cst_106 = arith.constant 5.000000e-01 : f32
    %355 = vector.broadcast %cst_106 : f32 to vector<16x32xf32>
    %356 = arith.addf %354, %355 : vector<16x32xf32>
    %357 = arith.mulf %346, %310 : vector<16x32xf32>
    %358 = arith.mulf %338, %348 : vector<16x32xf32>
    %359 = arith.addf %357, %358 : vector<16x32xf32>
    %360 = math.tanh %359 : vector<16x32xf32>
    %361 = arith.mulf %356, %360 : vector<16x32xf32>
    %362 = vector.extract_strided_slice %6 {offsets = [7, 0], sizes = [1, 8], strides = [1, 1]} : vector<8x8xf32> to vector<1x8xf32>
    %363 = vector.broadcast %362 : vector<1x8xf32> to vector<16x8xf32>
    %364 = arith.mulf %0, %363 : vector<16x8xf32>
    %cst_107 = arith.constant dense<0.000000e+00> : vector<16xf32>
    %365 = vector.multi_reduction <add>, %364, %cst_107 [1] : vector<16x8xf32> to vector<16xf32>
    %366 = vector.shape_cast %365 : vector<16xf32> to vector<16x1xf32>
    %367 = vector.broadcast %362 : vector<1x8xf32> to vector<16x8xf32>
    %368 = arith.mulf %1, %367 : vector<16x8xf32>
    %cst_108 = arith.constant dense<0.000000e+00> : vector<16xf32>
    %369 = vector.multi_reduction <add>, %368, %cst_108 [1] : vector<16x8xf32> to vector<16xf32>
    %370 = vector.shape_cast %369 : vector<16xf32> to vector<16x1xf32>
    %371 = vector.broadcast %366 : vector<16x1xf32> to vector<16x128xf32>
    %372 = vector.broadcast %13 : vector<1x128xf32> to vector<16x128xf32>
    %373 = arith.mulf %371, %372 : vector<16x128xf32>
    %374 = vector.broadcast %370 : vector<16x1xf32> to vector<16x128xf32>
    %375 = vector.broadcast %14 : vector<1x128xf32> to vector<16x128xf32>
    %376 = arith.mulf %374, %375 : vector<16x128xf32>
    %377 = arith.addf %373, %376 : vector<16x128xf32>
    %cst_109 = arith.constant dense<0.000000e+00> : vector<16x128xf32>
    %378 = tpu.matmul %361, %10, %cst_109 {dimension_numbers = #tpu.dot_dimension_numbers<[1], [0], [0], [1], [0, 0, 1, 1], [], []>} : vector<16x32xf32>, vector<32x128xf32>, vector<16x128xf32> -> vector<16x128xf32>
    %379 = arith.addf %377, %378 : vector<16x128xf32>
    %380 = vector.extract_strided_slice %379 {offsets = [0, 0], sizes = [16, 32], strides = [1, 1]} : vector<16x128xf32> to vector<16x32xf32>
    %cst_110 = arith.constant 5.000000e-01 : f32
    %381 = vector.broadcast %cst_110 : f32 to vector<16x32xf32>
    %382 = arith.mulf %381, %380 : vector<16x32xf32>
    %383 = math.tanh %382 : vector<16x32xf32>
    %cst_111 = arith.constant 5.000000e-01 : f32
    %384 = vector.broadcast %cst_111 : f32 to vector<16x32xf32>
    %385 = arith.mulf %384, %383 : vector<16x32xf32>
    %cst_112 = arith.constant 5.000000e-01 : f32
    %386 = vector.broadcast %cst_112 : f32 to vector<16x32xf32>
    %387 = arith.addf %385, %386 : vector<16x32xf32>
    %388 = vector.extract_strided_slice %379 {offsets = [0, 32], sizes = [16, 32], strides = [1, 1]} : vector<16x128xf32> to vector<16x32xf32>
    %cst_113 = arith.constant 5.000000e-01 : f32
    %389 = vector.broadcast %cst_113 : f32 to vector<16x32xf32>
    %390 = arith.mulf %389, %388 : vector<16x32xf32>
    %391 = math.tanh %390 : vector<16x32xf32>
    %cst_114 = arith.constant 5.000000e-01 : f32
    %392 = vector.broadcast %cst_114 : f32 to vector<16x32xf32>
    %393 = arith.mulf %392, %391 : vector<16x32xf32>
    %cst_115 = arith.constant 5.000000e-01 : f32
    %394 = vector.broadcast %cst_115 : f32 to vector<16x32xf32>
    %395 = arith.addf %393, %394 : vector<16x32xf32>
    %396 = vector.extract_strided_slice %379 {offsets = [0, 64], sizes = [16, 32], strides = [1, 1]} : vector<16x128xf32> to vector<16x32xf32>
    %397 = math.tanh %396 : vector<16x32xf32>
    %398 = vector.extract_strided_slice %379 {offsets = [0, 96], sizes = [16, 32], strides = [1, 1]} : vector<16x128xf32> to vector<16x32xf32>
    %cst_116 = arith.constant 5.000000e-01 : f32
    %399 = vector.broadcast %cst_116 : f32 to vector<16x32xf32>
    %400 = arith.mulf %399, %398 : vector<16x32xf32>
    %401 = math.tanh %400 : vector<16x32xf32>
    %cst_117 = arith.constant 5.000000e-01 : f32
    %402 = vector.broadcast %cst_117 : f32 to vector<16x32xf32>
    %403 = arith.mulf %402, %401 : vector<16x32xf32>
    %cst_118 = arith.constant 5.000000e-01 : f32
    %404 = vector.broadcast %cst_118 : f32 to vector<16x32xf32>
    %405 = arith.addf %403, %404 : vector<16x32xf32>
    %406 = arith.mulf %395, %359 : vector<16x32xf32>
    %407 = arith.mulf %387, %397 : vector<16x32xf32>
    %408 = arith.addf %406, %407 : vector<16x32xf32>
    %409 = math.tanh %408 : vector<16x32xf32>
    %410 = arith.mulf %405, %409 : vector<16x32xf32>
    %cst_119 = arith.constant 0.000000e+00 : f32
    %411 = vector.broadcast %cst_119 : f32 to vector<16x8xf32>
    %cst_120 = arith.constant 0.000000e+00 : f32
    %412 = vector.broadcast %cst_120 : f32 to vector<16x8xf32>
    %413 = vector.extract_strided_slice %6 {offsets = [0, 0], sizes = [1, 8], strides = [1, 1]} : vector<8x8xf32> to vector<1x8xf32>
    %414 = vector.broadcast %15 : vector<1x32xf32> to vector<16x32xf32>
    %415 = arith.mulf %67, %414 : vector<16x32xf32>
    %cst_121 = arith.constant dense<0.000000e+00> : vector<16xf32>
    %416 = vector.multi_reduction <add>, %415, %cst_121 [1] : vector<16x32xf32> to vector<16xf32>
    %417 = vector.shape_cast %416 : vector<16xf32> to vector<16x1xf32>
    %418 = vector.broadcast %417 : vector<16x1xf32> to vector<16x8xf32>
    %419 = vector.broadcast %413 : vector<1x8xf32> to vector<16x8xf32>
    %420 = arith.mulf %418, %419 : vector<16x8xf32>
    %421 = arith.addf %411, %420 : vector<16x8xf32>
    %422 = vector.broadcast %16 : vector<1x32xf32> to vector<16x32xf32>
    %423 = arith.mulf %67, %422 : vector<16x32xf32>
    %cst_122 = arith.constant dense<0.000000e+00> : vector<16xf32>
    %424 = vector.multi_reduction <add>, %423, %cst_122 [1] : vector<16x32xf32> to vector<16xf32>
    %425 = vector.shape_cast %424 : vector<16xf32> to vector<16x1xf32>
    %426 = vector.broadcast %425 : vector<16x1xf32> to vector<16x8xf32>
    %427 = vector.broadcast %413 : vector<1x8xf32> to vector<16x8xf32>
    %428 = arith.mulf %426, %427 : vector<16x8xf32>
    %429 = arith.addf %412, %428 : vector<16x8xf32>
    %430 = vector.extract_strided_slice %6 {offsets = [1, 0], sizes = [1, 8], strides = [1, 1]} : vector<8x8xf32> to vector<1x8xf32>
    %431 = vector.broadcast %15 : vector<1x32xf32> to vector<16x32xf32>
    %432 = arith.mulf %116, %431 : vector<16x32xf32>
    %cst_123 = arith.constant dense<0.000000e+00> : vector<16xf32>
    %433 = vector.multi_reduction <add>, %432, %cst_123 [1] : vector<16x32xf32> to vector<16xf32>
    %434 = vector.shape_cast %433 : vector<16xf32> to vector<16x1xf32>
    %435 = vector.broadcast %434 : vector<16x1xf32> to vector<16x8xf32>
    %436 = vector.broadcast %430 : vector<1x8xf32> to vector<16x8xf32>
    %437 = arith.mulf %435, %436 : vector<16x8xf32>
    %438 = arith.addf %421, %437 : vector<16x8xf32>
    %439 = vector.broadcast %16 : vector<1x32xf32> to vector<16x32xf32>
    %440 = arith.mulf %116, %439 : vector<16x32xf32>
    %cst_124 = arith.constant dense<0.000000e+00> : vector<16xf32>
    %441 = vector.multi_reduction <add>, %440, %cst_124 [1] : vector<16x32xf32> to vector<16xf32>
    %442 = vector.shape_cast %441 : vector<16xf32> to vector<16x1xf32>
    %443 = vector.broadcast %442 : vector<16x1xf32> to vector<16x8xf32>
    %444 = vector.broadcast %430 : vector<1x8xf32> to vector<16x8xf32>
    %445 = arith.mulf %443, %444 : vector<16x8xf32>
    %446 = arith.addf %429, %445 : vector<16x8xf32>
    %447 = vector.extract_strided_slice %6 {offsets = [2, 0], sizes = [1, 8], strides = [1, 1]} : vector<8x8xf32> to vector<1x8xf32>
    %448 = vector.broadcast %15 : vector<1x32xf32> to vector<16x32xf32>
    %449 = arith.mulf %165, %448 : vector<16x32xf32>
    %cst_125 = arith.constant dense<0.000000e+00> : vector<16xf32>
    %450 = vector.multi_reduction <add>, %449, %cst_125 [1] : vector<16x32xf32> to vector<16xf32>
    %451 = vector.shape_cast %450 : vector<16xf32> to vector<16x1xf32>
    %452 = vector.broadcast %451 : vector<16x1xf32> to vector<16x8xf32>
    %453 = vector.broadcast %447 : vector<1x8xf32> to vector<16x8xf32>
    %454 = arith.mulf %452, %453 : vector<16x8xf32>
    %455 = arith.addf %438, %454 : vector<16x8xf32>
    %456 = vector.broadcast %16 : vector<1x32xf32> to vector<16x32xf32>
    %457 = arith.mulf %165, %456 : vector<16x32xf32>
    %cst_126 = arith.constant dense<0.000000e+00> : vector<16xf32>
    %458 = vector.multi_reduction <add>, %457, %cst_126 [1] : vector<16x32xf32> to vector<16xf32>
    %459 = vector.shape_cast %458 : vector<16xf32> to vector<16x1xf32>
    %460 = vector.broadcast %459 : vector<16x1xf32> to vector<16x8xf32>
    %461 = vector.broadcast %447 : vector<1x8xf32> to vector<16x8xf32>
    %462 = arith.mulf %460, %461 : vector<16x8xf32>
    %463 = arith.addf %446, %462 : vector<16x8xf32>
    %464 = vector.extract_strided_slice %6 {offsets = [3, 0], sizes = [1, 8], strides = [1, 1]} : vector<8x8xf32> to vector<1x8xf32>
    %465 = vector.broadcast %15 : vector<1x32xf32> to vector<16x32xf32>
    %466 = arith.mulf %214, %465 : vector<16x32xf32>
    %cst_127 = arith.constant dense<0.000000e+00> : vector<16xf32>
    %467 = vector.multi_reduction <add>, %466, %cst_127 [1] : vector<16x32xf32> to vector<16xf32>
    %468 = vector.shape_cast %467 : vector<16xf32> to vector<16x1xf32>
    %469 = vector.broadcast %468 : vector<16x1xf32> to vector<16x8xf32>
    %470 = vector.broadcast %464 : vector<1x8xf32> to vector<16x8xf32>
    %471 = arith.mulf %469, %470 : vector<16x8xf32>
    %472 = arith.addf %455, %471 : vector<16x8xf32>
    %473 = vector.broadcast %16 : vector<1x32xf32> to vector<16x32xf32>
    %474 = arith.mulf %214, %473 : vector<16x32xf32>
    %cst_128 = arith.constant dense<0.000000e+00> : vector<16xf32>
    %475 = vector.multi_reduction <add>, %474, %cst_128 [1] : vector<16x32xf32> to vector<16xf32>
    %476 = vector.shape_cast %475 : vector<16xf32> to vector<16x1xf32>
    %477 = vector.broadcast %476 : vector<16x1xf32> to vector<16x8xf32>
    %478 = vector.broadcast %464 : vector<1x8xf32> to vector<16x8xf32>
    %479 = arith.mulf %477, %478 : vector<16x8xf32>
    %480 = arith.addf %463, %479 : vector<16x8xf32>
    %481 = vector.extract_strided_slice %6 {offsets = [4, 0], sizes = [1, 8], strides = [1, 1]} : vector<8x8xf32> to vector<1x8xf32>
    %482 = vector.broadcast %15 : vector<1x32xf32> to vector<16x32xf32>
    %483 = arith.mulf %263, %482 : vector<16x32xf32>
    %cst_129 = arith.constant dense<0.000000e+00> : vector<16xf32>
    %484 = vector.multi_reduction <add>, %483, %cst_129 [1] : vector<16x32xf32> to vector<16xf32>
    %485 = vector.shape_cast %484 : vector<16xf32> to vector<16x1xf32>
    %486 = vector.broadcast %485 : vector<16x1xf32> to vector<16x8xf32>
    %487 = vector.broadcast %481 : vector<1x8xf32> to vector<16x8xf32>
    %488 = arith.mulf %486, %487 : vector<16x8xf32>
    %489 = arith.addf %472, %488 : vector<16x8xf32>
    %490 = vector.broadcast %16 : vector<1x32xf32> to vector<16x32xf32>
    %491 = arith.mulf %263, %490 : vector<16x32xf32>
    %cst_130 = arith.constant dense<0.000000e+00> : vector<16xf32>
    %492 = vector.multi_reduction <add>, %491, %cst_130 [1] : vector<16x32xf32> to vector<16xf32>
    %493 = vector.shape_cast %492 : vector<16xf32> to vector<16x1xf32>
    %494 = vector.broadcast %493 : vector<16x1xf32> to vector<16x8xf32>
    %495 = vector.broadcast %481 : vector<1x8xf32> to vector<16x8xf32>
    %496 = arith.mulf %494, %495 : vector<16x8xf32>
    %497 = arith.addf %480, %496 : vector<16x8xf32>
    %498 = vector.extract_strided_slice %6 {offsets = [5, 0], sizes = [1, 8], strides = [1, 1]} : vector<8x8xf32> to vector<1x8xf32>
    %499 = vector.broadcast %15 : vector<1x32xf32> to vector<16x32xf32>
    %500 = arith.mulf %312, %499 : vector<16x32xf32>
    %cst_131 = arith.constant dense<0.000000e+00> : vector<16xf32>
    %501 = vector.multi_reduction <add>, %500, %cst_131 [1] : vector<16x32xf32> to vector<16xf32>
    %502 = vector.shape_cast %501 : vector<16xf32> to vector<16x1xf32>
    %503 = vector.broadcast %502 : vector<16x1xf32> to vector<16x8xf32>
    %504 = vector.broadcast %498 : vector<1x8xf32> to vector<16x8xf32>
    %505 = arith.mulf %503, %504 : vector<16x8xf32>
    %506 = arith.addf %489, %505 : vector<16x8xf32>
    %507 = vector.broadcast %16 : vector<1x32xf32> to vector<16x32xf32>
    %508 = arith.mulf %312, %507 : vector<16x32xf32>
    %cst_132 = arith.constant dense<0.000000e+00> : vector<16xf32>
    %509 = vector.multi_reduction <add>, %508, %cst_132 [1] : vector<16x32xf32> to vector<16xf32>
    %510 = vector.shape_cast %509 : vector<16xf32> to vector<16x1xf32>
    %511 = vector.broadcast %510 : vector<16x1xf32> to vector<16x8xf32>
    %512 = vector.broadcast %498 : vector<1x8xf32> to vector<16x8xf32>
    %513 = arith.mulf %511, %512 : vector<16x8xf32>
    %514 = arith.addf %497, %513 : vector<16x8xf32>
    %515 = vector.extract_strided_slice %6 {offsets = [6, 0], sizes = [1, 8], strides = [1, 1]} : vector<8x8xf32> to vector<1x8xf32>
    %516 = vector.broadcast %15 : vector<1x32xf32> to vector<16x32xf32>
    %517 = arith.mulf %361, %516 : vector<16x32xf32>
    %cst_133 = arith.constant dense<0.000000e+00> : vector<16xf32>
    %518 = vector.multi_reduction <add>, %517, %cst_133 [1] : vector<16x32xf32> to vector<16xf32>
    %519 = vector.shape_cast %518 : vector<16xf32> to vector<16x1xf32>
    %520 = vector.broadcast %519 : vector<16x1xf32> to vector<16x8xf32>
    %521 = vector.broadcast %515 : vector<1x8xf32> to vector<16x8xf32>
    %522 = arith.mulf %520, %521 : vector<16x8xf32>
    %523 = arith.addf %506, %522 : vector<16x8xf32>
    %524 = vector.broadcast %16 : vector<1x32xf32> to vector<16x32xf32>
    %525 = arith.mulf %361, %524 : vector<16x32xf32>
    %cst_134 = arith.constant dense<0.000000e+00> : vector<16xf32>
    %526 = vector.multi_reduction <add>, %525, %cst_134 [1] : vector<16x32xf32> to vector<16xf32>
    %527 = vector.shape_cast %526 : vector<16xf32> to vector<16x1xf32>
    %528 = vector.broadcast %527 : vector<16x1xf32> to vector<16x8xf32>
    %529 = vector.broadcast %515 : vector<1x8xf32> to vector<16x8xf32>
    %530 = arith.mulf %528, %529 : vector<16x8xf32>
    %531 = arith.addf %514, %530 : vector<16x8xf32>
    %532 = vector.extract_strided_slice %6 {offsets = [7, 0], sizes = [1, 8], strides = [1, 1]} : vector<8x8xf32> to vector<1x8xf32>
    %533 = vector.broadcast %15 : vector<1x32xf32> to vector<16x32xf32>
    %534 = arith.mulf %410, %533 : vector<16x32xf32>
    %cst_135 = arith.constant dense<0.000000e+00> : vector<16xf32>
    %535 = vector.multi_reduction <add>, %534, %cst_135 [1] : vector<16x32xf32> to vector<16xf32>
    %536 = vector.shape_cast %535 : vector<16xf32> to vector<16x1xf32>
    %537 = vector.broadcast %536 : vector<16x1xf32> to vector<16x8xf32>
    %538 = vector.broadcast %532 : vector<1x8xf32> to vector<16x8xf32>
    %539 = arith.mulf %537, %538 : vector<16x8xf32>
    %540 = arith.addf %523, %539 : vector<16x8xf32>
    %541 = vector.broadcast %16 : vector<1x32xf32> to vector<16x32xf32>
    %542 = arith.mulf %410, %541 : vector<16x32xf32>
    %cst_136 = arith.constant dense<0.000000e+00> : vector<16xf32>
    %543 = vector.multi_reduction <add>, %542, %cst_136 [1] : vector<16x32xf32> to vector<16xf32>
    %544 = vector.shape_cast %543 : vector<16xf32> to vector<16x1xf32>
    %545 = vector.broadcast %544 : vector<16x1xf32> to vector<16x8xf32>
    %546 = vector.broadcast %532 : vector<1x8xf32> to vector<16x8xf32>
    %547 = arith.mulf %545, %546 : vector<16x8xf32>
    %548 = arith.addf %531, %547 : vector<16x8xf32>
    %cst_137 = arith.constant 2.000000e+01 : f32
    %549 = vector.broadcast %cst_137 : f32 to vector<16x8xf32>
    %550 = arith.cmpf ogt, %540, %549 : vector<16x8xf32>
    %cst_138 = arith.constant 2.000000e+01 : f32
    %551 = vector.broadcast %cst_138 : f32 to vector<16x8xf32>
    %552 = arith.minimumf %540, %551 : vector<16x8xf32>
    %553 = math.exp %552 : vector<16x8xf32>
    %554 = math.log1p %553 : vector<16x8xf32>
    %555 = arith.select %550, %540, %554 : vector<16x8xi1>, vector<16x8xf32>
    %cst_139 = arith.constant 2.000000e+01 : f32
    %556 = vector.broadcast %cst_139 : f32 to vector<16x8xf32>
    %557 = arith.cmpf ogt, %548, %556 : vector<16x8xf32>
    %cst_140 = arith.constant 2.000000e+01 : f32
    %558 = vector.broadcast %cst_140 : f32 to vector<16x8xf32>
    %559 = arith.minimumf %548, %558 : vector<16x8xf32>
    %560 = math.exp %559 : vector<16x8xf32>
    %561 = math.log1p %560 : vector<16x8xf32>
    %562 = arith.select %557, %548, %561 : vector<16x8xi1>, vector<16x8xf32>
    %cst_141 = arith.constant dense<0.000000e+00> : vector<16x8xf32>
    %563 = tpu.matmul %3, %555, %cst_141 {dimension_numbers = #tpu.dot_dimension_numbers<[1], [0], [0], [1], [0, 0, 1, 1], [], []>} : vector<16x16xf32>, vector<16x8xf32>, vector<16x8xf32> -> vector<16x8xf32>
    %564 = vector.broadcast %5 : vector<16x1xf32> to vector<16x8xf32>
    %565 = arith.mulf %564, %555 : vector<16x8xf32>
    %566 = arith.addf %563, %565 : vector<16x8xf32>
    %cst_142 = arith.constant dense<0.000000e+00> : vector<16x8xf32>
    %567 = tpu.matmul %3, %562, %cst_142 {dimension_numbers = #tpu.dot_dimension_numbers<[1], [0], [0], [1], [0, 0, 1, 1], [], []>} : vector<16x16xf32>, vector<16x8xf32>, vector<16x8xf32> -> vector<16x8xf32>
    %cst_143 = arith.constant dense<0.000000e+00> : vector<16x8xf32>
    %568 = tpu.matmul %2, %567, %cst_143 {dimension_numbers = #tpu.dot_dimension_numbers<[1], [0], [0], [1], [0, 0, 1, 1], [], []>} : vector<16x16xf32>, vector<16x8xf32>, vector<16x8xf32> -> vector<16x8xf32>
    %cst_144 = arith.constant 3.000000e-09 : f32
    %569 = vector.broadcast %cst_144 : f32 to vector<16x8xf32>
    %570 = arith.addf %568, %569 : vector<16x8xf32>
    %cst_145 = arith.constant 9.99999971E-10 : f32
    %571 = vector.broadcast %cst_145 : f32 to vector<16x8xf32>
    %572 = arith.addf %562, %571 : vector<16x8xf32>
    %573 = arith.divf %572, %570 : vector<16x8xf32>
    %cst_146 = arith.constant dense<0.000000e+00> : vector<16x8xf32>
    %574 = tpu.matmul %2, %555, %cst_146 {dimension_numbers = #tpu.dot_dimension_numbers<[1], [0], [0], [1], [0, 0, 1, 1], [], []>} : vector<16x16xf32>, vector<16x8xf32>, vector<16x8xf32> -> vector<16x8xf32>
    %575 = vector.broadcast %4 : vector<16x1xf32> to vector<16x8xf32>
    %576 = arith.mulf %575, %555 : vector<16x8xf32>
    %577 = arith.mulf %574, %573 : vector<16x8xf32>
    %578 = arith.addf %576, %577 : vector<16x8xf32>
    %c0_147 = arith.constant 0 : index
    %c0_148 = arith.constant 0 : index
    %c0_149 = arith.constant 0 : index
    %579 = vector.load %arg14[%c0_147, %c0_148, %c0_149] : memref<2x16x8xf32, #tpu.memory_space<vmem>>, vector<1x16x8xf32>
    %580 = vector.shape_cast %579 : vector<1x16x8xf32> to vector<16x8xf32>
    %581 = vector.shape_cast %573 : vector<16x8xf32> to vector<1x16x8xf32>
    tpu.vector_store %arg14[%c0_147, %c0_148, %c0_149], %581 {strides = array<i32>} : memref<2x16x8xf32, #tpu.memory_space<vmem>>, vector<1x16x8xf32>,
    %c0_150 = arith.constant 0 : index
    %c0_151 = arith.constant 0 : index
    %582 = memref.load %arg12[%c0_150, %c0_151] : memref<2x3xf32, #tpu.memory_space<smem>>
    %583 = vector.broadcast %582 : f32 to vector<16x8xf32>
    %584 = arith.mulf %583, %578 : vector<16x8xf32>
    %585 = arith.addf %0, %584 : vector<16x8xf32>
    %c0_152 = arith.constant 0 : index
    %c1 = arith.constant 1 : index
    %586 = memref.load %arg12[%c0_152, %c1] : memref<2x3xf32, #tpu.memory_space<smem>>
    %587 = vector.broadcast %586 : f32 to vector<16x8xf32>
    %588 = arith.mulf %587, %555 : vector<16x8xf32>
    %589 = arith.addf %585, %588 : vector<16x8xf32>
    %c0_153 = arith.constant 0 : index
    %c2 = arith.constant 2 : index
    %590 = memref.load %arg12[%c0_153, %c2] : memref<2x3xf32, #tpu.memory_space<smem>>
    %591 = vector.broadcast %590 : f32 to vector<16x8xf32>
    %592 = arith.mulf %591, %566 : vector<16x8xf32>
    %593 = arith.addf %589, %592 : vector<16x8xf32>
    %c1_154 = arith.constant 1 : index
    %c0_155 = arith.constant 0 : index
    %c0_156 = arith.constant 0 : index
    %594 = vector.load %arg2[%c1_154, %c0_155, %c0_156] : memref<2x2x128xf32, #tpu.memory_space<vmem>>, vector<1x2x128xf32>
    %595 = vector.shape_cast %594 : vector<1x2x128xf32> to vector<2x128xf32>
    %c1_157 = arith.constant 1 : index
    %c0_158 = arith.constant 0 : index
    %c0_159 = arith.constant 0 : index
    %596 = vector.load %arg3[%c1_157, %c0_158, %c0_159] : memref<2x32x128xf32, #tpu.memory_space<vmem>>, vector<1x32x128xf32>
    %597 = vector.shape_cast %596 : vector<1x32x128xf32> to vector<32x128xf32>
    %c1_160 = arith.constant 1 : index
    %c0_161 = arith.constant 0 : index
    %c0_162 = arith.constant 0 : index
    %598 = vector.load %arg4[%c1_160, %c0_161, %c0_162] : memref<2x2x32xf32, #tpu.memory_space<vmem>>, vector<1x2x32xf32>
    %599 = vector.shape_cast %598 : vector<1x2x32xf32> to vector<2x32xf32>
    %600 = vector.extract_strided_slice %595 {offsets = [0, 0], sizes = [1, 128], strides = [1, 1]} : vector<2x128xf32> to vector<1x128xf32>
    %601 = vector.extract_strided_slice %595 {offsets = [1, 0], sizes = [1, 128], strides = [1, 1]} : vector<2x128xf32> to vector<1x128xf32>
    %602 = vector.extract_strided_slice %599 {offsets = [0, 0], sizes = [1, 32], strides = [1, 1]} : vector<2x32xf32> to vector<1x32xf32>
    %603 = vector.extract_strided_slice %599 {offsets = [1, 0], sizes = [1, 32], strides = [1, 1]} : vector<2x32xf32> to vector<1x32xf32>
    %cst_163 = arith.constant 0.000000e+00 : f32
    %604 = vector.broadcast %cst_163 : f32 to vector<16x32xf32>
    %cst_164 = arith.constant 0.000000e+00 : f32
    %605 = vector.broadcast %cst_164 : f32 to vector<16x32xf32>
    %606 = vector.extract_strided_slice %6 {offsets = [0, 0], sizes = [1, 8], strides = [1, 1]} : vector<8x8xf32> to vector<1x8xf32>
    %607 = vector.broadcast %606 : vector<1x8xf32> to vector<16x8xf32>
    %608 = arith.mulf %593, %607 : vector<16x8xf32>
    %cst_165 = arith.constant dense<0.000000e+00> : vector<16xf32>
    %609 = vector.multi_reduction <add>, %608, %cst_165 [1] : vector<16x8xf32> to vector<16xf32>
    %610 = vector.shape_cast %609 : vector<16xf32> to vector<16x1xf32>
    %611 = vector.broadcast %606 : vector<1x8xf32> to vector<16x8xf32>
    %612 = arith.mulf %1, %611 : vector<16x8xf32>
    %cst_166 = arith.constant dense<0.000000e+00> : vector<16xf32>
    %613 = vector.multi_reduction <add>, %612, %cst_166 [1] : vector<16x8xf32> to vector<16xf32>
    %614 = vector.shape_cast %613 : vector<16xf32> to vector<16x1xf32>
    %615 = vector.broadcast %610 : vector<16x1xf32> to vector<16x128xf32>
    %616 = vector.broadcast %600 : vector<1x128xf32> to vector<16x128xf32>
    %617 = arith.mulf %615, %616 : vector<16x128xf32>
    %618 = vector.broadcast %614 : vector<16x1xf32> to vector<16x128xf32>
    %619 = vector.broadcast %601 : vector<1x128xf32> to vector<16x128xf32>
    %620 = arith.mulf %618, %619 : vector<16x128xf32>
    %621 = arith.addf %617, %620 : vector<16x128xf32>
    %cst_167 = arith.constant dense<0.000000e+00> : vector<16x128xf32>
    %622 = tpu.matmul %604, %597, %cst_167 {dimension_numbers = #tpu.dot_dimension_numbers<[1], [0], [0], [1], [0, 0, 1, 1], [], []>} : vector<16x32xf32>, vector<32x128xf32>, vector<16x128xf32> -> vector<16x128xf32>
    %623 = arith.addf %621, %622 : vector<16x128xf32>
    %624 = vector.extract_strided_slice %623 {offsets = [0, 0], sizes = [16, 32], strides = [1, 1]} : vector<16x128xf32> to vector<16x32xf32>
    %cst_168 = arith.constant 5.000000e-01 : f32
    %625 = vector.broadcast %cst_168 : f32 to vector<16x32xf32>
    %626 = arith.mulf %625, %624 : vector<16x32xf32>
    %627 = math.tanh %626 : vector<16x32xf32>
    %cst_169 = arith.constant 5.000000e-01 : f32
    %628 = vector.broadcast %cst_169 : f32 to vector<16x32xf32>
    %629 = arith.mulf %628, %627 : vector<16x32xf32>
    %cst_170 = arith.constant 5.000000e-01 : f32
    %630 = vector.broadcast %cst_170 : f32 to vector<16x32xf32>
    %631 = arith.addf %629, %630 : vector<16x32xf32>
    %632 = vector.extract_strided_slice %623 {offsets = [0, 32], sizes = [16, 32], strides = [1, 1]} : vector<16x128xf32> to vector<16x32xf32>
    %cst_171 = arith.constant 5.000000e-01 : f32
    %633 = vector.broadcast %cst_171 : f32 to vector<16x32xf32>
    %634 = arith.mulf %633, %632 : vector<16x32xf32>
    %635 = math.tanh %634 : vector<16x32xf32>
    %cst_172 = arith.constant 5.000000e-01 : f32
    %636 = vector.broadcast %cst_172 : f32 to vector<16x32xf32>
    %637 = arith.mulf %636, %635 : vector<16x32xf32>
    %cst_173 = arith.constant 5.000000e-01 : f32
    %638 = vector.broadcast %cst_173 : f32 to vector<16x32xf32>
    %639 = arith.addf %637, %638 : vector<16x32xf32>
    %640 = vector.extract_strided_slice %623 {offsets = [0, 64], sizes = [16, 32], strides = [1, 1]} : vector<16x128xf32> to vector<16x32xf32>
    %641 = math.tanh %640 : vector<16x32xf32>
    %642 = vector.extract_strided_slice %623 {offsets = [0, 96], sizes = [16, 32], strides = [1, 1]} : vector<16x128xf32> to vector<16x32xf32>
    %cst_174 = arith.constant 5.000000e-01 : f32
    %643 = vector.broadcast %cst_174 : f32 to vector<16x32xf32>
    %644 = arith.mulf %643, %642 : vector<16x32xf32>
    %645 = math.tanh %644 : vector<16x32xf32>
    %cst_175 = arith.constant 5.000000e-01 : f32
    %646 = vector.broadcast %cst_175 : f32 to vector<16x32xf32>
    %647 = arith.mulf %646, %645 : vector<16x32xf32>
    %cst_176 = arith.constant 5.000000e-01 : f32
    %648 = vector.broadcast %cst_176 : f32 to vector<16x32xf32>
    %649 = arith.addf %647, %648 : vector<16x32xf32>
    %650 = arith.mulf %639, %605 : vector<16x32xf32>
    %651 = arith.mulf %631, %641 : vector<16x32xf32>
    %652 = arith.addf %650, %651 : vector<16x32xf32>
    %653 = math.tanh %652 : vector<16x32xf32>
    %654 = arith.mulf %649, %653 : vector<16x32xf32>
    %655 = vector.extract_strided_slice %6 {offsets = [1, 0], sizes = [1, 8], strides = [1, 1]} : vector<8x8xf32> to vector<1x8xf32>
    %656 = vector.broadcast %655 : vector<1x8xf32> to vector<16x8xf32>
    %657 = arith.mulf %593, %656 : vector<16x8xf32>
    %cst_177 = arith.constant dense<0.000000e+00> : vector<16xf32>
    %658 = vector.multi_reduction <add>, %657, %cst_177 [1] : vector<16x8xf32> to vector<16xf32>
    %659 = vector.shape_cast %658 : vector<16xf32> to vector<16x1xf32>
    %660 = vector.broadcast %655 : vector<1x8xf32> to vector<16x8xf32>
    %661 = arith.mulf %1, %660 : vector<16x8xf32>
    %cst_178 = arith.constant dense<0.000000e+00> : vector<16xf32>
    %662 = vector.multi_reduction <add>, %661, %cst_178 [1] : vector<16x8xf32> to vector<16xf32>
    %663 = vector.shape_cast %662 : vector<16xf32> to vector<16x1xf32>
    %664 = vector.broadcast %659 : vector<16x1xf32> to vector<16x128xf32>
    %665 = vector.broadcast %600 : vector<1x128xf32> to vector<16x128xf32>
    %666 = arith.mulf %664, %665 : vector<16x128xf32>
    %667 = vector.broadcast %663 : vector<16x1xf32> to vector<16x128xf32>
    %668 = vector.broadcast %601 : vector<1x128xf32> to vector<16x128xf32>
    %669 = arith.mulf %667, %668 : vector<16x128xf32>
    %670 = arith.addf %666, %669 : vector<16x128xf32>
    %cst_179 = arith.constant dense<0.000000e+00> : vector<16x128xf32>
    %671 = tpu.matmul %654, %597, %cst_179 {dimension_numbers = #tpu.dot_dimension_numbers<[1], [0], [0], [1], [0, 0, 1, 1], [], []>} : vector<16x32xf32>, vector<32x128xf32>, vector<16x128xf32> -> vector<16x128xf32>
    %672 = arith.addf %670, %671 : vector<16x128xf32>
    %673 = vector.extract_strided_slice %672 {offsets = [0, 0], sizes = [16, 32], strides = [1, 1]} : vector<16x128xf32> to vector<16x32xf32>
    %cst_180 = arith.constant 5.000000e-01 : f32
    %674 = vector.broadcast %cst_180 : f32 to vector<16x32xf32>
    %675 = arith.mulf %674, %673 : vector<16x32xf32>
    %676 = math.tanh %675 : vector<16x32xf32>
    %cst_181 = arith.constant 5.000000e-01 : f32
    %677 = vector.broadcast %cst_181 : f32 to vector<16x32xf32>
    %678 = arith.mulf %677, %676 : vector<16x32xf32>
    %cst_182 = arith.constant 5.000000e-01 : f32
    %679 = vector.broadcast %cst_182 : f32 to vector<16x32xf32>
    %680 = arith.addf %678, %679 : vector<16x32xf32>
    %681 = vector.extract_strided_slice %672 {offsets = [0, 32], sizes = [16, 32], strides = [1, 1]} : vector<16x128xf32> to vector<16x32xf32>
    %cst_183 = arith.constant 5.000000e-01 : f32
    %682 = vector.broadcast %cst_183 : f32 to vector<16x32xf32>
    %683 = arith.mulf %682, %681 : vector<16x32xf32>
    %684 = math.tanh %683 : vector<16x32xf32>
    %cst_184 = arith.constant 5.000000e-01 : f32
    %685 = vector.broadcast %cst_184 : f32 to vector<16x32xf32>
    %686 = arith.mulf %685, %684 : vector<16x32xf32>
    %cst_185 = arith.constant 5.000000e-01 : f32
    %687 = vector.broadcast %cst_185 : f32 to vector<16x32xf32>
    %688 = arith.addf %686, %687 : vector<16x32xf32>
    %689 = vector.extract_strided_slice %672 {offsets = [0, 64], sizes = [16, 32], strides = [1, 1]} : vector<16x128xf32> to vector<16x32xf32>
    %690 = math.tanh %689 : vector<16x32xf32>
    %691 = vector.extract_strided_slice %672 {offsets = [0, 96], sizes = [16, 32], strides = [1, 1]} : vector<16x128xf32> to vector<16x32xf32>
    %cst_186 = arith.constant 5.000000e-01 : f32
    %692 = vector.broadcast %cst_186 : f32 to vector<16x32xf32>
    %693 = arith.mulf %692, %691 : vector<16x32xf32>
    %694 = math.tanh %693 : vector<16x32xf32>
    %cst_187 = arith.constant 5.000000e-01 : f32
    %695 = vector.broadcast %cst_187 : f32 to vector<16x32xf32>
    %696 = arith.mulf %695, %694 : vector<16x32xf32>
    %cst_188 = arith.constant 5.000000e-01 : f32
    %697 = vector.broadcast %cst_188 : f32 to vector<16x32xf32>
    %698 = arith.addf %696, %697 : vector<16x32xf32>
    %699 = arith.mulf %688, %652 : vector<16x32xf32>
    %700 = arith.mulf %680, %690 : vector<16x32xf32>
    %701 = arith.addf %699, %700 : vector<16x32xf32>
    %702 = math.tanh %701 : vector<16x32xf32>
    %703 = arith.mulf %698, %702 : vector<16x32xf32>
    %704 = vector.extract_strided_slice %6 {offsets = [2, 0], sizes = [1, 8], strides = [1, 1]} : vector<8x8xf32> to vector<1x8xf32>
    %705 = vector.broadcast %704 : vector<1x8xf32> to vector<16x8xf32>
    %706 = arith.mulf %593, %705 : vector<16x8xf32>
    %cst_189 = arith.constant dense<0.000000e+00> : vector<16xf32>
    %707 = vector.multi_reduction <add>, %706, %cst_189 [1] : vector<16x8xf32> to vector<16xf32>
    %708 = vector.shape_cast %707 : vector<16xf32> to vector<16x1xf32>
    %709 = vector.broadcast %704 : vector<1x8xf32> to vector<16x8xf32>
    %710 = arith.mulf %1, %709 : vector<16x8xf32>
    %cst_190 = arith.constant dense<0.000000e+00> : vector<16xf32>
    %711 = vector.multi_reduction <add>, %710, %cst_190 [1] : vector<16x8xf32> to vector<16xf32>
    %712 = vector.shape_cast %711 : vector<16xf32> to vector<16x1xf32>
    %713 = vector.broadcast %708 : vector<16x1xf32> to vector<16x128xf32>
    %714 = vector.broadcast %600 : vector<1x128xf32> to vector<16x128xf32>
    %715 = arith.mulf %713, %714 : vector<16x128xf32>
    %716 = vector.broadcast %712 : vector<16x1xf32> to vector<16x128xf32>
    %717 = vector.broadcast %601 : vector<1x128xf32> to vector<16x128xf32>
    %718 = arith.mulf %716, %717 : vector<16x128xf32>
    %719 = arith.addf %715, %718 : vector<16x128xf32>
    %cst_191 = arith.constant dense<0.000000e+00> : vector<16x128xf32>
    %720 = tpu.matmul %703, %597, %cst_191 {dimension_numbers = #tpu.dot_dimension_numbers<[1], [0], [0], [1], [0, 0, 1, 1], [], []>} : vector<16x32xf32>, vector<32x128xf32>, vector<16x128xf32> -> vector<16x128xf32>
    %721 = arith.addf %719, %720 : vector<16x128xf32>
    %722 = vector.extract_strided_slice %721 {offsets = [0, 0], sizes = [16, 32], strides = [1, 1]} : vector<16x128xf32> to vector<16x32xf32>
    %cst_192 = arith.constant 5.000000e-01 : f32
    %723 = vector.broadcast %cst_192 : f32 to vector<16x32xf32>
    %724 = arith.mulf %723, %722 : vector<16x32xf32>
    %725 = math.tanh %724 : vector<16x32xf32>
    %cst_193 = arith.constant 5.000000e-01 : f32
    %726 = vector.broadcast %cst_193 : f32 to vector<16x32xf32>
    %727 = arith.mulf %726, %725 : vector<16x32xf32>
    %cst_194 = arith.constant 5.000000e-01 : f32
    %728 = vector.broadcast %cst_194 : f32 to vector<16x32xf32>
    %729 = arith.addf %727, %728 : vector<16x32xf32>
    %730 = vector.extract_strided_slice %721 {offsets = [0, 32], sizes = [16, 32], strides = [1, 1]} : vector<16x128xf32> to vector<16x32xf32>
    %cst_195 = arith.constant 5.000000e-01 : f32
    %731 = vector.broadcast %cst_195 : f32 to vector<16x32xf32>
    %732 = arith.mulf %731, %730 : vector<16x32xf32>
    %733 = math.tanh %732 : vector<16x32xf32>
    %cst_196 = arith.constant 5.000000e-01 : f32
    %734 = vector.broadcast %cst_196 : f32 to vector<16x32xf32>
    %735 = arith.mulf %734, %733 : vector<16x32xf32>
    %cst_197 = arith.constant 5.000000e-01 : f32
    %736 = vector.broadcast %cst_197 : f32 to vector<16x32xf32>
    %737 = arith.addf %735, %736 : vector<16x32xf32>
    %738 = vector.extract_strided_slice %721 {offsets = [0, 64], sizes = [16, 32], strides = [1, 1]} : vector<16x128xf32> to vector<16x32xf32>
    %739 = math.tanh %738 : vector<16x32xf32>
    %740 = vector.extract_strided_slice %721 {offsets = [0, 96], sizes = [16, 32], strides = [1, 1]} : vector<16x128xf32> to vector<16x32xf32>
    %cst_198 = arith.constant 5.000000e-01 : f32
    %741 = vector.broadcast %cst_198 : f32 to vector<16x32xf32>
    %742 = arith.mulf %741, %740 : vector<16x32xf32>
    %743 = math.tanh %742 : vector<16x32xf32>
    %cst_199 = arith.constant 5.000000e-01 : f32
    %744 = vector.broadcast %cst_199 : f32 to vector<16x32xf32>
    %745 = arith.mulf %744, %743 : vector<16x32xf32>
    %cst_200 = arith.constant 5.000000e-01 : f32
    %746 = vector.broadcast %cst_200 : f32 to vector<16x32xf32>
    %747 = arith.addf %745, %746 : vector<16x32xf32>
    %748 = arith.mulf %737, %701 : vector<16x32xf32>
    %749 = arith.mulf %729, %739 : vector<16x32xf32>
    %750 = arith.addf %748, %749 : vector<16x32xf32>
    %751 = math.tanh %750 : vector<16x32xf32>
    %752 = arith.mulf %747, %751 : vector<16x32xf32>
    %753 = vector.extract_strided_slice %6 {offsets = [3, 0], sizes = [1, 8], strides = [1, 1]} : vector<8x8xf32> to vector<1x8xf32>
    %754 = vector.broadcast %753 : vector<1x8xf32> to vector<16x8xf32>
    %755 = arith.mulf %593, %754 : vector<16x8xf32>
    %cst_201 = arith.constant dense<0.000000e+00> : vector<16xf32>
    %756 = vector.multi_reduction <add>, %755, %cst_201 [1] : vector<16x8xf32> to vector<16xf32>
    %757 = vector.shape_cast %756 : vector<16xf32> to vector<16x1xf32>
    %758 = vector.broadcast %753 : vector<1x8xf32> to vector<16x8xf32>
    %759 = arith.mulf %1, %758 : vector<16x8xf32>
    %cst_202 = arith.constant dense<0.000000e+00> : vector<16xf32>
    %760 = vector.multi_reduction <add>, %759, %cst_202 [1] : vector<16x8xf32> to vector<16xf32>
    %761 = vector.shape_cast %760 : vector<16xf32> to vector<16x1xf32>
    %762 = vector.broadcast %757 : vector<16x1xf32> to vector<16x128xf32>
    %763 = vector.broadcast %600 : vector<1x128xf32> to vector<16x128xf32>
    %764 = arith.mulf %762, %763 : vector<16x128xf32>
    %765 = vector.broadcast %761 : vector<16x1xf32> to vector<16x128xf32>
    %766 = vector.broadcast %601 : vector<1x128xf32> to vector<16x128xf32>
    %767 = arith.mulf %765, %766 : vector<16x128xf32>
    %768 = arith.addf %764, %767 : vector<16x128xf32>
    %cst_203 = arith.constant dense<0.000000e+00> : vector<16x128xf32>
    %769 = tpu.matmul %752, %597, %cst_203 {dimension_numbers = #tpu.dot_dimension_numbers<[1], [0], [0], [1], [0, 0, 1, 1], [], []>} : vector<16x32xf32>, vector<32x128xf32>, vector<16x128xf32> -> vector<16x128xf32>
    %770 = arith.addf %768, %769 : vector<16x128xf32>
    %771 = vector.extract_strided_slice %770 {offsets = [0, 0], sizes = [16, 32], strides = [1, 1]} : vector<16x128xf32> to vector<16x32xf32>
    %cst_204 = arith.constant 5.000000e-01 : f32
    %772 = vector.broadcast %cst_204 : f32 to vector<16x32xf32>
    %773 = arith.mulf %772, %771 : vector<16x32xf32>
    %774 = math.tanh %773 : vector<16x32xf32>
    %cst_205 = arith.constant 5.000000e-01 : f32
    %775 = vector.broadcast %cst_205 : f32 to vector<16x32xf32>
    %776 = arith.mulf %775, %774 : vector<16x32xf32>
    %cst_206 = arith.constant 5.000000e-01 : f32
    %777 = vector.broadcast %cst_206 : f32 to vector<16x32xf32>
    %778 = arith.addf %776, %777 : vector<16x32xf32>
    %779 = vector.extract_strided_slice %770 {offsets = [0, 32], sizes = [16, 32], strides = [1, 1]} : vector<16x128xf32> to vector<16x32xf32>
    %cst_207 = arith.constant 5.000000e-01 : f32
    %780 = vector.broadcast %cst_207 : f32 to vector<16x32xf32>
    %781 = arith.mulf %780, %779 : vector<16x32xf32>
    %782 = math.tanh %781 : vector<16x32xf32>
    %cst_208 = arith.constant 5.000000e-01 : f32
    %783 = vector.broadcast %cst_208 : f32 to vector<16x32xf32>
    %784 = arith.mulf %783, %782 : vector<16x32xf32>
    %cst_209 = arith.constant 5.000000e-01 : f32
    %785 = vector.broadcast %cst_209 : f32 to vector<16x32xf32>
    %786 = arith.addf %784, %785 : vector<16x32xf32>
    %787 = vector.extract_strided_slice %770 {offsets = [0, 64], sizes = [16, 32], strides = [1, 1]} : vector<16x128xf32> to vector<16x32xf32>
    %788 = math.tanh %787 : vector<16x32xf32>
    %789 = vector.extract_strided_slice %770 {offsets = [0, 96], sizes = [16, 32], strides = [1, 1]} : vector<16x128xf32> to vector<16x32xf32>
    %cst_210 = arith.constant 5.000000e-01 : f32
    %790 = vector.broadcast %cst_210 : f32 to vector<16x32xf32>
    %791 = arith.mulf %790, %789 : vector<16x32xf32>
    %792 = math.tanh %791 : vector<16x32xf32>
    %cst_211 = arith.constant 5.000000e-01 : f32
    %793 = vector.broadcast %cst_211 : f32 to vector<16x32xf32>
    %794 = arith.mulf %793, %792 : vector<16x32xf32>
    %cst_212 = arith.constant 5.000000e-01 : f32
    %795 = vector.broadcast %cst_212 : f32 to vector<16x32xf32>
    %796 = arith.addf %794, %795 : vector<16x32xf32>
    %797 = arith.mulf %786, %750 : vector<16x32xf32>
    %798 = arith.mulf %778, %788 : vector<16x32xf32>
    %799 = arith.addf %797, %798 : vector<16x32xf32>
    %800 = math.tanh %799 : vector<16x32xf32>
    %801 = arith.mulf %796, %800 : vector<16x32xf32>
    %802 = vector.extract_strided_slice %6 {offsets = [4, 0], sizes = [1, 8], strides = [1, 1]} : vector<8x8xf32> to vector<1x8xf32>
    %803 = vector.broadcast %802 : vector<1x8xf32> to vector<16x8xf32>
    %804 = arith.mulf %593, %803 : vector<16x8xf32>
    %cst_213 = arith.constant dense<0.000000e+00> : vector<16xf32>
    %805 = vector.multi_reduction <add>, %804, %cst_213 [1] : vector<16x8xf32> to vector<16xf32>
    %806 = vector.shape_cast %805 : vector<16xf32> to vector<16x1xf32>
    %807 = vector.broadcast %802 : vector<1x8xf32> to vector<16x8xf32>
    %808 = arith.mulf %1, %807 : vector<16x8xf32>
    %cst_214 = arith.constant dense<0.000000e+00> : vector<16xf32>
    %809 = vector.multi_reduction <add>, %808, %cst_214 [1] : vector<16x8xf32> to vector<16xf32>
    %810 = vector.shape_cast %809 : vector<16xf32> to vector<16x1xf32>
    %811 = vector.broadcast %806 : vector<16x1xf32> to vector<16x128xf32>
    %812 = vector.broadcast %600 : vector<1x128xf32> to vector<16x128xf32>
    %813 = arith.mulf %811, %812 : vector<16x128xf32>
    %814 = vector.broadcast %810 : vector<16x1xf32> to vector<16x128xf32>
    %815 = vector.broadcast %601 : vector<1x128xf32> to vector<16x128xf32>
    %816 = arith.mulf %814, %815 : vector<16x128xf32>
    %817 = arith.addf %813, %816 : vector<16x128xf32>
    %cst_215 = arith.constant dense<0.000000e+00> : vector<16x128xf32>
    %818 = tpu.matmul %801, %597, %cst_215 {dimension_numbers = #tpu.dot_dimension_numbers<[1], [0], [0], [1], [0, 0, 1, 1], [], []>} : vector<16x32xf32>, vector<32x128xf32>, vector<16x128xf32> -> vector<16x128xf32>
    %819 = arith.addf %817, %818 : vector<16x128xf32>
    %820 = vector.extract_strided_slice %819 {offsets = [0, 0], sizes = [16, 32], strides = [1, 1]} : vector<16x128xf32> to vector<16x32xf32>
    %cst_216 = arith.constant 5.000000e-01 : f32
    %821 = vector.broadcast %cst_216 : f32 to vector<16x32xf32>
    %822 = arith.mulf %821, %820 : vector<16x32xf32>
    %823 = math.tanh %822 : vector<16x32xf32>
    %cst_217 = arith.constant 5.000000e-01 : f32
    %824 = vector.broadcast %cst_217 : f32 to vector<16x32xf32>
    %825 = arith.mulf %824, %823 : vector<16x32xf32>
    %cst_218 = arith.constant 5.000000e-01 : f32
    %826 = vector.broadcast %cst_218 : f32 to vector<16x32xf32>
    %827 = arith.addf %825, %826 : vector<16x32xf32>
    %828 = vector.extract_strided_slice %819 {offsets = [0, 32], sizes = [16, 32], strides = [1, 1]} : vector<16x128xf32> to vector<16x32xf32>
    %cst_219 = arith.constant 5.000000e-01 : f32
    %829 = vector.broadcast %cst_219 : f32 to vector<16x32xf32>
    %830 = arith.mulf %829, %828 : vector<16x32xf32>
    %831 = math.tanh %830 : vector<16x32xf32>
    %cst_220 = arith.constant 5.000000e-01 : f32
    %832 = vector.broadcast %cst_220 : f32 to vector<16x32xf32>
    %833 = arith.mulf %832, %831 : vector<16x32xf32>
    %cst_221 = arith.constant 5.000000e-01 : f32
    %834 = vector.broadcast %cst_221 : f32 to vector<16x32xf32>
    %835 = arith.addf %833, %834 : vector<16x32xf32>
    %836 = vector.extract_strided_slice %819 {offsets = [0, 64], sizes = [16, 32], strides = [1, 1]} : vector<16x128xf32> to vector<16x32xf32>
    %837 = math.tanh %836 : vector<16x32xf32>
    %838 = vector.extract_strided_slice %819 {offsets = [0, 96], sizes = [16, 32], strides = [1, 1]} : vector<16x128xf32> to vector<16x32xf32>
    %cst_222 = arith.constant 5.000000e-01 : f32
    %839 = vector.broadcast %cst_222 : f32 to vector<16x32xf32>
    %840 = arith.mulf %839, %838 : vector<16x32xf32>
    %841 = math.tanh %840 : vector<16x32xf32>
    %cst_223 = arith.constant 5.000000e-01 : f32
    %842 = vector.broadcast %cst_223 : f32 to vector<16x32xf32>
    %843 = arith.mulf %842, %841 : vector<16x32xf32>
    %cst_224 = arith.constant 5.000000e-01 : f32
    %844 = vector.broadcast %cst_224 : f32 to vector<16x32xf32>
    %845 = arith.addf %843, %844 : vector<16x32xf32>
    %846 = arith.mulf %835, %799 : vector<16x32xf32>
    %847 = arith.mulf %827, %837 : vector<16x32xf32>
    %848 = arith.addf %846, %847 : vector<16x32xf32>
    %849 = math.tanh %848 : vector<16x32xf32>
    %850 = arith.mulf %845, %849 : vector<16x32xf32>
    %851 = vector.extract_strided_slice %6 {offsets = [5, 0], sizes = [1, 8], strides = [1, 1]} : vector<8x8xf32> to vector<1x8xf32>
    %852 = vector.broadcast %851 : vector<1x8xf32> to vector<16x8xf32>
    %853 = arith.mulf %593, %852 : vector<16x8xf32>
    %cst_225 = arith.constant dense<0.000000e+00> : vector<16xf32>
    %854 = vector.multi_reduction <add>, %853, %cst_225 [1] : vector<16x8xf32> to vector<16xf32>
    %855 = vector.shape_cast %854 : vector<16xf32> to vector<16x1xf32>
    %856 = vector.broadcast %851 : vector<1x8xf32> to vector<16x8xf32>
    %857 = arith.mulf %1, %856 : vector<16x8xf32>
    %cst_226 = arith.constant dense<0.000000e+00> : vector<16xf32>
    %858 = vector.multi_reduction <add>, %857, %cst_226 [1] : vector<16x8xf32> to vector<16xf32>
    %859 = vector.shape_cast %858 : vector<16xf32> to vector<16x1xf32>
    %860 = vector.broadcast %855 : vector<16x1xf32> to vector<16x128xf32>
    %861 = vector.broadcast %600 : vector<1x128xf32> to vector<16x128xf32>
    %862 = arith.mulf %860, %861 : vector<16x128xf32>
    %863 = vector.broadcast %859 : vector<16x1xf32> to vector<16x128xf32>
    %864 = vector.broadcast %601 : vector<1x128xf32> to vector<16x128xf32>
    %865 = arith.mulf %863, %864 : vector<16x128xf32>
    %866 = arith.addf %862, %865 : vector<16x128xf32>
    %cst_227 = arith.constant dense<0.000000e+00> : vector<16x128xf32>
    %867 = tpu.matmul %850, %597, %cst_227 {dimension_numbers = #tpu.dot_dimension_numbers<[1], [0], [0], [1], [0, 0, 1, 1], [], []>} : vector<16x32xf32>, vector<32x128xf32>, vector<16x128xf32> -> vector<16x128xf32>
    %868 = arith.addf %866, %867 : vector<16x128xf32>
    %869 = vector.extract_strided_slice %868 {offsets = [0, 0], sizes = [16, 32], strides = [1, 1]} : vector<16x128xf32> to vector<16x32xf32>
    %cst_228 = arith.constant 5.000000e-01 : f32
    %870 = vector.broadcast %cst_228 : f32 to vector<16x32xf32>
    %871 = arith.mulf %870, %869 : vector<16x32xf32>
    %872 = math.tanh %871 : vector<16x32xf32>
    %cst_229 = arith.constant 5.000000e-01 : f32
    %873 = vector.broadcast %cst_229 : f32 to vector<16x32xf32>
    %874 = arith.mulf %873, %872 : vector<16x32xf32>
    %cst_230 = arith.constant 5.000000e-01 : f32
    %875 = vector.broadcast %cst_230 : f32 to vector<16x32xf32>
    %876 = arith.addf %874, %875 : vector<16x32xf32>
    %877 = vector.extract_strided_slice %868 {offsets = [0, 32], sizes = [16, 32], strides = [1, 1]} : vector<16x128xf32> to vector<16x32xf32>
    %cst_231 = arith.constant 5.000000e-01 : f32
    %878 = vector.broadcast %cst_231 : f32 to vector<16x32xf32>
    %879 = arith.mulf %878, %877 : vector<16x32xf32>
    %880 = math.tanh %879 : vector<16x32xf32>
    %cst_232 = arith.constant 5.000000e-01 : f32
    %881 = vector.broadcast %cst_232 : f32 to vector<16x32xf32>
    %882 = arith.mulf %881, %880 : vector<16x32xf32>
    %cst_233 = arith.constant 5.000000e-01 : f32
    %883 = vector.broadcast %cst_233 : f32 to vector<16x32xf32>
    %884 = arith.addf %882, %883 : vector<16x32xf32>
    %885 = vector.extract_strided_slice %868 {offsets = [0, 64], sizes = [16, 32], strides = [1, 1]} : vector<16x128xf32> to vector<16x32xf32>
    %886 = math.tanh %885 : vector<16x32xf32>
    %887 = vector.extract_strided_slice %868 {offsets = [0, 96], sizes = [16, 32], strides = [1, 1]} : vector<16x128xf32> to vector<16x32xf32>
    %cst_234 = arith.constant 5.000000e-01 : f32
    %888 = vector.broadcast %cst_234 : f32 to vector<16x32xf32>
    %889 = arith.mulf %888, %887 : vector<16x32xf32>
    %890 = math.tanh %889 : vector<16x32xf32>
    %cst_235 = arith.constant 5.000000e-01 : f32
    %891 = vector.broadcast %cst_235 : f32 to vector<16x32xf32>
    %892 = arith.mulf %891, %890 : vector<16x32xf32>
    %cst_236 = arith.constant 5.000000e-01 : f32
    %893 = vector.broadcast %cst_236 : f32 to vector<16x32xf32>
    %894 = arith.addf %892, %893 : vector<16x32xf32>
    %895 = arith.mulf %884, %848 : vector<16x32xf32>
    %896 = arith.mulf %876, %886 : vector<16x32xf32>
    %897 = arith.addf %895, %896 : vector<16x32xf32>
    %898 = math.tanh %897 : vector<16x32xf32>
    %899 = arith.mulf %894, %898 : vector<16x32xf32>
    %900 = vector.extract_strided_slice %6 {offsets = [6, 0], sizes = [1, 8], strides = [1, 1]} : vector<8x8xf32> to vector<1x8xf32>
    %901 = vector.broadcast %900 : vector<1x8xf32> to vector<16x8xf32>
    %902 = arith.mulf %593, %901 : vector<16x8xf32>
    %cst_237 = arith.constant dense<0.000000e+00> : vector<16xf32>
    %903 = vector.multi_reduction <add>, %902, %cst_237 [1] : vector<16x8xf32> to vector<16xf32>
    %904 = vector.shape_cast %903 : vector<16xf32> to vector<16x1xf32>
    %905 = vector.broadcast %900 : vector<1x8xf32> to vector<16x8xf32>
    %906 = arith.mulf %1, %905 : vector<16x8xf32>
    %cst_238 = arith.constant dense<0.000000e+00> : vector<16xf32>
    %907 = vector.multi_reduction <add>, %906, %cst_238 [1] : vector<16x8xf32> to vector<16xf32>
    %908 = vector.shape_cast %907 : vector<16xf32> to vector<16x1xf32>
    %909 = vector.broadcast %904 : vector<16x1xf32> to vector<16x128xf32>
    %910 = vector.broadcast %600 : vector<1x128xf32> to vector<16x128xf32>
    %911 = arith.mulf %909, %910 : vector<16x128xf32>
    %912 = vector.broadcast %908 : vector<16x1xf32> to vector<16x128xf32>
    %913 = vector.broadcast %601 : vector<1x128xf32> to vector<16x128xf32>
    %914 = arith.mulf %912, %913 : vector<16x128xf32>
    %915 = arith.addf %911, %914 : vector<16x128xf32>
    %cst_239 = arith.constant dense<0.000000e+00> : vector<16x128xf32>
    %916 = tpu.matmul %899, %597, %cst_239 {dimension_numbers = #tpu.dot_dimension_numbers<[1], [0], [0], [1], [0, 0, 1, 1], [], []>} : vector<16x32xf32>, vector<32x128xf32>, vector<16x128xf32> -> vector<16x128xf32>
    %917 = arith.addf %915, %916 : vector<16x128xf32>
    %918 = vector.extract_strided_slice %917 {offsets = [0, 0], sizes = [16, 32], strides = [1, 1]} : vector<16x128xf32> to vector<16x32xf32>
    %cst_240 = arith.constant 5.000000e-01 : f32
    %919 = vector.broadcast %cst_240 : f32 to vector<16x32xf32>
    %920 = arith.mulf %919, %918 : vector<16x32xf32>
    %921 = math.tanh %920 : vector<16x32xf32>
    %cst_241 = arith.constant 5.000000e-01 : f32
    %922 = vector.broadcast %cst_241 : f32 to vector<16x32xf32>
    %923 = arith.mulf %922, %921 : vector<16x32xf32>
    %cst_242 = arith.constant 5.000000e-01 : f32
    %924 = vector.broadcast %cst_242 : f32 to vector<16x32xf32>
    %925 = arith.addf %923, %924 : vector<16x32xf32>
    %926 = vector.extract_strided_slice %917 {offsets = [0, 32], sizes = [16, 32], strides = [1, 1]} : vector<16x128xf32> to vector<16x32xf32>
    %cst_243 = arith.constant 5.000000e-01 : f32
    %927 = vector.broadcast %cst_243 : f32 to vector<16x32xf32>
    %928 = arith.mulf %927, %926 : vector<16x32xf32>
    %929 = math.tanh %928 : vector<16x32xf32>
    %cst_244 = arith.constant 5.000000e-01 : f32
    %930 = vector.broadcast %cst_244 : f32 to vector<16x32xf32>
    %931 = arith.mulf %930, %929 : vector<16x32xf32>
    %cst_245 = arith.constant 5.000000e-01 : f32
    %932 = vector.broadcast %cst_245 : f32 to vector<16x32xf32>
    %933 = arith.addf %931, %932 : vector<16x32xf32>
    %934 = vector.extract_strided_slice %917 {offsets = [0, 64], sizes = [16, 32], strides = [1, 1]} : vector<16x128xf32> to vector<16x32xf32>
    %935 = math.tanh %934 : vector<16x32xf32>
    %936 = vector.extract_strided_slice %917 {offsets = [0, 96], sizes = [16, 32], strides = [1, 1]} : vector<16x128xf32> to vector<16x32xf32>
    %cst_246 = arith.constant 5.000000e-01 : f32
    %937 = vector.broadcast %cst_246 : f32 to vector<16x32xf32>
    %938 = arith.mulf %937, %936 : vector<16x32xf32>
    %939 = math.tanh %938 : vector<16x32xf32>
    %cst_247 = arith.constant 5.000000e-01 : f32
    %940 = vector.broadcast %cst_247 : f32 to vector<16x32xf32>
    %941 = arith.mulf %940, %939 : vector<16x32xf32>
    %cst_248 = arith.constant 5.000000e-01 : f32
    %942 = vector.broadcast %cst_248 : f32 to vector<16x32xf32>
    %943 = arith.addf %941, %942 : vector<16x32xf32>
    %944 = arith.mulf %933, %897 : vector<16x32xf32>
    %945 = arith.mulf %925, %935 : vector<16x32xf32>
    %946 = arith.addf %944, %945 : vector<16x32xf32>
    %947 = math.tanh %946 : vector<16x32xf32>
    %948 = arith.mulf %943, %947 : vector<16x32xf32>
    %949 = vector.extract_strided_slice %6 {offsets = [7, 0], sizes = [1, 8], strides = [1, 1]} : vector<8x8xf32> to vector<1x8xf32>
    %950 = vector.broadcast %949 : vector<1x8xf32> to vector<16x8xf32>
    %951 = arith.mulf %593, %950 : vector<16x8xf32>
    %cst_249 = arith.constant dense<0.000000e+00> : vector<16xf32>
    %952 = vector.multi_reduction <add>, %951, %cst_249 [1] : vector<16x8xf32> to vector<16xf32>
    %953 = vector.shape_cast %952 : vector<16xf32> to vector<16x1xf32>
    %954 = vector.broadcast %949 : vector<1x8xf32> to vector<16x8xf32>
    %955 = arith.mulf %1, %954 : vector<16x8xf32>
    %cst_250 = arith.constant dense<0.000000e+00> : vector<16xf32>
    %956 = vector.multi_reduction <add>, %955, %cst_250 [1] : vector<16x8xf32> to vector<16xf32>
    %957 = vector.shape_cast %956 : vector<16xf32> to vector<16x1xf32>
    %958 = vector.broadcast %953 : vector<16x1xf32> to vector<16x128xf32>
    %959 = vector.broadcast %600 : vector<1x128xf32> to vector<16x128xf32>
    %960 = arith.mulf %958, %959 : vector<16x128xf32>
    %961 = vector.broadcast %957 : vector<16x1xf32> to vector<16x128xf32>
    %962 = vector.broadcast %601 : vector<1x128xf32> to vector<16x128xf32>
    %963 = arith.mulf %961, %962 : vector<16x128xf32>
    %964 = arith.addf %960, %963 : vector<16x128xf32>
    %cst_251 = arith.constant dense<0.000000e+00> : vector<16x128xf32>
    %965 = tpu.matmul %948, %597, %cst_251 {dimension_numbers = #tpu.dot_dimension_numbers<[1], [0], [0], [1], [0, 0, 1, 1], [], []>} : vector<16x32xf32>, vector<32x128xf32>, vector<16x128xf32> -> vector<16x128xf32>
    %966 = arith.addf %964, %965 : vector<16x128xf32>
    %967 = vector.extract_strided_slice %966 {offsets = [0, 0], sizes = [16, 32], strides = [1, 1]} : vector<16x128xf32> to vector<16x32xf32>
    %cst_252 = arith.constant 5.000000e-01 : f32
    %968 = vector.broadcast %cst_252 : f32 to vector<16x32xf32>
    %969 = arith.mulf %968, %967 : vector<16x32xf32>
    %970 = math.tanh %969 : vector<16x32xf32>
    %cst_253 = arith.constant 5.000000e-01 : f32
    %971 = vector.broadcast %cst_253 : f32 to vector<16x32xf32>
    %972 = arith.mulf %971, %970 : vector<16x32xf32>
    %cst_254 = arith.constant 5.000000e-01 : f32
    %973 = vector.broadcast %cst_254 : f32 to vector<16x32xf32>
    %974 = arith.addf %972, %973 : vector<16x32xf32>
    %975 = vector.extract_strided_slice %966 {offsets = [0, 32], sizes = [16, 32], strides = [1, 1]} : vector<16x128xf32> to vector<16x32xf32>
    %cst_255 = arith.constant 5.000000e-01 : f32
    %976 = vector.broadcast %cst_255 : f32 to vector<16x32xf32>
    %977 = arith.mulf %976, %975 : vector<16x32xf32>
    %978 = math.tanh %977 : vector<16x32xf32>
    %cst_256 = arith.constant 5.000000e-01 : f32
    %979 = vector.broadcast %cst_256 : f32 to vector<16x32xf32>
    %980 = arith.mulf %979, %978 : vector<16x32xf32>
    %cst_257 = arith.constant 5.000000e-01 : f32
    %981 = vector.broadcast %cst_257 : f32 to vector<16x32xf32>
    %982 = arith.addf %980, %981 : vector<16x32xf32>
    %983 = vector.extract_strided_slice %966 {offsets = [0, 64], sizes = [16, 32], strides = [1, 1]} : vector<16x128xf32> to vector<16x32xf32>
    %984 = math.tanh %983 : vector<16x32xf32>
    %985 = vector.extract_strided_slice %966 {offsets = [0, 96], sizes = [16, 32], strides = [1, 1]} : vector<16x128xf32> to vector<16x32xf32>
    %cst_258 = arith.constant 5.000000e-01 : f32
    %986 = vector.broadcast %cst_258 : f32 to vector<16x32xf32>
    %987 = arith.mulf %986, %985 : vector<16x32xf32>
    %988 = math.tanh %987 : vector<16x32xf32>
    %cst_259 = arith.constant 5.000000e-01 : f32
    %989 = vector.broadcast %cst_259 : f32 to vector<16x32xf32>
    %990 = arith.mulf %989, %988 : vector<16x32xf32>
    %cst_260 = arith.constant 5.000000e-01 : f32
    %991 = vector.broadcast %cst_260 : f32 to vector<16x32xf32>
    %992 = arith.addf %990, %991 : vector<16x32xf32>
    %993 = arith.mulf %982, %946 : vector<16x32xf32>
    %994 = arith.mulf %974, %984 : vector<16x32xf32>
    %995 = arith.addf %993, %994 : vector<16x32xf32>
    %996 = math.tanh %995 : vector<16x32xf32>
    %997 = arith.mulf %992, %996 : vector<16x32xf32>
    %cst_261 = arith.constant 0.000000e+00 : f32
    %998 = vector.broadcast %cst_261 : f32 to vector<16x8xf32>
    %cst_262 = arith.constant 0.000000e+00 : f32
    %999 = vector.broadcast %cst_262 : f32 to vector<16x8xf32>
    %1000 = vector.extract_strided_slice %6 {offsets = [0, 0], sizes = [1, 8], strides = [1, 1]} : vector<8x8xf32> to vector<1x8xf32>
    %1001 = vector.broadcast %602 : vector<1x32xf32> to vector<16x32xf32>
    %1002 = arith.mulf %654, %1001 : vector<16x32xf32>
    %cst_263 = arith.constant dense<0.000000e+00> : vector<16xf32>
    %1003 = vector.multi_reduction <add>, %1002, %cst_263 [1] : vector<16x32xf32> to vector<16xf32>
    %1004 = vector.shape_cast %1003 : vector<16xf32> to vector<16x1xf32>
    %1005 = vector.broadcast %1004 : vector<16x1xf32> to vector<16x8xf32>
    %1006 = vector.broadcast %1000 : vector<1x8xf32> to vector<16x8xf32>
    %1007 = arith.mulf %1005, %1006 : vector<16x8xf32>
    %1008 = arith.addf %998, %1007 : vector<16x8xf32>
    %1009 = vector.broadcast %603 : vector<1x32xf32> to vector<16x32xf32>
    %1010 = arith.mulf %654, %1009 : vector<16x32xf32>
    %cst_264 = arith.constant dense<0.000000e+00> : vector<16xf32>
    %1011 = vector.multi_reduction <add>, %1010, %cst_264 [1] : vector<16x32xf32> to vector<16xf32>
    %1012 = vector.shape_cast %1011 : vector<16xf32> to vector<16x1xf32>
    %1013 = vector.broadcast %1012 : vector<16x1xf32> to vector<16x8xf32>
    %1014 = vector.broadcast %1000 : vector<1x8xf32> to vector<16x8xf32>
    %1015 = arith.mulf %1013, %1014 : vector<16x8xf32>
    %1016 = arith.addf %999, %1015 : vector<16x8xf32>
    %1017 = vector.extract_strided_slice %6 {offsets = [1, 0], sizes = [1, 8], strides = [1, 1]} : vector<8x8xf32> to vector<1x8xf32>
    %1018 = vector.broadcast %602 : vector<1x32xf32> to vector<16x32xf32>
    %1019 = arith.mulf %703, %1018 : vector<16x32xf32>
    %cst_265 = arith.constant dense<0.000000e+00> : vector<16xf32>
    %1020 = vector.multi_reduction <add>, %1019, %cst_265 [1] : vector<16x32xf32> to vector<16xf32>
    %1021 = vector.shape_cast %1020 : vector<16xf32> to vector<16x1xf32>
    %1022 = vector.broadcast %1021 : vector<16x1xf32> to vector<16x8xf32>
    %1023 = vector.broadcast %1017 : vector<1x8xf32> to vector<16x8xf32>
    %1024 = arith.mulf %1022, %1023 : vector<16x8xf32>
    %1025 = arith.addf %1008, %1024 : vector<16x8xf32>
    %1026 = vector.broadcast %603 : vector<1x32xf32> to vector<16x32xf32>
    %1027 = arith.mulf %703, %1026 : vector<16x32xf32>
    %cst_266 = arith.constant dense<0.000000e+00> : vector<16xf32>
    %1028 = vector.multi_reduction <add>, %1027, %cst_266 [1] : vector<16x32xf32> to vector<16xf32>
    %1029 = vector.shape_cast %1028 : vector<16xf32> to vector<16x1xf32>
    %1030 = vector.broadcast %1029 : vector<16x1xf32> to vector<16x8xf32>
    %1031 = vector.broadcast %1017 : vector<1x8xf32> to vector<16x8xf32>
    %1032 = arith.mulf %1030, %1031 : vector<16x8xf32>
    %1033 = arith.addf %1016, %1032 : vector<16x8xf32>
    %1034 = vector.extract_strided_slice %6 {offsets = [2, 0], sizes = [1, 8], strides = [1, 1]} : vector<8x8xf32> to vector<1x8xf32>
    %1035 = vector.broadcast %602 : vector<1x32xf32> to vector<16x32xf32>
    %1036 = arith.mulf %752, %1035 : vector<16x32xf32>
    %cst_267 = arith.constant dense<0.000000e+00> : vector<16xf32>
    %1037 = vector.multi_reduction <add>, %1036, %cst_267 [1] : vector<16x32xf32> to vector<16xf32>
    %1038 = vector.shape_cast %1037 : vector<16xf32> to vector<16x1xf32>
    %1039 = vector.broadcast %1038 : vector<16x1xf32> to vector<16x8xf32>
    %1040 = vector.broadcast %1034 : vector<1x8xf32> to vector<16x8xf32>
    %1041 = arith.mulf %1039, %1040 : vector<16x8xf32>
    %1042 = arith.addf %1025, %1041 : vector<16x8xf32>
    %1043 = vector.broadcast %603 : vector<1x32xf32> to vector<16x32xf32>
    %1044 = arith.mulf %752, %1043 : vector<16x32xf32>
    %cst_268 = arith.constant dense<0.000000e+00> : vector<16xf32>
    %1045 = vector.multi_reduction <add>, %1044, %cst_268 [1] : vector<16x32xf32> to vector<16xf32>
    %1046 = vector.shape_cast %1045 : vector<16xf32> to vector<16x1xf32>
    %1047 = vector.broadcast %1046 : vector<16x1xf32> to vector<16x8xf32>
    %1048 = vector.broadcast %1034 : vector<1x8xf32> to vector<16x8xf32>
    %1049 = arith.mulf %1047, %1048 : vector<16x8xf32>
    %1050 = arith.addf %1033, %1049 : vector<16x8xf32>
    %1051 = vector.extract_strided_slice %6 {offsets = [3, 0], sizes = [1, 8], strides = [1, 1]} : vector<8x8xf32> to vector<1x8xf32>
    %1052 = vector.broadcast %602 : vector<1x32xf32> to vector<16x32xf32>
    %1053 = arith.mulf %801, %1052 : vector<16x32xf32>
    %cst_269 = arith.constant dense<0.000000e+00> : vector<16xf32>
    %1054 = vector.multi_reduction <add>, %1053, %cst_269 [1] : vector<16x32xf32> to vector<16xf32>
    %1055 = vector.shape_cast %1054 : vector<16xf32> to vector<16x1xf32>
    %1056 = vector.broadcast %1055 : vector<16x1xf32> to vector<16x8xf32>
    %1057 = vector.broadcast %1051 : vector<1x8xf32> to vector<16x8xf32>
    %1058 = arith.mulf %1056, %1057 : vector<16x8xf32>
    %1059 = arith.addf %1042, %1058 : vector<16x8xf32>
    %1060 = vector.broadcast %603 : vector<1x32xf32> to vector<16x32xf32>
    %1061 = arith.mulf %801, %1060 : vector<16x32xf32>
    %cst_270 = arith.constant dense<0.000000e+00> : vector<16xf32>
    %1062 = vector.multi_reduction <add>, %1061, %cst_270 [1] : vector<16x32xf32> to vector<16xf32>
    %1063 = vector.shape_cast %1062 : vector<16xf32> to vector<16x1xf32>
    %1064 = vector.broadcast %1063 : vector<16x1xf32> to vector<16x8xf32>
    %1065 = vector.broadcast %1051 : vector<1x8xf32> to vector<16x8xf32>
    %1066 = arith.mulf %1064, %1065 : vector<16x8xf32>
    %1067 = arith.addf %1050, %1066 : vector<16x8xf32>
    %1068 = vector.extract_strided_slice %6 {offsets = [4, 0], sizes = [1, 8], strides = [1, 1]} : vector<8x8xf32> to vector<1x8xf32>
    %1069 = vector.broadcast %602 : vector<1x32xf32> to vector<16x32xf32>
    %1070 = arith.mulf %850, %1069 : vector<16x32xf32>
    %cst_271 = arith.constant dense<0.000000e+00> : vector<16xf32>
    %1071 = vector.multi_reduction <add>, %1070, %cst_271 [1] : vector<16x32xf32> to vector<16xf32>
    %1072 = vector.shape_cast %1071 : vector<16xf32> to vector<16x1xf32>
    %1073 = vector.broadcast %1072 : vector<16x1xf32> to vector<16x8xf32>
    %1074 = vector.broadcast %1068 : vector<1x8xf32> to vector<16x8xf32>
    %1075 = arith.mulf %1073, %1074 : vector<16x8xf32>
    %1076 = arith.addf %1059, %1075 : vector<16x8xf32>
    %1077 = vector.broadcast %603 : vector<1x32xf32> to vector<16x32xf32>
    %1078 = arith.mulf %850, %1077 : vector<16x32xf32>
    %cst_272 = arith.constant dense<0.000000e+00> : vector<16xf32>
    %1079 = vector.multi_reduction <add>, %1078, %cst_272 [1] : vector<16x32xf32> to vector<16xf32>
    %1080 = vector.shape_cast %1079 : vector<16xf32> to vector<16x1xf32>
    %1081 = vector.broadcast %1080 : vector<16x1xf32> to vector<16x8xf32>
    %1082 = vector.broadcast %1068 : vector<1x8xf32> to vector<16x8xf32>
    %1083 = arith.mulf %1081, %1082 : vector<16x8xf32>
    %1084 = arith.addf %1067, %1083 : vector<16x8xf32>
    %1085 = vector.extract_strided_slice %6 {offsets = [5, 0], sizes = [1, 8], strides = [1, 1]} : vector<8x8xf32> to vector<1x8xf32>
    %1086 = vector.broadcast %602 : vector<1x32xf32> to vector<16x32xf32>
    %1087 = arith.mulf %899, %1086 : vector<16x32xf32>
    %cst_273 = arith.constant dense<0.000000e+00> : vector<16xf32>
    %1088 = vector.multi_reduction <add>, %1087, %cst_273 [1] : vector<16x32xf32> to vector<16xf32>
    %1089 = vector.shape_cast %1088 : vector<16xf32> to vector<16x1xf32>
    %1090 = vector.broadcast %1089 : vector<16x1xf32> to vector<16x8xf32>
    %1091 = vector.broadcast %1085 : vector<1x8xf32> to vector<16x8xf32>
    %1092 = arith.mulf %1090, %1091 : vector<16x8xf32>
    %1093 = arith.addf %1076, %1092 : vector<16x8xf32>
    %1094 = vector.broadcast %603 : vector<1x32xf32> to vector<16x32xf32>
    %1095 = arith.mulf %899, %1094 : vector<16x32xf32>
    %cst_274 = arith.constant dense<0.000000e+00> : vector<16xf32>
    %1096 = vector.multi_reduction <add>, %1095, %cst_274 [1] : vector<16x32xf32> to vector<16xf32>
    %1097 = vector.shape_cast %1096 : vector<16xf32> to vector<16x1xf32>
    %1098 = vector.broadcast %1097 : vector<16x1xf32> to vector<16x8xf32>
    %1099 = vector.broadcast %1085 : vector<1x8xf32> to vector<16x8xf32>
    %1100 = arith.mulf %1098, %1099 : vector<16x8xf32>
    %1101 = arith.addf %1084, %1100 : vector<16x8xf32>
    %1102 = vector.extract_strided_slice %6 {offsets = [6, 0], sizes = [1, 8], strides = [1, 1]} : vector<8x8xf32> to vector<1x8xf32>
    %1103 = vector.broadcast %602 : vector<1x32xf32> to vector<16x32xf32>
    %1104 = arith.mulf %948, %1103 : vector<16x32xf32>
    %cst_275 = arith.constant dense<0.000000e+00> : vector<16xf32>
    %1105 = vector.multi_reduction <add>, %1104, %cst_275 [1] : vector<16x32xf32> to vector<16xf32>
    %1106 = vector.shape_cast %1105 : vector<16xf32> to vector<16x1xf32>
    %1107 = vector.broadcast %1106 : vector<16x1xf32> to vector<16x8xf32>
    %1108 = vector.broadcast %1102 : vector<1x8xf32> to vector<16x8xf32>
    %1109 = arith.mulf %1107, %1108 : vector<16x8xf32>
    %1110 = arith.addf %1093, %1109 : vector<16x8xf32>
    %1111 = vector.broadcast %603 : vector<1x32xf32> to vector<16x32xf32>
    %1112 = arith.mulf %948, %1111 : vector<16x32xf32>
    %cst_276 = arith.constant dense<0.000000e+00> : vector<16xf32>
    %1113 = vector.multi_reduction <add>, %1112, %cst_276 [1] : vector<16x32xf32> to vector<16xf32>
    %1114 = vector.shape_cast %1113 : vector<16xf32> to vector<16x1xf32>
    %1115 = vector.broadcast %1114 : vector<16x1xf32> to vector<16x8xf32>
    %1116 = vector.broadcast %1102 : vector<1x8xf32> to vector<16x8xf32>
    %1117 = arith.mulf %1115, %1116 : vector<16x8xf32>
    %1118 = arith.addf %1101, %1117 : vector<16x8xf32>
    %1119 = vector.extract_strided_slice %6 {offsets = [7, 0], sizes = [1, 8], strides = [1, 1]} : vector<8x8xf32> to vector<1x8xf32>
    %1120 = vector.broadcast %602 : vector<1x32xf32> to vector<16x32xf32>
    %1121 = arith.mulf %997, %1120 : vector<16x32xf32>
    %cst_277 = arith.constant dense<0.000000e+00> : vector<16xf32>
    %1122 = vector.multi_reduction <add>, %1121, %cst_277 [1] : vector<16x32xf32> to vector<16xf32>
    %1123 = vector.shape_cast %1122 : vector<16xf32> to vector<16x1xf32>
    %1124 = vector.broadcast %1123 : vector<16x1xf32> to vector<16x8xf32>
    %1125 = vector.broadcast %1119 : vector<1x8xf32> to vector<16x8xf32>
    %1126 = arith.mulf %1124, %1125 : vector<16x8xf32>
    %1127 = arith.addf %1110, %1126 : vector<16x8xf32>
    %1128 = vector.broadcast %603 : vector<1x32xf32> to vector<16x32xf32>
    %1129 = arith.mulf %997, %1128 : vector<16x32xf32>
    %cst_278 = arith.constant dense<0.000000e+00> : vector<16xf32>
    %1130 = vector.multi_reduction <add>, %1129, %cst_278 [1] : vector<16x32xf32> to vector<16xf32>
    %1131 = vector.shape_cast %1130 : vector<16xf32> to vector<16x1xf32>
    %1132 = vector.broadcast %1131 : vector<16x1xf32> to vector<16x8xf32>
    %1133 = vector.broadcast %1119 : vector<1x8xf32> to vector<16x8xf32>
    %1134 = arith.mulf %1132, %1133 : vector<16x8xf32>
    %1135 = arith.addf %1118, %1134 : vector<16x8xf32>
    %cst_279 = arith.constant 2.000000e+01 : f32
    %1136 = vector.broadcast %cst_279 : f32 to vector<16x8xf32>
    %1137 = arith.cmpf ogt, %1127, %1136 : vector<16x8xf32>
    %cst_280 = arith.constant 2.000000e+01 : f32
    %1138 = vector.broadcast %cst_280 : f32 to vector<16x8xf32>
    %1139 = arith.minimumf %1127, %1138 : vector<16x8xf32>
    %1140 = math.exp %1139 : vector<16x8xf32>
    %1141 = math.log1p %1140 : vector<16x8xf32>
    %1142 = arith.select %1137, %1127, %1141 : vector<16x8xi1>, vector<16x8xf32>
    %cst_281 = arith.constant 2.000000e+01 : f32
    %1143 = vector.broadcast %cst_281 : f32 to vector<16x8xf32>
    %1144 = arith.cmpf ogt, %1135, %1143 : vector<16x8xf32>
    %cst_282 = arith.constant 2.000000e+01 : f32
    %1145 = vector.broadcast %cst_282 : f32 to vector<16x8xf32>
    %1146 = arith.minimumf %1135, %1145 : vector<16x8xf32>
    %1147 = math.exp %1146 : vector<16x8xf32>
    %1148 = math.log1p %1147 : vector<16x8xf32>
    %1149 = arith.select %1144, %1135, %1148 : vector<16x8xi1>, vector<16x8xf32>
    %cst_283 = arith.constant dense<0.000000e+00> : vector<16x8xf32>
    %1150 = tpu.matmul %3, %1142, %cst_283 {dimension_numbers = #tpu.dot_dimension_numbers<[1], [0], [0], [1], [0, 0, 1, 1], [], []>} : vector<16x16xf32>, vector<16x8xf32>, vector<16x8xf32> -> vector<16x8xf32>
    %1151 = vector.broadcast %5 : vector<16x1xf32> to vector<16x8xf32>
    %1152 = arith.mulf %1151, %1142 : vector<16x8xf32>
    %1153 = arith.addf %1150, %1152 : vector<16x8xf32>
    %cst_284 = arith.constant dense<0.000000e+00> : vector<16x8xf32>
    %1154 = tpu.matmul %3, %1149, %cst_284 {dimension_numbers = #tpu.dot_dimension_numbers<[1], [0], [0], [1], [0, 0, 1, 1], [], []>} : vector<16x16xf32>, vector<16x8xf32>, vector<16x8xf32> -> vector<16x8xf32>
    %cst_285 = arith.constant dense<0.000000e+00> : vector<16x8xf32>
    %1155 = tpu.matmul %2, %1154, %cst_285 {dimension_numbers = #tpu.dot_dimension_numbers<[1], [0], [0], [1], [0, 0, 1, 1], [], []>} : vector<16x16xf32>, vector<16x8xf32>, vector<16x8xf32> -> vector<16x8xf32>
    %cst_286 = arith.constant 3.000000e-09 : f32
    %1156 = vector.broadcast %cst_286 : f32 to vector<16x8xf32>
    %1157 = arith.addf %1155, %1156 : vector<16x8xf32>
    %cst_287 = arith.constant 9.99999971E-10 : f32
    %1158 = vector.broadcast %cst_287 : f32 to vector<16x8xf32>
    %1159 = arith.addf %1149, %1158 : vector<16x8xf32>
    %1160 = arith.divf %1159, %1157 : vector<16x8xf32>
    %cst_288 = arith.constant dense<0.000000e+00> : vector<16x8xf32>
    %1161 = tpu.matmul %2, %1142, %cst_288 {dimension_numbers = #tpu.dot_dimension_numbers<[1], [0], [0], [1], [0, 0, 1, 1], [], []>} : vector<16x16xf32>, vector<16x8xf32>, vector<16x8xf32> -> vector<16x8xf32>
    %1162 = vector.broadcast %4 : vector<16x1xf32> to vector<16x8xf32>
    %1163 = arith.mulf %1162, %1142 : vector<16x8xf32>
    %1164 = arith.mulf %1161, %1160 : vector<16x8xf32>
    %1165 = arith.addf %1163, %1164 : vector<16x8xf32>
    %c1_289 = arith.constant 1 : index
    %c0_290 = arith.constant 0 : index
    %c0_291 = arith.constant 0 : index
    %1166 = vector.load %arg14[%c1_289, %c0_290, %c0_291] : memref<2x16x8xf32, #tpu.memory_space<vmem>>, vector<1x16x8xf32>
    %1167 = vector.shape_cast %1166 : vector<1x16x8xf32> to vector<16x8xf32>
    %1168 = vector.shape_cast %1160 : vector<16x8xf32> to vector<1x16x8xf32>
    tpu.vector_store %arg14[%c1_289, %c0_290, %c0_291], %1168 {strides = array<i32>} : memref<2x16x8xf32, #tpu.memory_space<vmem>>, vector<1x16x8xf32>,
    %c1_292 = arith.constant 1 : index
    %c0_293 = arith.constant 0 : index
    %1169 = memref.load %arg12[%c1_292, %c0_293] : memref<2x3xf32, #tpu.memory_space<smem>>
    %1170 = vector.broadcast %1169 : f32 to vector<16x8xf32>
    %1171 = arith.mulf %1170, %1165 : vector<16x8xf32>
    %1172 = arith.addf %593, %1171 : vector<16x8xf32>
    %c1_294 = arith.constant 1 : index
    %c1_295 = arith.constant 1 : index
    %1173 = memref.load %arg12[%c1_294, %c1_295] : memref<2x3xf32, #tpu.memory_space<smem>>
    %1174 = vector.broadcast %1173 : f32 to vector<16x8xf32>
    %1175 = arith.mulf %1174, %1142 : vector<16x8xf32>
    %1176 = arith.addf %1172, %1175 : vector<16x8xf32>
    %c1_296 = arith.constant 1 : index
    %c2_297 = arith.constant 2 : index
    %1177 = memref.load %arg12[%c1_296, %c2_297] : memref<2x3xf32, #tpu.memory_space<smem>>
    %1178 = vector.broadcast %1177 : f32 to vector<16x8xf32>
    %1179 = arith.mulf %1178, %1153 : vector<16x8xf32>
    %1180 = arith.addf %1176, %1179 : vector<16x8xf32>
    %cst_298 = arith.constant 0.000000e+00 : f32
    %1181 = vector.broadcast %cst_298 : f32 to vector<16x8xf32>
    %1182 = arith.maximumf %1180, %1181 : vector<16x8xf32>
    %c0_299 = arith.constant 0 : index
    %c0_300 = arith.constant 0 : index
    %1183 = vector.load %arg9[%c0_299, %c0_300] : memref<16x16xf32, #tpu.memory_space<vmem>>, vector<16x16xf32>
    %cst_301 = arith.constant dense<0.000000e+00> : vector<16x8xf32>
    %1184 = tpu.matmul %1183, %1182, %cst_301 {dimension_numbers = #tpu.dot_dimension_numbers<[1], [0], [0], [1], [0, 0, 1, 1], [], []>} : vector<16x16xf32>, vector<16x8xf32>, vector<16x8xf32> -> vector<16x8xf32>
    %c0_302 = arith.constant 0 : index
    %c0_303 = arith.constant 0 : index
    %1185 = vector.load %arg10[%c0_302, %c0_303] : memref<8x4xf32, #tpu.memory_space<vmem>>, vector<8x4xf32>
    %cst_304 = arith.constant dense<0.000000e+00> : vector<16x4xf32>
    %1186 = tpu.matmul %1184, %1185, %cst_304 {dimension_numbers = #tpu.dot_dimension_numbers<[1], [0], [0], [1], [0, 0, 1, 1], [], []>} : vector<16x8xf32>, vector<8x4xf32>, vector<16x4xf32> -> vector<16x4xf32>
    %c0_305 = arith.constant 0 : index
    %c0_306 = arith.constant 0 : index
    %1187 = vector.load %arg13[%c0_305, %c0_306] : memref<16x4xf32, #tpu.memory_space<vmem>>, vector<16x4xf32>
    tpu.vector_store %arg13[%c0_305, %c0_306], %1186 {strides = array<i32>} : memref<16x4xf32, #tpu.memory_space<vmem>>, vector<16x4xf32>,
    return
  }
}

</mosaic_0001>

<bundles_post_ra>
// kernel: tpu_custom_call.1
= control target key start
LH: loop header
LB: loop body
LE: loop exit
PB: predicated region body
PF: predicated region fallthrough
CT: control target
= control target key end

     0   :  { %20 = vsyncpa [#allocation3], 0  ;;  %s4553_s0 = inlined_call_operand.vmem [shape: f32[16,8], index: 0, kind: input, shape index: {}]   ;;  %s4554_s1 = inlined_call_operand.vmem [shape: f32[16,8], index: 1, kind: input, shape index: {}]   ;;  %s4555_s2 = inlined_call_operand.vmem [shape: f32[2,2,128], index: 2, kind: input, shape index: {}]   ;;  %s4556_s3 = inlined_call_operand.hbm [shape: f32[2,32,128], index: 3, kind: input, shape index: {}]   ;;  %s4557_s4 = inlined_call_operand.vmem [shape: f32[2,2,32], index: 4, kind: input, shape index: {}]   ;;  %s4558_s5 = inlined_call_operand.vmem [shape: f32[16,16], index: 5, kind: input, shape index: {}]   ;;  %s4559_s6 = inlined_call_operand.vmem [shape: f32[16,16], index: 6, kind: input, shape index: {}]   ;;  %s4560_s7 = inlined_call_operand.vmem [shape: f32[16,1], index: 7, kind: input, shape index: {}]   ;;  %s4561_s8 = inlined_call_operand.vmem [shape: f32[16,1], index: 8, kind: input, shape index: {}]   ;;  %s4562_s9 = inlined_call_operand.vmem [shape: f32[16,16], index: 9, kind: input, shape index: {}]   ;;  %s4563_s10 = inlined_call_operand.vmem [shape: f32[8,4], index: 10, kind: input, shape index: {}]   ;;  %s4564_s11 = inlined_call_operand.vmem [shape: f32[8,8], index: 11, kind: input, shape index: {}]   ;;  %s4565_s12 = inlined_call_operand.vmem [shape: f32[2,3], index: 12, kind: input, shape index: {}]   ;;  %s4566_s13 = inlined_call_operand.vmem [shape: f32[16,4], index: 13, kind: output, shape index: {0}]   ;;  %s4567_s14 = inlined_call_operand.vmem [shape: f32[2,16,8], index: 14, kind: output, shape index: {1}]  }
   0x1   :  { %s32_s15 = sshll.u32 %s4556_s3, 4  ;;  %s33_s15 = int_to_ptr.hbm [resolvable:$true] %s32_s15 }
   0x2   :  { %21 = vsyncpa [#allocation4], 0  ;;  %s3198_s16 = smov [#allocation2]   ;;  %s62_s20 = sshll.u32 %s4565_s12, 4  ;;  %s63_s20 = int_to_ptr.vmem [resolvable:$true] %s62_s20 }
   0x3   :  { %s34_s17 = sshll.u32 %s3198_s16, 4  ;;  %s3199_s21 = smov 128   ;;  %s35_s17 = int_to_ptr.vmem [resolvable:$true] %s34_s17 }
   0x4   :  { %s3200_s22 = smov 8   ;;  %s3201_s23 = smov [#allocation5]  }
   0x5   :  { %40 = dma.hbm_to_vmem [thread:$0]  %s33_s15, 1024, %s35_s17, [#allocation3], %s3199_s21, %s3199_s21, %s3200_s22  }
   0x6   :  { %65 = dma.vmem_to_smem %s63_s20, 32, %s3201_s23, [#allocation4]  }
   0x7   :  { %3194 = dma.done.wait [#allocation3], 1024  }
   0x8   :  { %3195 = vsyncadd [#allocation3], 4294966272 }
   0x9   :  { %3196 = dma.done.wait [#allocation4], 32  }
   0xa   :  { %3197 = vsyncadd [#allocation4], 4294967264 }
   0xb   :  { %74 = sfence }
   0xc   :  { %v3288_v0 = vld [vmem:[#allocation2 + $0x18] sm:$0xff]  ;;  %v3290_v1 = vld [vmem:[#allocation2 + $0x10] sm:$0xff]  ;;  %v3297_v2 = vld [vmem:[%s4553_s0 + $0x8] sm:$0xff]  ;;  %vm97_vm0 = vcmask 64512   ;;  %v3202_v16 = vmov 0.0   ;;  %s3203_s18 = smov 64  }
   0xd   :  { %136 = vmatpush.msra.mxu0 %v3288_v0  ;;  %2895 = vmatpush.msra.mxu2 %v3288_v0  ;;  %v3302_v3 = vld [vmem:[%s4564_s11] sm:$0xff]  ;;  %v3309_v5 = vld [vmem:[#allocation2 + $0x8] sm:$0xff]  ;;  %s3204_s19 = smov 32   ;;  %vm120_vm1 = vcmask 261120   ;;  %s3205_s28 = smov 96   ;;  %vm1305_vm6 = vcmask 130048  }
   0xe   :  { %v3307_v4 = vld [vmem:[%s4553_s0] sm:$0xff]  ;;  %v3312_v6 = vperm.slane %v3302_v3, 0  ;;  %238 = vmatpush.msra.mxu1 %v3288_v0  ;;  %2899 = vmatpush.msra.mxu3 %v3288_v0  ;;  %v3330_v10 = vld [vmem:[%s4554_s1 + $0x8] sm:$0xff]  ;;  %v3412_v62 = vperm.slane %v3302_v3, 1  ;;  %s4014_s30 = sld [smem:[#allocation5]] }
   0xf   :  { %137 = vmatpush.msra.mxu0 %v3290_v1  ;;  %2896 = vmatpush.msra.mxu2 %v3290_v1  ;;  %v3325_v9 = vld [vmem:[#allocation2] sm:$0xff]  ;;  %s4016_s15 = sld [smem:[#allocation5 + $0x1]] }
  0x10   :  { %v96_v7 = vmul.f32 %v3312_v6, %v3297_v2  ;;  %v95_v8 = vmul.f32 %v3312_v6, %v3307_v4  ;;  %239 = vmatpush.msra.mxu1 %v3290_v1  ;;  %v3335_v11 = vld [vmem:[%s4554_s1] sm:$0xff]  ;;  %2900 = vmatpush.msra.mxu3 %v3290_v1  ;;  %v105_v14 = vmul.f32 %v3312_v6, %v3330_v10  ;;  %s4020_s16 = sld [smem:[#allocation5 + $0x2]] }
  0x11   :  { %138 = vmatpush.msra.mxu0 %v3309_v5  ;;  %2897 = vmatpush.msra.mxu2 %v3309_v5  ;;  %v104_v15 = vmul.f32 %v3312_v6, %v3335_v11  ;;  %v88_v21 = vld [vmem:[%s4555_s2] sm:$0x3]  ;;  %v202_v63 = vmul.f32 %v3412_v62, %v3335_v11  ;;  %s2889_s29 = sld [smem:[#allocation5 + $0x81]] }
  0x12   :  { %v101_v12 = vsel %vm97_vm0, %v96_v7, 0.0  ;;  %v98_v13 = vsel %vm97_vm0, %v95_v8, 0.0  ;;  %240 = vmatpush.msra.mxu1 %v3309_v5  ;;  %2901 = vmatpush.msra.mxu3 %v3309_v5  ;;  %v109_v17 = vsel %vm97_vm0, %v105_v14, 0.0  ;;  %v3377_v22 = vperm.slane %v88_v21, 0 }
  0x13   :  { %102 = vadd.xlane.f32.xlu1 %v101_v12  ;;  %99 = vadd.xlane.f32.xlu0 %v98_v13  ;;  %v106_v18 = vsel %vm97_vm0, %v104_v15, 0.0  ;;  %v3379_v23 = vperm.slane %v88_v21, 1  ;;  %v194_v7 = vmul.f32 %v3412_v62, %v3307_v4  ;;  %v204_v8 = vsel %vm97_vm0, %v202_v63, 0.0 }
  0x14   :  { %139 = vmatpush.msra.mxu0 %v3325_v9  ;;  %2898 = vmatpush.msra.mxu2 %v3325_v9  ;;  %v203_v14 = vmul.f32 %v3412_v62, %v3330_v10  ;;  %v195_v15 = vmul.f32 %v3412_v62, %v3297_v2 }
  0x15   :  { %140 = vmatmul.f32.vlgmr.msra.gmra.mxu0 %v3202_v16  ;;  %143 = vmatmul.f32.vlgmr.msra.gmra.mxu2 %v3202_v16  ;;  %v196_v12 = vsel %vm97_vm0, %v194_v7, 0.0 }
  0x16   :  { %241 = vmatpush.msra.mxu1 %v3325_v9  ;;  %340 = vmatpush.msrb.mxu2 %v3288_v0 }
  0x17   :  { %544 = vmatpush.msrb.mxu0 %v3288_v0  ;;  %2902 = vmatpush.msra.mxu3 %v3325_v9 }
  0x18   :  { %646 = vmatpush.msrb.mxu1 %v3288_v0  ;;  %341 = vmatpush.msrb.mxu2 %v3290_v1 }
  0x19   :  { %442 = vmatpush.msrb.mxu3 %v3288_v0  ;;  %545 = vmatpush.msrb.mxu0 %v3290_v1 }
  0x1a   :  { %647 = vmatpush.msrb.mxu1 %v3290_v1  ;;  %342 = vmatpush.msrb.mxu2 %v3309_v5 }
  0x1b   :  { %110 = vadd.xlane.f32.xlu1 %v109_v17  ;;  %107 = vadd.xlane.f32.xlu0 %v106_v18  ;;  %v207_v17 = vsel %vm97_vm0, %v203_v14, 0.0  ;;  %v199_v18 = vsel %vm97_vm0, %v195_v15, 0.0 }
  0x1c   :  { %443 = vmatpush.msrb.mxu3 %v3290_v1  ;;  %546 = vmatpush.msrb.mxu0 %v3309_v5 }
  0x1d   :  { %648 = vmatpush.msrb.mxu1 %v3309_v5  ;;  %343 = vmatpush.msrb.mxu2 %v3325_v9 }
  0x1e   :  { %444 = vmatpush.msrb.mxu3 %v3309_v5  ;;  %547 = vmatpush.msrb.mxu0 %v3325_v9 }
  0x1f   :  { %649 = vmatpush.msrb.mxu1 %v3325_v9  ;;  %748 = vmatpush.msra.mxu2 %v3288_v0 }
  0x20   :  { %445 = vmatpush.msrb.mxu3 %v3325_v9 }
  0x21   :  { %749 = vmatpush.msra.mxu2 %v3290_v1 }
  0x23   :  { %750 = vmatpush.msra.mxu2 %v3309_v5 }
  0x25   :  { %751 = vmatpush.msra.mxu2 %v3325_v9 }
  0x86   :  { %v103_v19 = vpop.xlane.xlu1 %102  ;;  %v100_v20 = vpop.xlane.xlu0 %99 }
  0x87   :  { %v113_v25 = vmul.f32 %v3377_v22, %v100_v20  ;;  %v114_v30 = vmul.f32 %v3377_v22, %v103_v19 }
  0x8e   :  { %v3381_v24 = vpop.xlane.xlu0 %107  ;;  %v3386_v27 = vpop.xlane.xlu1 %110 }
  0x8f   :  { %v116_v26 = vmul.f32 %v3379_v23, %v3381_v24  ;;  %v117_v31 = vmul.f32 %v3379_v23, %v3386_v27 }
  0x91   :  { %v118_v28 = vadd.f32 %v116_v26, %v113_v25  ;;  %v119_v33 = vadd.f32 %v117_v31, %v114_v30 }
  0x92   :  { %v141_v29 = vpop.f32.mrf.mxu0 }
  0x93   :  { %v147_v32 = vadd.f32 %v141_v29, %v118_v28 }
  0x95   :  { %2915 = vtanh.f32 %v147_v32  ;;  %v149_v38 = vmul.f32 0.5, %v147_v32 }
  0x98   :  { %v144_v34 = vpop.f32.mrf.mxu2 }
  0x99   :  { %v148_v35 = vadd.f32 %v144_v34, %v119_v33 }
  0x9b   :  { %v2916_v36 = vpop.eup %2915  ;;  %2917 = vtanh.f32 %v148_v35  ;;  %v150_v39 = vmul.f32 0.5, %v148_v35 }
  0x9c   :  { %163 = vrot.lane.b32.xlu2 %v2916_v36, %s3203_s18  ;;  %2919 = vtanh.f32 %v149_v38 }
  0x9d   :  { %2921 = vtanh.f32 %v150_v39 }
  0xa1   :  { %v2918_v37 = vpop.eup %2917 }
  0xa2   :  { %v2920_v40 = vpop.eup %2919 }
  0xa3   :  { %v153_v41 = vmul.f32 0.5, %v2920_v40  ;;  %v2922_v43 = vpop.eup %2921 }
  0xa4   :  { %165 = vrot.lane.b32.xlu2 %v2918_v37, %s3203_s18  ;;  %v154_v46 = vmul.f32 0.5, %v2922_v43 }
  0xa5   :  { %v155_v42 = vadd.f32 0.5, %v153_v41 }
  0xa6   :  { %v156_v47 = vadd.f32 0.5, %v154_v46 }
  0xa7   :  { %v159_v50 = vmul.f32 0.0, %v155_v42 }
  0xa8   :  { %v160_v53 = vmul.f32 0.0, %v156_v47 }
  0xf6   :  { %v164_v44 = vpop.permute.xlu2 %163 }
  0xf7   :  { %v169_v45 = vmul.f32 %v164_v44, %v155_v42 }
  0xf9   :  { %173 = vrot.lane.b32.xlu0 %v169_v45, %s3204_s19 }
  0xfe   :  { %v166_v48 = vpop.permute.xlu2 %165 }
  0xff   :  { %v170_v49 = vmul.f32 %v166_v48, %v156_v47 }
 0x101   :  { %175 = vrot.lane.b32.xlu1 %v170_v49, %s3204_s19 }
 0x12b   :  { %205 = vadd.xlane.f32.xlu1 %v204_v8 }
 0x16b   :  { %v174_v51 = vpop.permute.xlu0 %173 }
 0x16c   :  { %v3395_v52 = vadd.f32 %v174_v51, %v159_v50 }
 0x16e   :  { %2923 = vtanh.f32 %v3395_v52 }
 0x173   :  { %v176_v54 = vpop.permute.xlu1 %175 }
 0x174   :  { %v2924_v55 = vpop.eup %2923  ;;  %v3398_v56 = vadd.f32 %v176_v54, %v160_v53 }
 0x175   :  { %185 = vrot.lane.b32.xlu2 %v2924_v55, %s3203_s18 }
 0x176   :  { %2925 = vtanh.f32 %v3398_v56 }
 0x17c   :  { %v2926_v57 = vpop.eup %2925 }
 0x17d   :  { %187 = vrot.lane.b32.xlu2 %v2926_v57, %s3203_s18 }
 0x19e   :  { %v3432_v20 = vpop.xlane.xlu1 %205 }
 0x19f   :  { %v212_v25 = vmul.f32 %v3432_v20, %v3379_v23 }
 0x1cf   :  { %v186_v58 = vpop.permute.xlu2 %185 }
 0x1d0   :  { %v3403_v59 = vmul.f32 %v186_v58, %v155_v42 }
 0x1d2   :  { %218 = vrot.lane.b32.xlu2 %v3403_v59, %s3204_s19 }
 0x1d7   :  { %v188_v60 = vpop.permute.xlu2 %187 }
 0x1d8   :  { %v3407_v61 = vmul.f32 %v188_v60, %v156_v47 }
 0x1da   :  { %220 = vrot.lane.b32.xlu0 %v3407_v61, %s3204_s19 }
 0x1fb   :  { %197 = vadd.xlane.f32.xlu2 %v196_v12 }
 0x203   :  { %208 = vadd.xlane.f32.xlu2 %v207_v17 }
 0x204   :  { %200 = vadd.xlane.f32.xlu0 %v199_v18 }
 0x22c   :  { %v219_v13 = vpop.permute.xlu2 %218 }
 0x22d   :  { %2838 = vmatmul.msk.f32.vlgmr.msra.gmra.mxu1 %vm120_vm1, %v219_v13 }
 0x24c   :  { %v221_v19 = vpop.permute.xlu0 %220 }
 0x24d   :  { %2839 = vmatmul.msk.f32.vlgmr.msra.gmra.mxu3 %vm120_vm1, %v221_v19 }
 0x24e   :  { %850 = vmatpush.msra.mxu3 %v3288_v0 }
 0x250   :  { %851 = vmatpush.msra.mxu3 %v3290_v1 }
 0x252   :  { %852 = vmatpush.msra.mxu3 %v3309_v5 }
 0x254   :  { %853 = vmatpush.msra.mxu3 %v3325_v9 }
 0x26e   :  { %v198_v21 = vpop.xlane.xlu2 %197 }
 0x26f   :  { %v210_v26 = vmul.f32 %v198_v21, %v3377_v22 }
 0x271   :  { %v214_v28 = vadd.f32 %v212_v25, %v210_v26 }
 0x276   :  { %v3438_v1 = vpop.xlane.xlu2 %208 }
 0x277   :  { %v201_v0 = vpop.xlane.xlu0 %200  ;;  %v213_v9 = vmul.f32 %v3438_v1, %v3379_v23 }
 0x278   :  { %v211_v5 = vmul.f32 %v201_v0, %v3377_v22 }
 0x27a   :  { %v215_v32 = vadd.f32 %v213_v9, %v211_v5 }
 0x2aa   :  { %v243_v29 = vpop.f32.mrf.mxu1 }
 0x2ab   :  { %v249_v30 = vadd.f32 %v243_v29, %v214_v28 }
 0x2ad   :  { %2927 = vtanh.f32 %v249_v30  ;;  %v251_v36 = vmul.f32 0.5, %v249_v30 }
 0x2b3   :  { %v2928_v31 = vpop.eup %2927 }
 0x2b4   :  { %265 = vrot.lane.b32.xlu1 %v2928_v31, %s3203_s18 }
 0x2d0   :  { %v246_v33 = vpop.f32.mrf.mxu3 }
 0x2d1   :  { %v250_v34 = vadd.f32 %v246_v33, %v215_v32 }
 0x2d3   :  { %2929 = vtanh.f32 %v250_v34  ;;  %v252_v42 = vmul.f32 0.5, %v250_v34 }
 0x2d4   :  { %2931 = vtanh.f32 %v251_v36 }
 0x2d5   :  { %2933 = vtanh.f32 %v252_v42 }
 0x2d9   :  { %v2930_v35 = vpop.eup %2929 }
 0x2da   :  { %267 = vrot.lane.b32.xlu0 %v2930_v35, %s3203_s18  ;;  %v2932_v37 = vpop.eup %2931 }
 0x2db   :  { %v255_v38 = vmul.f32 0.5, %v2932_v37  ;;  %v2934_v43 = vpop.eup %2933 }
 0x2dc   :  { %v256_v44 = vmul.f32 0.5, %v2934_v43 }
 0x2dd   :  { %v257_v39 = vadd.f32 0.5, %v255_v38 }
 0x2de   :  { %v258_v45 = vadd.f32 0.5, %v256_v44 }
 0x2df   :  { %v261_v48 = vmul.f32 %v257_v39, %v3395_v52 }
 0x2e0   :  { %v262_v53 = vmul.f32 %v258_v45, %v3398_v56  ;;  %v3465_v56 = vperm.slane %v3302_v3, 2 }
 0x2e2   :  { %v296_v7 = vmul.f32 %v3465_v56, %v3307_v4  ;;  %v304_v8 = vmul.f32 %v3465_v56, %v3335_v11  ;;  %v305_v15 = vmul.f32 %v3465_v56, %v3330_v10  ;;  %v297_v17 = vmul.f32 %v3465_v56, %v3297_v2 }
 0x2e4   :  { %v298_v12 = vsel %vm97_vm0, %v296_v7, 0.0  ;;  %v306_v13 = vsel %vm97_vm0, %v304_v8, 0.0  ;;  %v309_v18 = vsel %vm97_vm0, %v305_v15, 0.0  ;;  %v301_v19 = vsel %vm97_vm0, %v297_v17, 0.0 }
 0x2e5   :  { %v3510_v15 = vperm.slane %v3302_v3, 3 }
 0x326   :  { %v266_v40 = vpop.permute.xlu1 %265 }
 0x327   :  { %v271_v41 = vmul.f32 %v266_v40, %v257_v39 }
 0x329   :  { %275 = vrot.lane.b32.xlu2 %v271_v41, %s3204_s19 }
 0x34c   :  { %v268_v46 = vpop.permute.xlu0 %267 }
 0x34d   :  { %v272_v47 = vmul.f32 %v268_v46, %v258_v45 }
 0x34f   :  { %277 = vrot.lane.b32.xlu0 %v272_v47, %s3204_s19 }
 0x383   :  { %v276_v49 = vpop.permute.xlu2 %275 }
 0x384   :  { %v3447_v50 = vadd.f32 %v276_v49, %v261_v48 }
 0x386   :  { %2935 = vtanh.f32 %v3447_v50 }
 0x38c   :  { %v2936_v51 = vpop.eup %2935 }
 0x38d   :  { %287 = vrot.lane.b32.xlu1 %v2936_v51, %s3203_s18 }
 0x3c1   :  { %v278_v54 = vpop.permute.xlu0 %277 }
 0x3c2   :  { %v3452_v55 = vadd.f32 %v278_v54, %v262_v53 }
 0x3c4   :  { %2937 = vtanh.f32 %v3452_v55 }
 0x3ca   :  { %v2938_v57 = vpop.eup %2937 }
 0x3cb   :  { %289 = vrot.lane.b32.xlu2 %v2938_v57, %s3203_s18 }
 0x3f4   :  { %299 = vadd.xlane.f32.xlu2 %v298_v12 }
 0x3fc   :  { %310 = vadd.xlane.f32.xlu2 %v309_v18  ;;  %v406_v18 = vmul.f32 %v3510_v15, %v3335_v11 }
 0x3ff   :  { %v288_v58 = vpop.permute.xlu1 %287 }
 0x400   :  { %v3456_v52 = vmul.f32 %v288_v58, %v257_v39 }
 0x402   :  { %320 = vrot.lane.b32.xlu0 %v3456_v52, %s3204_s19 }
 0x425   :  { %v290_v60 = vpop.permute.xlu2 %289 }
 0x426   :  { %v3460_v63 = vmul.f32 %v290_v60, %v258_v45 }
 0x428   :  { %322 = vrot.lane.b32.xlu1 %v3460_v63, %s3204_s19 }
 0x42c   :  { %307 = vadd.xlane.f32.xlu0 %v306_v13 }
 0x452   :  { %302 = vadd.xlane.f32.xlu1 %v301_v19 }
 0x467   :  { %v300_v26 = vpop.xlane.xlu2 %299 }
 0x468   :  { %v312_v29 = vmul.f32 %v300_v26, %v3377_v22 }
 0x46f   :  { %v3487_v32 = vpop.xlane.xlu2 %310 }
 0x470   :  { %v315_v34 = vmul.f32 %v3487_v32, %v3379_v23 }
 0x474   :  { %v321_v14 = vpop.permute.xlu0 %320 }
 0x475   :  { %2840 = vmatmul.msk.f32.vlgmr.msrb.gmra.mxu2 %vm120_vm1, %v321_v14 }
 0x49a   :  { %v323_v21 = vpop.permute.xlu1 %322 }
 0x49b   :  { %2841 = vmatmul.msk.f32.gmra.mxu2 %vm120_vm1, %v323_v21  ;;  %v408_v21 = vsel %vm97_vm0, %v406_v18, 0.0 }
 0x49f   :  { %v3481_v25 = vpop.xlane.xlu0 %307 }
 0x4a0   :  { %v314_v28 = vmul.f32 %v3481_v25, %v3379_v23 }
 0x4a2   :  { %v316_v30 = vadd.f32 %v314_v28, %v312_v29  ;;  %v407_v28 = vmul.f32 %v3510_v15, %v3330_v10  ;;  %v399_v29 = vmul.f32 %v3510_v15, %v3297_v2 }
 0x4c5   :  { %v303_v9 = vpop.xlane.xlu1 %302 }
 0x4c6   :  { %v313_v33 = vmul.f32 %v303_v9, %v3377_v22 }
 0x4c8   :  { %v317_v35 = vadd.f32 %v315_v34, %v313_v33 }
 0x4f8   :  { %v345_v31 = vpop.f32.mrf.mxu2 }
 0x4f9   :  { %v351_v0 = vadd.f32 %v345_v31, %v316_v30  ;;  %v411_v30 = vsel %vm97_vm0, %v407_v28, 0.0  ;;  %v403_v31 = vsel %vm97_vm0, %v399_v29, 0.0 }
 0x4fb   :  { %2939 = vtanh.f32 %v351_v0  ;;  %v353_v39 = vmul.f32 0.5, %v351_v0 }
 0x501   :  { %v2940_v5 = vpop.eup %2939 }
 0x502   :  { %367 = vrot.lane.b32.xlu0 %v2940_v5, %s3203_s18 }
 0x51e   :  { %v348_v36 = vpop.f32.mrf.mxu2 }
 0x51f   :  { %v352_v37 = vadd.f32 %v348_v36, %v317_v35 }
 0x521   :  { %2941 = vtanh.f32 %v352_v37  ;;  %v354_v45 = vmul.f32 0.5, %v352_v37 }
 0x522   :  { %2943 = vtanh.f32 %v353_v39 }
 0x523   :  { %2945 = vtanh.f32 %v354_v45 }
 0x527   :  { %v2942_v38 = vpop.eup %2941 }
 0x528   :  { %369 = vrot.lane.b32.xlu1 %v2942_v38, %s3203_s18  ;;  %v2944_v40 = vpop.eup %2943 }
 0x529   :  { %v357_v41 = vmul.f32 0.5, %v2944_v40  ;;  %v2946_v46 = vpop.eup %2945 }
 0x52a   :  { %v358_v47 = vmul.f32 0.5, %v2946_v46 }
 0x52b   :  { %v359_v42 = vadd.f32 0.5, %v357_v41 }
 0x52c   :  { %v360_v48 = vadd.f32 0.5, %v358_v47 }
 0x52d   :  { %v363_v53 = vmul.f32 %v359_v42, %v3447_v50 }
 0x52e   :  { %v364_v60 = vmul.f32 %v360_v48, %v3452_v55  ;;  %v398_v55 = vmul.f32 %v3510_v15, %v3307_v4 }
 0x530   :  { %v400_v19 = vsel %vm97_vm0, %v398_v55, 0.0 }
 0x574   :  { %v368_v43 = vpop.permute.xlu0 %367 }
 0x575   :  { %v373_v44 = vmul.f32 %v368_v43, %v359_v42 }
 0x577   :  { %377 = vrot.lane.b32.xlu2 %v373_v44, %s3204_s19 }
 0x59a   :  { %v370_v49 = vpop.permute.xlu1 %369 }
 0x59b   :  { %v374_v51 = vmul.f32 %v370_v49, %v360_v48 }
 0x59d   :  { %379 = vrot.lane.b32.xlu0 %v374_v51, %s3204_s19 }
 0x5d1   :  { %v378_v54 = vpop.permute.xlu2 %377 }
 0x5d2   :  { %v3496_v57 = vadd.f32 %v378_v54, %v363_v53 }
 0x5d4   :  { %2947 = vtanh.f32 %v3496_v57 }
 0x5da   :  { %v2948_v58 = vpop.eup %2947 }
 0x5db   :  { %389 = vrot.lane.b32.xlu1 %v2948_v58, %s3203_s18 }
 0x60f   :  { %v380_v7 = vpop.permute.xlu0 %379 }
 0x610   :  { %v3501_v8 = vadd.f32 %v380_v7, %v364_v60 }
 0x612   :  { %2949 = vtanh.f32 %v3501_v8 }
 0x618   :  { %v2950_v12 = vpop.eup %2949 }
 0x619   :  { %391 = vrot.lane.b32.xlu0 %v2950_v12, %s3203_s18 }
 0x643   :  { %401 = vadd.xlane.f32.xlu0 %v400_v19 }
 0x64b   :  { %412 = vadd.xlane.f32.xlu0 %v411_v30 }
 0x64d   :  { %v390_v13 = vpop.permute.xlu1 %389 }
 0x64e   :  { %v3505_v50 = vmul.f32 %v390_v13, %v359_v42 }
 0x650   :  { %422 = vrot.lane.b32.xlu2 %v3505_v50, %s3204_s19 }
 0x679   :  { %409 = vadd.xlane.f32.xlu2 %v408_v21 }
 0x68b   :  { %v392_v14 = vpop.permute.xlu0 %391 }
 0x68c   :  { %v3512_v17 = vmul.f32 %v392_v14, %v360_v48 }
 0x68e   :  { %424 = vrot.lane.b32.xlu1 %v3512_v17, %s3204_s19 }
 0x6aa   :  { %v423_v26 = vpop.permute.xlu2 %422 }
 0x6ab   :  { %2842 = vmatmul.msk.f32.vlgmr.msrb.gmra.mxu3 %vm120_vm1, %v423_v26 }
 0x6b6   :  { %v402_v5 = vpop.xlane.xlu0 %401 }
 0x6b7   :  { %v414_v33 = vmul.f32 %v402_v5, %v3377_v22 }
 0x6b8   :  { %404 = vadd.xlane.f32.xlu1 %v403_v31 }
 0x6be   :  { %v3536_v39 = vpop.xlane.xlu0 %412 }
 0x6bf   :  { %v417_v41 = vmul.f32 %v3536_v39, %v3379_v23 }
 0x6ec   :  { %v3530_v9 = vpop.xlane.xlu2 %409 }
 0x6ed   :  { %v416_v34 = vmul.f32 %v3530_v9, %v3379_v23 }
 0x6ef   :  { %v418_v35 = vadd.f32 %v416_v34, %v414_v33 }
 0x700   :  { %v425_v0 = vpop.permute.xlu1 %424 }
 0x701   :  { %2843 = vmatmul.msk.f32.gmra.mxu3 %vm120_vm1, %v425_v0 }
 0x72b   :  { %v405_v40 = vpop.xlane.xlu1 %404 }
 0x72c   :  { %v415_v42 = vmul.f32 %v405_v40, %v3377_v22 }
 0x72e   :  { %v447_v36 = vpop.f32.mrf.mxu3  ;;  %v419_v44 = vadd.f32 %v417_v41, %v415_v42 }
 0x72f   :  { %v453_v37 = vadd.f32 %v447_v36, %v418_v35 }
 0x731   :  { %2951 = vtanh.f32 %v453_v37  ;;  %v455_v43 = vmul.f32 0.5, %v453_v37 }
 0x733   :  { %2953 = vtanh.f32 %v455_v43 }
 0x737   :  { %v2952_v38 = vpop.eup %2951 }
 0x738   :  { %469 = vrot.lane.b32.xlu2 %v2952_v38, %s3203_s18 }
 0x739   :  { %v2954_v47 = vpop.eup %2953 }
 0x73a   :  { %v459_v49 = vmul.f32 0.5, %v2954_v47 }
 0x73c   :  { %v461_v51 = vadd.f32 0.5, %v459_v49 }
 0x73e   :  { %v465_v55 = vmul.f32 %v461_v51, %v3496_v57  ;;  %v3556_v57 = vperm.slane %v3302_v3, 4 }
 0x740   :  { %v500_v5 = vmul.f32 %v3556_v57, %v3307_v4  ;;  %v509_v38 = vmul.f32 %v3556_v57, %v3330_v10  ;;  %v501_v40 = vmul.f32 %v3556_v57, %v3297_v2 }
 0x742   :  { %v502_v34 = vsel %vm97_vm0, %v500_v5, 0.0  ;;  %v513_v41 = vsel %vm97_vm0, %v509_v38, 0.0  ;;  %v505_v42 = vsel %vm97_vm0, %v501_v40, 0.0 }
 0x784   :  { %v450_v45 = vpop.f32.mrf.mxu3 }
 0x785   :  { %v454_v46 = vadd.f32 %v450_v45, %v419_v44 }
 0x787   :  { %2955 = vtanh.f32 %v454_v46  ;;  %v456_v58 = vmul.f32 0.5, %v454_v46 }
 0x789   :  { %2957 = vtanh.f32 %v456_v58 }
 0x78d   :  { %v2956_v48 = vpop.eup %2955 }
 0x78e   :  { %471 = vrot.lane.b32.xlu1 %v2956_v48, %s3203_s18 }
 0x78f   :  { %v2958_v60 = vpop.eup %2957 }
 0x790   :  { %v460_v7 = vmul.f32 0.5, %v2958_v60 }
 0x792   :  { %v470_v53 = vpop.permute.xlu2 %469  ;;  %v462_v12 = vadd.f32 0.5, %v460_v7 }
 0x793   :  { %v475_v54 = vmul.f32 %v470_v53, %v461_v51 }
 0x794   :  { %v466_v26 = vmul.f32 %v462_v12, %v3501_v8  ;;  %v508_v8 = vmul.f32 %v3556_v57, %v3335_v11 }
 0x795   :  { %479 = vrot.lane.b32.xlu0 %v475_v54, %s3204_s19 }
 0x796   :  { %v510_v33 = vsel %vm97_vm0, %v508_v8, 0.0 }
 0x800   :  { %v472_v13 = vpop.permute.xlu1 %471 }
 0x801   :  { %v476_v14 = vmul.f32 %v472_v13, %v462_v12 }
 0x803   :  { %481 = vrot.lane.b32.xlu2 %v476_v14, %s3204_s19 }
 0x807   :  { %v480_v18 = vpop.permute.xlu0 %479 }
 0x808   :  { %v485_v19 = vadd.f32 %v480_v18, %v465_v55 }
 0x80a   :  { %2959 = vtanh.f32 %v485_v19 }
 0x810   :  { %v2960_v21 = vpop.eup %2959 }
 0x811   :  { %491 = vrot.lane.b32.xlu0 %v2960_v21, %s3203_s18 }
 0x85d   :  { %v482_v28 = vpop.permute.xlu2 %481 }
 0x85e   :  { %v3547_v29 = vadd.f32 %v482_v28, %v466_v26 }
 0x860   :  { %2961 = vtanh.f32 %v3547_v29 }
 0x866   :  { %v2962_v30 = vpop.eup %2961 }
 0x867   :  { %493 = vrot.lane.b32.xlu1 %v2962_v30, %s3203_s18 }
 0x883   :  { %v492_v31 = vpop.permute.xlu0 %491 }
 0x884   :  { %v3551_v0 = vmul.f32 %v492_v31, %v461_v51 }
 0x886   :  { %524 = vrot.lane.b32.xlu2 %v3551_v0, %s3204_s19 }
 0x891   :  { %503 = vadd.xlane.f32.xlu1 %v502_v34 }
 0x899   :  { %514 = vadd.xlane.f32.xlu1 %v513_v41 }
 0x8af   :  { %511 = vadd.xlane.f32.xlu2 %v510_v33 }
 0x8d9   :  { %v494_v35 = vpop.permute.xlu1 %493 }
 0x8da   :  { %v3564_v36 = vmul.f32 %v494_v35, %v462_v12 }
 0x8dc   :  { %526 = vrot.lane.b32.xlu0 %v3564_v36, %s3204_s19 }
 0x8e0   :  { %v525_v37 = vpop.permute.xlu2 %524 }
 0x8e1   :  { %2844 = vmatmul.msk.f32.vlgmr.msrb.gmra.mxu0 %vm120_vm1, %v525_v37 }
 0x904   :  { %v504_v45 = vpop.xlane.xlu1 %503 }
 0x905   :  { %v516_v47 = vmul.f32 %v504_v45, %v3377_v22 }
 0x906   :  { %506 = vadd.xlane.f32.xlu0 %v505_v42 }
 0x90c   :  { %v3582_v14 = vpop.xlane.xlu1 %514 }
 0x90d   :  { %v519_v21 = vmul.f32 %v3582_v14, %v3379_v23 }
 0x922   :  { %v3576_v44 = vpop.xlane.xlu2 %511 }
 0x923   :  { %v518_v46 = vmul.f32 %v3576_v44, %v3379_v23 }
 0x925   :  { %v520_v48 = vadd.f32 %v518_v46, %v516_v47 }
 0x94e   :  { %v527_v43 = vpop.permute.xlu0 %526 }
 0x94f   :  { %2845 = vmatmul.msk.f32.gmra.mxu0 %vm120_vm1, %v527_v43 }
 0x95e   :  { %v549_v49 = vpop.f32.mrf.mxu0 }
 0x95f   :  { %v555_v51 = vadd.f32 %v549_v49, %v520_v48  ;;  %v3604_v49 = vperm.slane %v3302_v3, 5 }
 0x961   :  { %2963 = vtanh.f32 %v555_v51  ;;  %v557_v54 = vmul.f32 0.5, %v555_v51  ;;  %v610_v51 = vmul.f32 %v3604_v49, %v3335_v11 }
 0x963   :  { %2965 = vtanh.f32 %v557_v54 }
 0x967   :  { %v2964_v53 = vpop.eup %2963 }
 0x968   :  { %571 = vrot.lane.b32.xlu2 %v2964_v53, %s3203_s18  ;;  %v612_v53 = vsel %vm97_vm0, %v610_v51, 0.0 }
 0x969   :  { %v2966_v58 = vpop.eup %2965 }
 0x96a   :  { %v561_v60 = vmul.f32 0.5, %v2966_v58 }
 0x96c   :  { %v563_v7 = vadd.f32 0.5, %v561_v60 }
 0x96e   :  { %v567_v5 = vmul.f32 %v563_v7, %v485_v19 }
 0x979   :  { %v507_v12 = vpop.xlane.xlu0 %506 }
 0x97a   :  { %v517_v18 = vmul.f32 %v507_v12, %v3377_v22 }
 0x97c   :  { %v521_v26 = vadd.f32 %v519_v21, %v517_v18 }
 0x9c2   :  { %v572_v13 = vpop.permute.xlu2 %571 }
 0x9c3   :  { %v577_v55 = vmul.f32 %v572_v13, %v563_v7 }
 0x9c5   :  { %581 = vrot.lane.b32.xlu1 %v577_v55, %s3204_s19 }
 0x9cc   :  { %v552_v28 = vpop.f32.mrf.mxu0 }
 0x9cd   :  { %v556_v30 = vadd.f32 %v552_v28, %v521_v26 }
 0x9cf   :  { %2967 = vtanh.f32 %v556_v30  ;;  %v558_v8 = vmul.f32 0.5, %v556_v30 }
 0x9d1   :  { %2969 = vtanh.f32 %v558_v8  ;;  %v611_v8 = vmul.f32 %v3604_v49, %v3330_v10 }
 0x9d5   :  { %v2968_v31 = vpop.eup %2967 }
 0x9d6   :  { %573 = vrot.lane.b32.xlu0 %v2968_v31, %s3203_s18  ;;  %v603_v31 = vmul.f32 %v3604_v49, %v3297_v2 }
 0x9d7   :  { %v2970_v35 = vpop.eup %2969 }
 0x9d8   :  { %v562_v38 = vmul.f32 0.5, %v2970_v35 }
 0x9da   :  { %v564_v40 = vadd.f32 0.5, %v562_v38 }
 0x9dc   :  { %v568_v19 = vmul.f32 %v564_v40, %v3547_v29  ;;  %v602_v29 = vmul.f32 %v3604_v49, %v3307_v4 }
 0x9de   :  { %v604_v54 = vsel %vm97_vm0, %v602_v29, 0.0 }
 0xa37   :  { %v582_v33 = vpop.permute.xlu1 %581 }
 0xa38   :  { %v3589_v34 = vadd.f32 %v582_v33, %v567_v5  ;;  %v607_v5 = vsel %vm97_vm0, %v603_v31, 0.0  ;;  %v615_v33 = vsel %vm97_vm0, %v611_v8, 0.0 }
 0xa3a   :  { %2971 = vtanh.f32 %v3589_v34 }
 0xa40   :  { %v2972_v37 = vpop.eup %2971 }
 0xa41   :  { %593 = vrot.lane.b32.xlu2 %v2972_v37, %s3203_s18 }
 0xa48   :  { %v574_v41 = vpop.permute.xlu0 %573 }
 0xa49   :  { %v578_v42 = vmul.f32 %v574_v41, %v564_v40 }
 0xa4b   :  { %583 = vrot.lane.b32.xlu0 %v578_v42, %s3204_s19 }
 0xa9b   :  { %v594_v43 = vpop.permute.xlu2 %593 }
 0xa9c   :  { %v3594_v45 = vmul.f32 %v594_v43, %v563_v7 }
 0xa9e   :  { %626 = vrot.lane.b32.xlu2 %v3594_v45, %s3204_s19 }
 0xabd   :  { %v584_v46 = vpop.permute.xlu0 %583 }
 0xabe   :  { %v3599_v47 = vadd.f32 %v584_v46, %v568_v19 }
 0xac0   :  { %2973 = vtanh.f32 %v3599_v47 }
 0xac6   :  { %v2974_v48 = vpop.eup %2973 }
 0xac7   :  { %595 = vrot.lane.b32.xlu0 %v2974_v48, %s3203_s18  ;;  %613 = vadd.xlane.f32.xlu2 %v612_v53 }
 0xacf   :  { %616 = vadd.xlane.f32.xlu2 %v615_v33 }
 0xaf1   :  { %605 = vadd.xlane.f32.xlu0 %v604_v54 }
 0xaf8   :  { %v627_v58 = vpop.permute.xlu2 %626 }
 0xaf9   :  { %2846 = vmatmul.msk.f32.vlgmr.msrb.gmra.mxu1 %vm120_vm1, %v627_v58 }
 0xb39   :  { %v596_v60 = vpop.permute.xlu0 %595 }
 0xb3a   :  { %v3613_v7 = vmul.f32 %v596_v60, %v564_v40  ;;  %v3617_v13 = vpop.xlane.xlu2 %613 }
 0xb3b   :  { %v620_v18 = vmul.f32 %v3617_v13, %v3379_v23 }
 0xb3c   :  { %628 = vrot.lane.b32.xlu1 %v3613_v7, %s3204_s19 }
 0xb42   :  { %v3631_v19 = vpop.xlane.xlu2 %616 }
 0xb43   :  { %v621_v48 = vmul.f32 %v3631_v19, %v3379_v23 }
 0xb64   :  { %v606_v12 = vpop.xlane.xlu0 %605 }
 0xb65   :  { %v618_v55 = vmul.f32 %v606_v12, %v3377_v22 }
 0xb66   :  { %608 = vadd.xlane.f32.xlu1 %v607_v5 }
 0xb67   :  { %v622_v21 = vadd.f32 %v620_v18, %v618_v55 }
 0xb76   :  { %v651_v26 = vpop.f32.mrf.mxu1 }
 0xb77   :  { %v657_v28 = vadd.f32 %v651_v26, %v622_v21 }
 0xb79   :  { %2975 = vtanh.f32 %v657_v28  ;;  %v659_v37 = vmul.f32 0.5, %v657_v28 }
 0xb7b   :  { %2977 = vtanh.f32 %v659_v37 }
 0xb7f   :  { %v2976_v30 = vpop.eup %2975 }
 0xb80   :  { %673 = vrot.lane.b32.xlu0 %v2976_v30, %s3203_s18 }
 0xb81   :  { %v2978_v38 = vpop.eup %2977 }
 0xb82   :  { %v663_v40 = vmul.f32 0.5, %v2978_v38 }
 0xb84   :  { %v665_v41 = vadd.f32 0.5, %v663_v40 }
 0xb86   :  { %v669_v60 = vmul.f32 %v665_v41, %v3589_v34  ;;  %v3648_v34 = vperm.slane %v3302_v3, 6 }
 0xb88   :  { %v704_v3 = vmul.f32 %v3648_v34, %v3307_v4 }
 0xbae   :  { %v629_v35 = vpop.permute.xlu1 %628 }
 0xbaf   :  { %2847 = vmatmul.msk.f32.gmra.mxu1 %vm120_vm1, %v629_v35  ;;  %v712_v35 = vmul.f32 %v3648_v34, %v3335_v11  ;;  %v706_v11 = vsel %vm97_vm0, %v704_v3, 0.0 }
 0xbb1   :  { %v714_v37 = vsel %vm97_vm0, %v712_v35, 0.0 }
 0xbd9   :  { %v609_v46 = vpop.xlane.xlu1 %608 }
 0xbda   :  { %v619_v51 = vmul.f32 %v609_v46, %v3377_v22 }
 0xbdc   :  { %v623_v53 = vadd.f32 %v621_v48, %v619_v51 }
 0xbf2   :  { %v674_v42 = vpop.permute.xlu0 %673 }
 0xbf3   :  { %v679_v43 = vmul.f32 %v674_v42, %v665_v41 }
 0xbf5   :  { %683 = vrot.lane.b32.xlu2 %v679_v43, %s3204_s19 }
 0xc2c   :  { %v654_v29 = vpop.f32.mrf.mxu1 }
 0xc2d   :  { %v658_v54 = vadd.f32 %v654_v29, %v623_v53 }
 0xc2f   :  { %2979 = vtanh.f32 %v658_v54  ;;  %v660_v21 = vmul.f32 0.5, %v658_v54 }
 0xc35   :  { %v2980_v58 = vpop.eup %2979 }
 0xc36   :  { %675 = vrot.lane.b32.xlu1 %v2980_v58, %s3203_s18 }
 0xc4f   :  { %v684_v12 = vpop.permute.xlu2 %683 }
 0xc50   :  { %v3638_v55 = vadd.f32 %v684_v12, %v669_v60  ;;  %v713_v12 = vmul.f32 %v3648_v34, %v3330_v10 }
 0xc52   :  { %2981 = vtanh.f32 %v3638_v55 }
 0xc53   :  { %2983 = vtanh.f32 %v660_v21  ;;  %v717_v21 = vsel %vm97_vm0, %v713_v12, 0.0 }
 0xc58   :  { %v2982_v18 = vpop.eup %2981 }
 0xc59   :  { %695 = vrot.lane.b32.xlu1 %v2982_v18, %s3203_s18  ;;  %v2984_v26 = vpop.eup %2983  ;;  %v705_v18 = vmul.f32 %v3648_v34, %v3297_v2 }
 0xc5a   :  { %v664_v28 = vmul.f32 0.5, %v2984_v26 }
 0xc5b   :  { %v709_v26 = vsel %vm97_vm0, %v705_v18, 0.0 }
 0xc5c   :  { %v666_v30 = vadd.f32 0.5, %v664_v28 }
 0xc5e   :  { %v670_v38 = vmul.f32 %v666_v30, %v3599_v47 }
 0xca8   :  { %v676_v31 = vpop.permute.xlu1 %675 }
 0xca9   :  { %v680_v8 = vmul.f32 %v676_v31, %v666_v30 }
 0xcab   :  { %685 = vrot.lane.b32.xlu0 %v680_v8, %s3204_s19 }
 0xccb   :  { %v696_v5 = vpop.permute.xlu1 %695 }
 0xccc   :  { %v3643_v33 = vmul.f32 %v696_v5, %v665_v41 }
 0xcce   :  { %728 = vrot.lane.b32.xlu2 %v3643_v33, %s3204_s19 }
 0xcf7   :  { %715 = vadd.xlane.f32.xlu2 %v714_v37 }
 0xd1d   :  { %v686_v40 = vpop.permute.xlu0 %685 }
 0xd1e   :  { %v3654_v42 = vadd.f32 %v686_v40, %v670_v38 }
 0xd20   :  { %2985 = vtanh.f32 %v3654_v42 }
 0xd26   :  { %v2986_v41 = vpop.eup %2985 }
 0xd27   :  { %697 = vrot.lane.b32.xlu0 %v2986_v41, %s3203_s18 }
 0xd28   :  { %v729_v43 = vpop.permute.xlu2 %728 }
 0xd29   :  { %2848 = vmatmul.msk.f32.vlgmr.msra.gmra.mxu2 %vm120_vm1, %v729_v43 }
 0xd51   :  { %707 = vadd.xlane.f32.xlu0 %v706_v11 }
 0xd59   :  { %718 = vadd.xlane.f32.xlu0 %v717_v21 }
 0xd6a   :  { %v3666_v47 = vpop.xlane.xlu2 %715 }
 0xd6b   :  { %v722_v51 = vmul.f32 %v3666_v47, %v3379_v23 }
 0xd99   :  { %v698_v46 = vpop.permute.xlu0 %697 }
 0xd9a   :  { %v3662_v48 = vmul.f32 %v698_v46, %v666_v30 }
 0xd9c   :  { %730 = vrot.lane.b32.xlu1 %v3662_v48, %s3204_s19 }
 0xdac   :  { %v753_v58 = vpop.f32.mrf.mxu2 }
 0xdc4   :  { %v708_v53 = vpop.xlane.xlu0 %707 }
 0xdc5   :  { %v720_v29 = vmul.f32 %v708_v53, %v3377_v22 }
 0xdc6   :  { %710 = vadd.xlane.f32.xlu1 %v709_v26 }
 0xdc7   :  { %v724_v54 = vadd.f32 %v722_v51, %v720_v29 }
 0xdc9   :  { %v759_v4 = vadd.f32 %v753_v58, %v724_v54 }
 0xdcb   :  { %2987 = vtanh.f32 %v759_v4  ;;  %v761_v30 = vmul.f32 0.5, %v759_v4 }
 0xdcc   :  { %v3680_v2 = vpop.xlane.xlu0 %718 }
 0xdcd   :  { %2989 = vtanh.f32 %v761_v30  ;;  %v723_v40 = vmul.f32 %v3680_v2, %v3379_v23 }
 0xdd1   :  { %v2988_v60 = vpop.eup %2987 }
 0xdd2   :  { %775 = vrot.lane.b32.xlu2 %v2988_v60, %s3203_s18 }
 0xdd3   :  { %v2990_v31 = vpop.eup %2989 }
 0xdd4   :  { %v765_v8 = vmul.f32 0.5, %v2990_v31 }
 0xdd6   :  { %v767_v5 = vadd.f32 0.5, %v765_v8 }
 0xdd8   :  { %v771_v46 = vmul.f32 %v767_v5, %v3638_v55 }
 0xe0e   :  { %v731_v28 = vpop.permute.xlu1 %730 }
 0xe0f   :  { %2849 = vmatmul.msk.f32.gmra.mxu2 %vm120_vm1, %v731_v28 }
 0xe2c   :  { %v776_v35 = vpop.permute.xlu2 %775 }
 0xe2d   :  { %v781_v37 = vmul.f32 %v776_v35, %v767_v5 }
 0xe2f   :  { %785 = vrot.lane.b32.xlu0 %v781_v37, %s3204_s19 }
 0xe39   :  { %v711_v10 = vpop.xlane.xlu1 %710 }
 0xe3a   :  { %v721_v38 = vmul.f32 %v711_v10, %v3377_v22 }
 0xe3c   :  { %v725_v41 = vadd.f32 %v723_v40, %v721_v38  ;;  %v3149_v38 = vld [vmem:[%s4554_s1] sm:$0xff] }
 0xe92   :  { %v756_v43 = vpop.f32.mrf.mxu2 }
 0xe93   :  { %v760_v3 = vadd.f32 %v756_v43, %v725_v41 }
 0xe95   :  { %2991 = vtanh.f32 %v760_v3  ;;  %v762_v54 = vmul.f32 0.5, %v760_v3 }
 0xe9b   :  { %v2992_v11 = vpop.eup %2991 }
 0xe9c   :  { %777 = vrot.lane.b32.xlu1 %v2992_v11, %s3203_s18  ;;  %v3150_v11 = vld [vmem:[%s4553_s0] sm:$0xff] }
 0xea1   :  { %v786_v51 = vpop.permute.xlu0 %785 }
 0xea2   :  { %v3687_v53 = vadd.f32 %v786_v51, %v771_v46 }
 0xea4   :  { %2993 = vtanh.f32 %v3687_v53 }
 0xea5   :  { %2995 = vtanh.f32 %v762_v54 }
 0xeaa   :  { %v2994_v29 = vpop.eup %2993 }
 0xeab   :  { %797 = vrot.lane.b32.xlu0 %v2994_v29, %s3203_s18  ;;  %v2996_v58 = vpop.eup %2995  ;;  %v3151_v29 = vld [vmem:[%s4554_s1 + $0x8] sm:$0xff] }
 0xeac   :  { %v766_v4 = vmul.f32 0.5, %v2996_v58 }
 0xeae   :  { %v768_v60 = vadd.f32 0.5, %v766_v4 }
 0xeb0   :  { %v772_v55 = vmul.f32 %v768_v60, %v3654_v42  ;;  %v3148_v42 = vld [vmem:[%s4553_s0 + $0x8] sm:$0xff] }
 0xf0e   :  { %v778_v12 = vpop.permute.xlu1 %777 }
 0xf0f   :  { %v782_v18 = vmul.f32 %v778_v12, %v768_v60 }
 0xf11   :  { %787 = vrot.lane.b32.xlu2 %v782_v18, %s3204_s19 }
 0xf1d   :  { %v798_v21 = vpop.permute.xlu0 %797 }
 0xf1e   :  { %v3692_v26 = vmul.f32 %v798_v21, %v767_v5  ;;  %v3147_v5 = vld [vmem:[%s4564_s11] sm:$0xff] }
 0xf1f   :  { %v3705_v35 = vperm.slane %v3147_v5, 7 }
 0xf20   :  { %830 = vrot.lane.b32.xlu2 %v3692_v26, %s3204_s19 }
 0xf21   :  { %v807_v37 = vmul.f32 %v3148_v42, %v3705_v35  ;;  %v814_v40 = vmul.f32 %v3149_v38, %v3705_v35  ;;  %v806_v46 = vmul.f32 %v3150_v11, %v3705_v35  ;;  %v815_v54 = vmul.f32 %v3151_v29, %v3705_v35  ;;  %v3747_v11 = vld [vmem:[%s4557_s4] sm:$0x3] }
 0xf23   :  { %v811_v10 = vsel %vm97_vm0, %v807_v37, 0.0  ;;  %v816_v3 = vsel %vm97_vm0, %v814_v40, 0.0  ;;  %v808_v51 = vsel %vm97_vm0, %v806_v46, 0.0  ;;  %v819_v58 = vsel %vm97_vm0, %v815_v54, 0.0 }
 0xf24   :  { %v932_v46 = vperm.slane %v3747_v11, 1 }
 0xf49   :  { %820 = vadd.xlane.f32.xlu2 %v819_v58 }
 0xf6b   :  { %v788_v28 = vpop.permute.xlu2 %787 }
 0xf6c   :  { %v3697_v30 = vadd.f32 %v788_v28, %v772_v55 }
 0xf6e   :  { %2997 = vtanh.f32 %v3697_v30 }
 0xf74   :  { %v2998_v31 = vpop.eup %2997 }
 0xf75   :  { %799 = vrot.lane.b32.xlu1 %v2998_v31, %s3203_s18 }
 0xf7a   :  { %v831_v8 = vpop.permute.xlu2 %830 }
 0xf7b   :  { %2850 = vmatmul.msk.f32.vlgmr.msra.gmra.mxu3 %vm120_vm1, %v831_v8 }
 0xf9f   :  { %812 = vadd.xlane.f32.xlu1 %v811_v10 }
 0xfa7   :  { %817 = vadd.xlane.f32.xlu1 %v816_v3 }
 0xfbc   :  { %v3738_v42 = vpop.xlane.xlu2 %820 }
 0xfbd   :  { %v825_v10 = vmul.f32 %v3738_v42, %v3379_v23 }
 0xfe7   :  { %v800_v41 = vpop.permute.xlu1 %799 }
 0xfe8   :  { %v3716_v43 = vmul.f32 %v800_v41, %v768_v60 }
 0xfea   :  { %832 = vrot.lane.b32.xlu0 %v3716_v43, %s3204_s19 }
 0xffe   :  { %v855_v31 = vpop.f32.mrf.mxu3 }
0x1012   :  { %v813_v60 = vpop.xlane.xlu1 %812 }
0x1013   :  { %v823_v37 = vmul.f32 %v813_v60, %v3377_v22 }
0x1014   :  { %809 = vadd.xlane.f32.xlu0 %v808_v51 }
0x1015   :  { %v827_v38 = vadd.f32 %v825_v10, %v823_v37 }
0x101a   :  { %v3732_v12 = vpop.xlane.xlu1 %817 }
0x101b   :  { %v824_v18 = vmul.f32 %v3732_v12, %v3379_v23 }
0x105c   :  { %v833_v4 = vpop.permute.xlu0 %832 }
0x105d   :  { %2851 = vmatmul.msk.f32.gmra.mxu3 %vm120_vm1, %v833_v4 }
0x1087   :  { %v810_v21 = vpop.xlane.xlu0 %809 }
0x1088   :  { %v822_v55 = vmul.f32 %v810_v21, %v3377_v22 }
0x108a   :  { %v826_v28 = vadd.f32 %v824_v18, %v822_v55 }
0x108c   :  { %v861_v8 = vadd.f32 %v855_v31, %v826_v28 }
0x108e   :  { %2999 = vtanh.f32 %v861_v8  ;;  %v863_v22 = vmul.f32 0.5, %v861_v8 }
0x1094   :  { %v3000_v5 = vpop.eup %2999 }
0x1095   :  { %877 = vrot.lane.b32.xlu0 %v3000_v5, %s3203_s18 }
0x10e0   :  { %v858_v40 = vpop.f32.mrf.mxu3 }
0x10e1   :  { %v862_v41 = vadd.f32 %v858_v40, %v827_v38 }
0x10e3   :  { %3001 = vtanh.f32 %v862_v41  ;;  %v864_v4 = vmul.f32 0.5, %v862_v41 }
0x10e4   :  { %3003 = vtanh.f32 %v863_v22 }
0x10e5   :  { %3005 = vtanh.f32 %v864_v4 }
0x10e9   :  { %v3002_v3 = vpop.eup %3001 }
0x10ea   :  { %879 = vrot.lane.b32.xlu2 %v3002_v3, %s3203_s18  ;;  %v3004_v23 = vpop.eup %3003 }
0x10eb   :  { %v867_v51 = vmul.f32 0.5, %v3004_v23  ;;  %v3006_v18 = vpop.eup %3005 }
0x10ec   :  { %v868_v8 = vmul.f32 0.5, %v3006_v18 }
0x10ed   :  { %v3751_v29 = vadd.f32 0.5, %v867_v51 }
0x10ee   :  { %v3766_v5 = vadd.f32 0.5, %v868_v8 }
0x10ef   :  { %v873_v3 = vmul.f32 %v3751_v29, %v3687_v53 }
0x10f2   :  { %934 = vrot.lane.b32.xlu2 %v932_v46, %s3205_s28 }
0x1107   :  { %v878_v54 = vpop.permute.xlu0 %877 }
0x1108   :  { %v883_v58 = vmul.f32 %v878_v54, %v3751_v29 }
0x110a   :  { %887 = vrot.lane.b32.xlu0 %v883_v58, %s3204_s19 }
0x1144   :  { %v880_v60 = vpop.permute.xlu2 %879 }
0x1145   :  { %v884_v37 = vmul.f32 %v880_v60, %v3766_v5 }
0x114c   :  { %v3755_v21 = vpop.permute.xlu2 %934 }
0x114d   :  { %v938_v55 = vmul.f32 %v3755_v21, %v3407_v61  ;;  %v937_v28 = vmul.f32 %v3755_v21, %v3403_v59  ;;  %v978_v31 = vmul.f32 %v3755_v21, %v3460_v63  ;;  %v977_v10 = vmul.f32 %v3755_v21, %v3456_v52 }
0x114e   :  { %v1058_v38 = vmul.f32 %v3755_v21, %v3564_v36  ;;  %v1097_v40 = vmul.f32 %v3755_v21, %v3594_v45  ;;  %v1178_v41 = vmul.f32 %v3755_v21, %v3716_v43  ;;  %v1017_v51 = vmul.f32 %v3755_v21, %v3505_v50 }
0x114f   :  { %943 = vrot.lane.b32.xlu2 %v938_v55, %s3204_s19  ;;  %941 = vrot.lane.b32.xlu1 %v937_v28, %s3204_s19  ;;  %v1098_v54 = vmul.f32 %v3755_v21, %v3613_v7  ;;  %v1137_v58 = vmul.f32 %v3755_v21, %v3643_v33  ;;  %v874_v55 = vmul.f32 %v3766_v5, %v3697_v30 }
0x1150   :  { %983 = vrot.lane.b32.xlu0 %v978_v31, %s3204_s19  ;;  %v1177_v30 = vmul.f32 %v3755_v21, %v3692_v26 }
0x1157   :  { %981 = vrot.lane.b32.xlu2 %v977_v10, %s3204_s19  ;;  %889 = vrot.lane.b32.xlu1 %v884_v37, %s3204_s19  ;;  %v1018_v37 = vmul.f32 %v3755_v21, %v3512_v17  ;;  %v1057_v10 = vmul.f32 %v3755_v21, %v3551_v0 }
0x115f   :  { %1063 = vrot.lane.b32.xlu2 %v1058_v38, %s3204_s19  ;;  %v1138_v38 = vmul.f32 %v3755_v21, %v3662_v48 }
0x1167   :  { %1101 = vrot.lane.b32.xlu2 %v1097_v40, %s3204_s19 }
0x116f   :  { %1183 = vrot.lane.b32.xlu2 %v1178_v41, %s3204_s19 }
0x117c   :  { %v888_v46 = vpop.permute.xlu0 %887 }
0x117d   :  { %v893_v22 = vadd.f32 %v888_v46, %v873_v3 }
0x117f   :  { %3007 = vtanh.f32 %v893_v22 }
0x1185   :  { %v3008_v23 = vpop.eup %3007 }
0x1186   :  { %899 = vrot.lane.b32.xlu1 %v3008_v23, %s3203_s18 }
0x118e   :  { %1021 = vrot.lane.b32.xlu1 %v1017_v51, %s3204_s19 }
0x1196   :  { %1103 = vrot.lane.b32.xlu1 %v1098_v54, %s3204_s19 }
0x119e   :  { %1141 = vrot.lane.b32.xlu1 %v1137_v58, %s3204_s19 }
0x11a9   :  { %v944_v46 = vpop.permute.xlu2 %943 }
0x11aa   :  { %v950_v54 = vsel %vm120_vm1, %v944_v46, 0.0 }
0x11b1   :  { %v982_v51 = vpop.permute.xlu2 %981 }
0x11b2   :  { %v987_v58 = vsel %vm120_vm1, %v982_v51, 0.0 }
0x11c1   :  { %v942_v53 = vpop.permute.xlu1 %941 }
0x11c2   :  { %v947_v4 = vsel %vm120_vm1, %v942_v53, 0.0  ;;  %v984_v60 = vpop.permute.xlu0 %983  ;;  %v1064_v53 = vpop.permute.xlu2 %1063 }
0x11c3   :  { %948 = vadd.xlane.f32.xlu2 %v947_v4  ;;  %v990_v18 = vsel %vm120_vm1, %v984_v60, 0.0  ;;  %v1070_v4 = vsel %vm120_vm1, %v1064_v53, 0.0 }
0x11c8   :  { %991 = vadd.xlane.f32.xlu1 %v990_v18 }
0x11c9   :  { %v890_v28 = vpop.permute.xlu1 %889 }
0x11ca   :  { %v894_v31 = vadd.f32 %v890_v28, %v874_v55  ;;  %v1102_v60 = vpop.permute.xlu2 %1101 }
0x11cc   :  { %3009 = vtanh.f32 %v894_v31 }
0x11d2   :  { %v3010_v8 = vpop.eup %3009  ;;  %v1184_v18 = vpop.permute.xlu2 %1183 }
0x11d3   :  { %901 = vrot.lane.b32.xlu0 %v3010_v8, %s3203_s18  ;;  %v1190_v55 = vsel %vm120_vm1, %v1184_v18, 0.0 }
0x11db   :  { %1023 = vrot.lane.b32.xlu0 %v1018_v37, %s3204_s19 }
0x11e3   :  { %1061 = vrot.lane.b32.xlu0 %v1057_v10, %s3204_s19 }
0x11eb   :  { %1143 = vrot.lane.b32.xlu0 %v1138_v38, %s3204_s19 }
0x11f3   :  { %1181 = vrot.lane.b32.xlu0 %v1177_v30, %s3204_s19 }
0x11f8   :  { %v900_v40 = vpop.permute.xlu1 %899 }
0x11f9   :  { %v3813_v22 = vmul.f32 %v900_v40, %v3751_v29  ;;  %v1107_v29 = vsel %vm120_vm1, %v1102_v60, 0.0 }
0x11fb   :  { %v1217_v23 = vmul.f32 %v3755_v21, %v3813_v22 }
0x1200   :  { %v1022_v41 = vpop.permute.xlu1 %1021 }
0x1201   :  { %v1027_v3 = vsel %vm120_vm1, %v1022_v41, 0.0 }
0x1202   :  { %1028 = vadd.xlane.f32.xlu2 %v1027_v3 }
0x1208   :  { %v1104_v28 = vpop.permute.xlu1 %1103 }
0x1209   :  { %v1110_v31 = vsel %vm120_vm1, %v1104_v28, 0.0 }
0x1210   :  { %v1142_v37 = vpop.permute.xlu1 %1141 }
0x1211   :  { %v1147_v10 = vsel %vm120_vm1, %v1142_v37, 0.0 }
0x121a   :  { %1221 = vrot.lane.b32.xlu2 %v1217_v23, %s3204_s19 }
0x121d   :  { %951 = vadd.xlane.f32.xlu0 %v950_v54 }
0x1225   :  { %988 = vadd.xlane.f32.xlu0 %v987_v58 }
0x122d   :  { %1071 = vadd.xlane.f32.xlu0 %v1070_v4 }
0x1235   :  { %1108 = vadd.xlane.f32.xlu0 %v1107_v29 }
0x1236   :  { %v949_v3 = vpop.xlane.xlu2 %948 }
0x123b   :  { %v992_v29 = vpop.xlane.xlu1 %991 }
0x123d   :  { %1191 = vadd.xlane.f32.xlu0 %v1190_v55 }
0x1243   :  { %1111 = vadd.xlane.f32.xlu2 %v1110_v31 }
0x1245   :  { %v902_v8 = vpop.permute.xlu0 %901 }
0x1246   :  { %v3827_v40 = vmul.f32 %v902_v8, %v3766_v5 }
0x1248   :  { %v1218_v41 = vmul.f32 %v3755_v21, %v3827_v40  ;;  %v907_v21 = vperm.slane %v3747_v11, 0  ;;  %v953_v11 = vmul.f32 %v949_v3, %v3312_v6 }
0x124b   :  { %1148 = vadd.xlane.f32.xlu2 %v1147_v10 }
0x124d   :  { %v1024_v38 = vpop.permute.xlu0 %1023 }
0x124e   :  { %v1030_v30 = vsel %vm120_vm1, %v1024_v38, 0.0 }
0x124f   :  { %1031 = vadd.xlane.f32.xlu1 %v1030_v30 }
0x1255   :  { %v1062_v54 = vpop.permute.xlu0 %1061 }
0x1256   :  { %v1067_v58 = vsel %vm120_vm1, %v1062_v54, 0.0 }
0x125d   :  { %v1144_v53 = vpop.permute.xlu0 %1143 }
0x125e   :  { %v1150_v4 = vsel %vm120_vm1, %v1144_v53, 0.0 }
0x1265   :  { %v1182_v5 = vpop.permute.xlu0 %1181 }
0x1266   :  { %v1187_v60 = vsel %vm120_vm1, %v1182_v5, 0.0 }
0x1268   :  { %1223 = vrot.lane.b32.xlu1 %v1218_v41, %s3204_s19 }
0x1275   :  { %v1029_v46 = vpop.xlane.xlu2 %1028 }
0x127d   :  { %v1222_v23 = vpop.permute.xlu2 %1221 }
0x127e   :  { %v1227_v51 = vsel %vm120_vm1, %v1222_v23, 0.0 }
0x127f   :  { %1228 = vadd.xlane.f32.xlu0 %v1227_v51 }
0x1290   :  { %v952_v31 = vpop.xlane.xlu0 %951 }
0x1292   :  { %1068 = vadd.xlane.f32.xlu1 %v1067_v58 }
0x1298   :  { %v989_v37 = vpop.xlane.xlu0 %988 }
0x1299   :  { %v993_v41 = vmul.f32 %v989_v37, %v3412_v62 }
0x129a   :  { %1151 = vadd.xlane.f32.xlu1 %v1150_v4 }
0x129b   :  { %v995_v5 = vadd.f32 %v993_v41, %v953_v11  ;;  %v954_v41 = vmul.f32 %v952_v31, %v3312_v6  ;;  %v994_v11 = vmul.f32 %v992_v29, %v3412_v62 }
0x129d   :  { %v996_v31 = vadd.f32 %v994_v11, %v954_v41 }
0x12a0   :  { %v1072_v38 = vpop.xlane.xlu0 %1071 }
0x12a2   :  { %1188 = vadd.xlane.f32.xlu1 %v1187_v60  ;;  %v1033_v60 = vmul.f32 %v1029_v46, %v3465_v56 }
0x12a8   :  { %v1109_v23 = vpop.xlane.xlu0 %1108 }
0x12a9   :  { %v1113_v37 = vmul.f32 %v1109_v23, %v3556_v57 }
0x12b6   :  { %v1112_v4 = vpop.xlane.xlu2 %1111 }
0x12bb   :  { %909 = vrot.lane.b32.xlu1 %v907_v21, %s3205_s28  ;;  %v1035_v21 = vadd.f32 %v1033_v60, %v995_v5 }
0x12be   :  { %v1149_v46 = vpop.xlane.xlu2 %1148 }
0x12c2   :  { %v1032_v18 = vpop.xlane.xlu1 %1031 }
0x12da   :  { %v1224_v55 = vpop.permute.xlu1 %1223 }
0x12db   :  { %v1230_v28 = vsel %vm120_vm1, %v1224_v55, 0.0  ;;  %v1192_v55 = vpop.xlane.xlu0 %1191 }
0x12dc   :  { %1231 = vadd.xlane.f32.xlu2 %v1230_v28 }
0x1305   :  { %v1069_v8 = vpop.xlane.xlu1 %1068 }
0x1306   :  { %v1073_v3 = vmul.f32 %v1069_v8, %v3510_v15 }
0x130d   :  { %v1152_v10 = vpop.xlane.xlu1 %1151 }
0x1315   :  { %v1189_v30 = vpop.xlane.xlu1 %1188 }
0x132d   :  { %v3840_v51 = vpop.permute.xlu1 %909 }
0x132e   :  { %v958_v54 = vmul.f32 %v3840_v51, %v3460_v63  ;;  %v957_v58 = vmul.f32 %v3840_v51, %v3456_v52  ;;  %v913_v53 = vmul.f32 %v3840_v51, %v3407_v61  ;;  %v1075_v63 = vadd.f32 %v1073_v3, %v1035_v21 }
0x132f   :  { %v998_v52 = vmul.f32 %v3840_v51, %v3512_v17  ;;  %v1038_v61 = vmul.f32 %v3840_v51, %v3564_v36  ;;  %v912_v28 = vmul.f32 %v3840_v51, %v3403_v59  ;;  %v1153_v17 = vmul.f32 %v1149_v46, %v3604_v49 }
0x1330   :  { %963 = vrot.lane.b32.xlu0 %v958_v54, %s3204_s19  ;;  %961 = vrot.lane.b32.xlu1 %v957_v58, %s3204_s19  ;;  %v1115_v8 = vadd.f32 %v1113_v37, %v1075_v63  ;;  %v1193_v36 = vmul.f32 %v1189_v30, %v3648_v34  ;;  %v1034_v59 = vmul.f32 %v1032_v18, %v3465_v56 }
0x1331   :  { %918 = vrot.lane.b32.xlu2 %v913_v53, %s3204_s19  ;;  %v1037_v23 = vmul.f32 %v3840_v51, %v3551_v0  ;;  %v1077_v58 = vmul.f32 %v3840_v51, %v3594_v45  ;;  %v1229_v53 = vpop.xlane.xlu0 %1228  ;;  %v997_v5 = vmul.f32 %v3840_v51, %v3505_v50  ;;  %v1074_v0 = vmul.f32 %v1072_v38, %v3510_v15 }
0x1332   :  { %v1155_v54 = vadd.f32 %v1153_v17, %v1115_v8  ;;  %v1036_v29 = vadd.f32 %v1034_v59, %v996_v31  ;;  %v1233_v18 = vmul.f32 %v1229_v53, %v3705_v35  ;;  %v1118_v45 = vmul.f32 %v3840_v51, %v3662_v48 }
0x1333   :  { %v1158_v50 = vmul.f32 %v3840_v51, %v3716_v43  ;;  %v1078_v21 = vmul.f32 %v3840_v51, %v3613_v7  ;;  %v1114_v63 = vmul.f32 %v1112_v4, %v3556_v57  ;;  %v1194_v37 = vmul.f32 %v1192_v55, %v3648_v34 }
0x1334   :  { %v1195_v60 = vadd.f32 %v1193_v36, %v1155_v54  ;;  %v1076_v3 = vadd.f32 %v1074_v0, %v1036_v29  ;;  %v1157_v43 = vmul.f32 %v3840_v51, %v3692_v26  ;;  %v1197_v7 = vmul.f32 %v3840_v51, %v3813_v22 }
0x1335   :  { %v1198_v22 = vmul.f32 %v3840_v51, %v3827_v40 }
0x1336   :  { %v1235_v30 = vadd.f32 %v1233_v18, %v1195_v60  ;;  %v1116_v38 = vadd.f32 %v1114_v63, %v1076_v3  ;;  %v3921_v63 = vld [vmem:[%s4559_s6 + $0x8] sm:$0xff] }
0x1338   :  { %1003 = vrot.lane.b32.xlu0 %v998_v52, %s3204_s19  ;;  %1043 = vrot.lane.b32.xlu1 %v1038_v61, %s3204_s19  ;;  %v1154_v52 = vmul.f32 %v1152_v10, %v3604_v49  ;;  %v1267_v61 = vmin.f32 %v1235_v30, 20.0  ;;  %v1117_v10 = vmul.f32 %v3840_v51, %v3643_v33  ;;  %vm1265_vm5 = vcmp.gt.f32.partialorder %v1235_v30, 20.0 }
0x1339   :  { %916 = vrot.lane.b32.xlu2 %v912_v28, %s3204_s19 }
0x133a   :  { %v1156_v28 = vadd.f32 %v1154_v52, %v1116_v38  ;;  %v1269_v48 = vmul.f32 1.442695, %v1267_v61 }
0x133c   :  { %3011 = vpow2.f32 %v1269_v48  ;;  %v1196_v46 = vadd.f32 %v1194_v37, %v1156_v28 }
0x1340   :  { %1041 = vrot.lane.b32.xlu0 %v1037_v23, %s3204_s19  ;;  %1081 = vrot.lane.b32.xlu1 %v1077_v58, %s3204_s19 }
0x1341   :  { %1001 = vrot.lane.b32.xlu2 %v997_v5, %s3204_s19 }
0x1342   :  { %v3012_v26 = vpop.eup %3011 }
0x1343   :  { %v1273_v33 = vadd.f32 1.0, %v3012_v26  ;;  %v1276_v54 = vmul.f32 -0.5, %v3012_v26  ;;  %v1279_v31 = vand.u32 2147483647, %v3012_v26 }
0x1345   :  { %v1277_v53 = vadd.f32 1.0, %v1276_v54  ;;  %vm1280_vm3 = vcmp.lt.f32.partialorder %v1279_v31, 0.0004427343 }
0x1347   :  { %v1278_v40 = vmul.f32 %v3012_v26, %v1277_v53 }
0x1348   :  { %1123 = vrot.lane.b32.xlu0 %v1118_v45, %s3204_s19  ;;  %1163 = vrot.lane.b32.xlu1 %v1158_v50, %s3204_s19  ;;  %v3911_v50 = vld [vmem:[%s4559_s6] sm:$0xff] }
0x1349   :  { %1083 = vrot.lane.b32.xlu2 %v1078_v21, %s3204_s19 }
0x134f   :  { %v1232_v4 = vpop.xlane.xlu2 %1231 }
0x1350   :  { %v1234_v8 = vmul.f32 %v1232_v4, %v3705_v35  ;;  %1161 = vrot.lane.b32.xlu0 %v1157_v43, %s3204_s19  ;;  %1201 = vrot.lane.b32.xlu1 %v1197_v7, %s3204_s19 }
0x1351   :  { %1121 = vrot.lane.b32.xlu2 %v1117_v10, %s3204_s19 }
0x1352   :  { %v1236_v55 = vadd.f32 %v1234_v8, %v1196_v46  ;;  %v3206_v8 = vmov 0  }
0x1353   :  { %2914 = vset.pattern.permute.xlu0 %v3206_v8  ;;  %2913 = vset.pattern.permute.xlu1 %v3206_v8 }
0x1354   :  { %v1268_v41 = vmin.f32 %v1236_v55, 20.0  ;;  %vm1266_vm4 = vcmp.gt.f32.partialorder %v1236_v55, 20.0  ;;  %2912 = vset.pattern.permute.xlu2 %v3206_v8 }
0x1356   :  { %v1271_v17 = vmul.f32 1.442695, %v1268_v41 }
0x1358   :  { %3013 = vpow2.f32 %v1271_v17 }
0x1359   :  { %1203 = vrot.lane.b32.xlu2 %v1198_v22, %s3204_s19  ;;  %3015 = vlog2.f32 %v1273_v33 }
0x135e   :  { %v3014_v36 = vpop.eup %3013 }
0x135f   :  { %v1282_v11 = vadd.f32 1.0, %v3014_v36  ;;  %v1285_v59 = vmul.f32 -0.5, %v3014_v36  ;;  %v3016_v23 = vpop.eup %3015  ;;  %v1288_v5 = vand.u32 2147483647, %v3014_v36 }
0x1360   :  { %v1275_v60 = vmul.f32 0.6931472, %v3016_v23 }
0x1361   :  { %3017 = vlog2.f32 %v1282_v11  ;;  %v1286_v58 = vadd.f32 1.0, %v1285_v59  ;;  %vm1289_vm2 = vcmp.lt.f32.partialorder %v1288_v5, 0.0004427343 }
0x1362   :  { %v1281_v3 = vsel %vm1280_vm3, %v1278_v40, %v1275_v60 }
0x1363   :  { %v1287_v0 = vmul.f32 %v3014_v36, %v1286_v58  ;;  %v3913_v21 = vsel %vm1265_vm5, %v1235_v30, %v1281_v3  ;;  %v84_v3 = vld [vmem:[%s4560_s7 + $0x8] sm:$0xff] }
0x1367   :  { %v3018_v29 = vpop.eup %3017 }
0x1368   :  { %v1284_v18 = vmul.f32 0.6931472, %v3018_v29 }
0x136a   :  { %v1290_v51 = vsel %vm1289_vm2, %v1287_v0, %v1284_v18 }
0x136b   :  { %v3905_v45 = vsel %vm1266_vm4, %v1236_v55, %v1290_v51  ;;  %v85_v51 = vld [vmem:[%s4561_s8] sm:$0xff] }
0x136c   :  { %1349 = vmatpush.msra.mxu1 %v3905_v45 }
0x136e   :  { %1350 = vmatpush.msra.mxu1 %v3913_v21 }
0x136f   :  { %2854 = vmatmul.msk.f32.vlgmr.msra.gmra.mxu1 %vm1305_vm6, %v3911_v50 }
0x1377   :  { %2855 = vmatmul.msk.f32.gmra.mxu1 %vm1305_vm6, %v3921_v63 }
0x138b   :  { %v919_v52 = vpop.permute.xlu2 %918 }
0x138c   :  { %v925_v61 = vsel %vm120_vm1, %v919_v52, 0.0  ;;  %v83_v52 = vld [vmem:[%s4560_s7] sm:$0xff] }
0x138d   :  { %926 = vadd.xlane.f32.xlu0 %v925_v61  ;;  %v86_v61 = vld [vmem:[%s4561_s8 + $0x8] sm:$0xff]  ;;  %s2888_s8 = sld [smem:[#allocation5 + $0x80]] }
0x1393   :  { %v917_v38 = vpop.permute.xlu2 %916 }
0x1394   :  { %v922_v30 = vsel %vm120_vm1, %v917_v38, 0.0 }
0x1395   :  { %923 = vadd.xlane.f32.xlu1 %v922_v30 }
0x139b   :  { %v1002_v28 = vpop.permute.xlu2 %1001 }
0x139c   :  { %v1007_v48 = vsel %vm120_vm1, %v1002_v28, 0.0  ;;  %v3956_v28 = vld [vmem:[%s4558_s5] sm:$0xff] }
0x139d   :  { %1008 = vadd.xlane.f32.xlu1 %v1007_v48  ;;  %v3963_v48 = vld [vmem:[%s4558_s5 + $0x8] sm:$0xff] }
0x13a2   :  { %v964_v37 = vpop.permute.xlu0 %963  ;;  %v962_v43 = vpop.permute.xlu1 %961 }
0x13a3   :  { %v1084_v7 = vpop.permute.xlu2 %1083  ;;  %v967_v4 = vsel %vm120_vm1, %v962_v43, 0.0  ;;  %v970_v10 = vsel %vm120_vm1, %v964_v37, 0.0 }
0x13a4   :  { %968 = vadd.xlane.f32.xlu0 %v967_v4  ;;  %971 = vadd.xlane.f32.xlu2 %v970_v10  ;;  %v1090_v46 = vsel %vm120_vm1, %v1084_v7, 0.0 }
0x13a5   :  { %1091 = vadd.xlane.f32.xlu1 %v1090_v46 }
0x13aa   :  { %v1004_v55 = vpop.permute.xlu0 %1003  ;;  %v1044_v41 = vpop.permute.xlu1 %1043 }
0x13ab   :  { %v1122_v26 = vpop.permute.xlu2 %1121  ;;  %v1050_v17 = vsel %vm120_vm1, %v1044_v41, 0.0  ;;  %v1010_v22 = vsel %vm120_vm1, %v1004_v55, 0.0 }
0x13ac   :  { %1051 = vadd.xlane.f32.xlu0 %v1050_v17  ;;  %1011 = vadd.xlane.f32.xlu2 %v1010_v22  ;;  %v1127_v33 = vsel %vm120_vm1, %v1122_v26, 0.0 }
0x13ad   :  { %1128 = vadd.xlane.f32.xlu1 %v1127_v33 }
0x13b2   :  { %v1042_v36 = vpop.permute.xlu0 %1041  ;;  %v1082_v11 = vpop.permute.xlu1 %1081 }
0x13b3   :  { %v1204_v59 = vpop.permute.xlu2 %1203  ;;  %v1087_v54 = vsel %vm120_vm1, %v1082_v11, 0.0  ;;  %v1047_v23 = vsel %vm120_vm1, %v1042_v36, 0.0 }
0x13b4   :  { %1088 = vadd.xlane.f32.xlu0 %v1087_v54  ;;  %1048 = vadd.xlane.f32.xlu2 %v1047_v23  ;;  %v1210_v58 = vsel %vm120_vm1, %v1204_v59, 0.0 }
0x13b5   :  { %1211 = vadd.xlane.f32.xlu1 %v1210_v58 }
0x13ba   :  { %v1124_v53 = vpop.permute.xlu0 %1123  ;;  %v1164_v5 = vpop.permute.xlu1 %1163 }
0x13bb   :  { %v1170_v31 = vsel %vm120_vm1, %v1164_v5, 0.0  ;;  %v1130_v60 = vsel %vm120_vm1, %v1124_v53, 0.0 }
0x13bc   :  { %1171 = vadd.xlane.f32.xlu0 %v1170_v31  ;;  %1131 = vadd.xlane.f32.xlu2 %v1130_v60 }
0x13c2   :  { %v1162_v29 = vpop.permute.xlu0 %1161  ;;  %v1202_v18 = vpop.permute.xlu1 %1201 }
0x13c3   :  { %v1207_v0 = vsel %vm120_vm1, %v1202_v18, 0.0  ;;  %v1167_v40 = vsel %vm120_vm1, %v1162_v29, 0.0 }
0x13c4   :  { %1208 = vadd.xlane.f32.xlu0 %v1207_v0  ;;  %1168 = vadd.xlane.f32.xlu2 %v1167_v40 }
0x13ce   :  { %1295 = vperm.xlu1 %2913, %v85_v51  }
0x13d8   :  { %1449 = vperm.xlu0 %2914, %v84_v3  }
0x13dc   :  { %1444 = vperm.xlu2 %2912, %v83_v52  }
0x13e4   :  { %1300 = vperm.xlu2 %2912, %v86_v61  }
0x13ec   :  { %v1352_v38 = vpop.f32.mrf.mxu1 }
0x13f4   :  { %v1355_v30 = vpop.f32.mrf.mxu1 }
0x13f5   :  { %1378 = vmatpush.msrb.mxu2 %v1355_v30 }
0x13f7   :  { %1379 = vmatpush.msrb.mxu2 %v1352_v38 }
0x13f8   :  { %2856 = vmatmul.msk.f32.vlgmr.msrb.gmra.mxu2 %vm1305_vm6, %v3956_v28 }
0x1400   :  { %2857 = vmatmul.msk.f32.gmra.mxu2 %vm1305_vm6, %v3963_v48  ;;  %v927_v43 = vpop.xlane.xlu0 %926 }
0x1401   :  { %v929_v26 = vmul.f32 %v927_v43, %v3312_v6 }
0x1408   :  { %v924_v37 = vpop.xlane.xlu1 %923 }
0x1409   :  { %v928_v54 = vmul.f32 %v924_v37, %v3312_v6 }
0x1410   :  { %v1009_v7 = vpop.xlane.xlu1 %1008 }
0x1411   :  { %v1013_v5 = vmul.f32 %v1009_v7, %v3465_v56 }
0x1417   :  { %v969_v4 = vpop.xlane.xlu0 %968  ;;  %v972_v10 = vpop.xlane.xlu2 %971 }
0x1418   :  { %v1092_v46 = vpop.xlane.xlu1 %1091  ;;  %v974_v41 = vmul.f32 %v972_v10, %v3412_v62  ;;  %v973_v22 = vmul.f32 %v969_v4, %v3412_v62 }
0x1419   :  { %v1094_v29 = vmul.f32 %v1092_v46, %v3556_v57 }
0x141a   :  { %v976_v33 = vadd.f32 %v974_v41, %v929_v26  ;;  %v975_v58 = vadd.f32 %v973_v22, %v928_v54 }
0x141c   :  { %v1015_v18 = vadd.f32 %v1013_v5, %v975_v58 }
0x141f   :  { %v1052_v8 = vpop.xlane.xlu0 %1051  ;;  %v1012_v55 = vpop.xlane.xlu2 %1011 }
0x1420   :  { %v1014_v17 = vmul.f32 %v1012_v55, %v3465_v56  ;;  %v1129_v36 = vpop.xlane.xlu1 %1128  ;;  %v1054_v53 = vmul.f32 %v1052_v8, %v3510_v15 }
0x1421   :  { %v1133_v10 = vmul.f32 %v1129_v36, %v3604_v49 }
0x1422   :  { %v1016_v23 = vadd.f32 %v1014_v17, %v976_v33 }
0x1424   :  { %v1056_v31 = vadd.f32 %v1054_v53, %v1016_v23 }
0x1426   :  { %v1096_v3 = vadd.f32 %v1094_v29, %v1056_v31 }
0x1427   :  { %v1089_v11 = vpop.xlane.xlu0 %1088  ;;  %v1049_v59 = vpop.xlane.xlu2 %1048 }
0x1428   :  { %v1053_v60 = vmul.f32 %v1049_v59, %v3510_v15  ;;  %v1212_v61 = vpop.xlane.xlu1 %1211  ;;  %v1093_v38 = vmul.f32 %v1089_v11, %v3556_v57 }
0x1429   :  { %v1214_v43 = vmul.f32 %v1212_v61, %v3705_v35 }
0x142a   :  { %v1055_v51 = vadd.f32 %v1053_v60, %v1015_v18 }
0x142c   :  { %v1095_v7 = vadd.f32 %v1093_v38, %v1055_v51 }
0x142e   :  { %v1135_v26 = vadd.f32 %v1133_v10, %v1095_v7 }
0x142f   :  { %v1172_v0 = vpop.xlane.xlu0 %1171  ;;  %v1132_v40 = vpop.xlane.xlu2 %1131 }
0x1430   :  { %v1134_v52 = vmul.f32 %v1132_v40, %v3604_v49  ;;  %v1174_v30 = vmul.f32 %v1172_v0, %v3648_v34 }
0x1432   :  { %v1136_v37 = vadd.f32 %v1134_v52, %v1096_v3 }
0x1434   :  { %v1176_v4 = vadd.f32 %v1174_v30, %v1136_v37 }
0x1436   :  { %v1216_v46 = vadd.f32 %v1214_v43, %v1176_v4 }
0x1437   :  { %v1209_v8 = vpop.xlane.xlu0 %1208  ;;  %v1169_v55 = vpop.xlane.xlu2 %1168 }
0x1438   :  { %v1240_v41 = vmin.f32 %v1216_v46, 20.0  ;;  %v1173_v17 = vmul.f32 %v1169_v55, %v3648_v34  ;;  %v1213_v33 = vmul.f32 %v1209_v8, %v3705_v35  ;;  %vm1238_vm8 = vcmp.gt.f32.partialorder %v1216_v46, 20.0 }
0x143a   :  { %v1243_v22 = vmul.f32 1.442695, %v1240_v41  ;;  %v1175_v11 = vadd.f32 %v1173_v17, %v1135_v26 }
0x143c   :  { %3019 = vpow2.f32 %v1243_v22  ;;  %v1215_v59 = vadd.f32 %v1213_v33, %v1175_v11 }
0x143e   :  { %v1239_v54 = vmin.f32 %v1215_v59, 20.0  ;;  %vm1237_vm10 = vcmp.gt.f32.partialorder %v1215_v59, 20.0 }
0x1440   :  { %v1241_v23 = vmul.f32 1.442695, %v1239_v54 }
0x1442   :  { %v3020_v58 = vpop.eup %3019  ;;  %3021 = vpow2.f32 %v1241_v23 }
0x1443   :  { %v1254_v53 = vadd.f32 1.0, %v3020_v58  ;;  %v1257_v5 = vmul.f32 -0.5, %v3020_v58  ;;  %v1260_v29 = vand.u32 2147483647, %v3020_v58 }
0x1445   :  { %3023 = vlog2.f32 %v1254_v53  ;;  %v1258_v31 = vadd.f32 1.0, %v1257_v5  ;;  %vm1261_vm7 = vcmp.lt.f32.partialorder %v1260_v29, 0.0004427343 }
0x1447   :  { %v1259_v51 = vmul.f32 %v3020_v58, %v1258_v31 }
0x1448   :  { %v3022_v36 = vpop.eup %3021 }
0x1449   :  { %v1245_v60 = vadd.f32 1.0, %v3022_v36  ;;  %v1248_v18 = vmul.f32 -0.5, %v3022_v36  ;;  %v1251_v61 = vand.u32 2147483647, %v3022_v36 }
0x144b   :  { %v3024_v0 = vpop.eup %3023  ;;  %3025 = vlog2.f32 %v1245_v60  ;;  %v1249_v3 = vadd.f32 1.0, %v1248_v18  ;;  %vm1252_vm9 = vcmp.lt.f32.partialorder %v1251_v61, 0.0004427343  ;;  %v4018_v61 = vpop.permute.xlu2 %1444 }
0x144c   :  { %v1256_v40 = vmul.f32 0.6931472, %v3024_v0 }
0x144d   :  { %v1250_v43 = vmul.f32 %v3022_v36, %v1249_v3  ;;  %v1483_v3 = vld [vmem:[#allocation2 + $0x30] sm:$0xff] }
0x144e   :  { %v1262_v52 = vsel %vm1261_vm7, %v1259_v51, %v1256_v40  ;;  %v1484_v51 = vld [vmem:[#allocation2 + $0x38] sm:$0xff] }
0x144f   :  { %v3983_v38 = vsel %vm1238_vm8, %v1216_v46, %v1262_v52  ;;  %1608 = vmatpush.msrb.mxu1 %v1484_v51  ;;  %1701 = vmatpush.msra.mxu2 %v1484_v51  ;;  %v1482_v52 = vld [vmem:[#allocation2 + $0x28] sm:$0xff] }
0x1450   :  { %1326 = vmatpush.msra.mxu0 %v3983_v38  ;;  %1433 = vmatpush.msrb.mxu3 %v3983_v38 }
0x1451   :  { %v3026_v30 = vpop.eup %3025  ;;  %1609 = vmatpush.msrb.mxu1 %v1483_v3  ;;  %1702 = vmatpush.msra.mxu2 %v1483_v3 }
0x1452   :  { %v1247_v37 = vmul.f32 0.6931472, %v3026_v30  ;;  %v4022_v30 = vpop.permute.xlu1 %1295 }
0x1453   :  { %1610 = vmatpush.msrb.mxu1 %v1482_v52  ;;  %1703 = vmatpush.msra.mxu2 %v1482_v52 }
0x1454   :  { %v1253_v7 = vsel %vm1252_vm9, %v1250_v43, %v1247_v37 }
0x1455   :  { %v3987_v4 = vsel %vm1237_vm10, %v1215_v59, %v1253_v7 }
0x1456   :  { %1327 = vmatpush.msra.mxu0 %v3987_v4  ;;  %1434 = vmatpush.msrb.mxu3 %v3987_v4 }
0x1457   :  { %2852 = vmatmul.msk.f32.vlgmr.msra.gmra.mxu0 %vm1305_vm6, %v3911_v50  ;;  %2858 = vmatmul.msk.f32.vlgmr.msrb.gmra.mxu3 %vm1305_vm6, %v3956_v28 }
0x1458   :  { %1515 = vmatpush.msrb.mxu0 %v1484_v51  ;;  %1794 = vmatpush.msra.mxu3 %v1484_v51 }
0x145a   :  { %1516 = vmatpush.msrb.mxu0 %v1483_v3  ;;  %1795 = vmatpush.msra.mxu3 %v1483_v3 }
0x145c   :  { %1517 = vmatpush.msrb.mxu0 %v1482_v52  ;;  %1796 = vmatpush.msra.mxu3 %v1482_v52 }
0x145f   :  { %2853 = vmatmul.msk.f32.gmra.mxu0 %vm1305_vm6, %v3921_v63  ;;  %2859 = vmatmul.msk.f32.gmra.mxu3 %vm1305_vm6, %v3963_v48  ;;  %v1387_v48 = vadd.f32 1e-09, %v3913_v21  ;;  %v1388_v21 = vadd.f32 1e-09, %v3905_v45  ;;  %v1481_v45 = vld [vmem:[#allocation2 + $0x20] sm:$0xff] }
0x1460   :  { %1518 = vmatpush.msrb.mxu0 %v1481_v45  ;;  %1611 = vmatpush.msrb.mxu1 %v1481_v45 }
0x1461   :  { %1704 = vmatpush.msra.mxu2 %v1481_v45  ;;  %1797 = vmatpush.msra.mxu3 %v1481_v45 }
0x1462   :  { %1887 = vmatpush.msra.mxu0 %v1484_v51  ;;  %1980 = vmatpush.msra.mxu1 %v1484_v51 }
0x1463   :  { %2073 = vmatpush.msrb.mxu2 %v1484_v51  ;;  %2166 = vmatpush.msrb.mxu3 %v1484_v51 }
0x1464   :  { %1888 = vmatpush.msra.mxu0 %v1483_v3  ;;  %1981 = vmatpush.msra.mxu1 %v1483_v3 }
0x1465   :  { %2074 = vmatpush.msrb.mxu2 %v1483_v3  ;;  %2167 = vmatpush.msrb.mxu3 %v1483_v3 }
0x1466   :  { %1889 = vmatpush.msra.mxu0 %v1482_v52  ;;  %1982 = vmatpush.msra.mxu1 %v1482_v52 }
0x1467   :  { %1519 = vmatmul.f32.vlgmr.msrb.gmra.mxu0 %v3202_v16  ;;  %2075 = vmatpush.msrb.mxu2 %v1482_v52 }
0x1468   :  { %1890 = vmatpush.msra.mxu0 %v1481_v45  ;;  %2168 = vmatpush.msrb.mxu3 %v1482_v52 }
0x1469   :  { %1983 = vmatpush.msra.mxu1 %v1481_v45  ;;  %2076 = vmatpush.msrb.mxu2 %v1481_v45 }
0x146a   :  { %2169 = vmatpush.msrb.mxu3 %v1481_v45 }
0x146f   :  { %1522 = vmatmul.f32.gmra.mxu0 %v3202_v16  ;;  %v1452_v16 = vmul.f32 %v4018_v61, %v3987_v4 }
0x147b   :  { %v1381_v10 = vpop.f32.mrf.mxu2 }
0x147c   :  { %v1382_v46 = vadd.f32 3e-09, %v1381_v10  ;;  %v1461_v10 = vstv %s4014_s30  ;;  %s2890_s30 = sld [smem:[#allocation5 + $0x82]] }
0x147e   :  { %3027 = vrcp.f32 %v1382_v46  ;;  %v1400_v17 = vand.u32 2147483648, %v1382_v46  ;;  %vm1394_vm11 = vweird.f32 %v1382_v46  ;;  %v1398_v50 = vand.u32 2147483647, %v1382_v46 }
0x1480   :  { %v1401_v33 = vor.u32 1.1754944e-38, %v1400_v17  ;;  %vm1399_vm14 = vcmp.eq.f32.partialorder %v1398_v50, 8.507059e+37  ;;  %v1473_v17 = vstv %s4020_s16  ;;  %v3152_v50 = vld [vmem:[%s4553_s0] sm:$0xff] }
0x1483   :  { %v1384_v8 = vpop.f32.mrf.mxu2 }
0x1484   :  { %v3028_v55 = vpop.eup %3027  ;;  %v1385_v41 = vadd.f32 3e-09, %v1384_v8 }
0x1485   :  { %v1390_v26 = vmul.f32 %v3028_v55, %v1382_v46  ;;  %vm1395_vm12 = vweird.f32 %v3028_v55  ;;  %v1303_v46 = vmul.f32 %v4022_v30, %v3987_v4 }
0x1486   :  { %3029 = vrcp.f32 %v1385_v41  ;;  %vm1396_vm13 = vmor %vm1394_vm11, %vm1395_vm12  ;;  %vm1409_vm15 = vweird.f32 %v1385_v41  ;;  %v1415_v58 = vand.u32 2147483648, %v1385_v41  ;;  %v1413_v36 = vand.u32 2147483647, %v1385_v41 }
0x1487   :  { %v1391_v22 = vsub.f32 1.0, %v1390_v26  ;;  %v4029_v26 = vpop.permute.xlu0 %1449 }
0x1488   :  { %v1416_v60 = vor.u32 1.1754944e-38, %v1415_v58  ;;  %vm1414_vm4 = vcmp.eq.f32.partialorder %v1413_v36, 8.507059e+37 }
0x1489   :  { %v1392_v28 = vmul.f32 %v3028_v55, %v1391_v22  ;;  %v1467_v22 = vstv %s4016_s15 }
0x148b   :  { %v1393_v63 = vadd.f32 %v3028_v55, %v1392_v28 }
0x148c   :  { %v3030_v11 = vpop.eup %3029 }
0x148d   :  { %v1405_v59 = vmul.f32 %v3030_v11, %v1385_v41  ;;  %v1397_v54 = vsel %vm1396_vm13, %v3028_v55, %v1393_v63  ;;  %vm1410_vm2 = vweird.f32 %v3030_v11  ;;  %v4037_v63 = vpop.permute.xlu2 %1300 }
0x148e   :  { %v1402_v23 = vsel %vm1399_vm14, %v1401_v33, %v1397_v54  ;;  %vm1411_vm3 = vmor %vm1409_vm15, %vm1410_vm2  ;;  %v1468_v33 = vmul.f32 %v1467_v22, %v3987_v4 }
0x148f   :  { %v1406_v53 = vsub.f32 1.0, %v1405_v59  ;;  %v1403_v5 = vmul.f32 %v1402_v23, %v1387_v48  ;;  %v1453_v48 = vmul.f32 %v4029_v26, %v3983_v38 }
0x1491   :  { %1458 = vst.msk [vmem:[%s4567_s14] sm:$0xff] %vm97_vm0, %v1403_v5  ;;  %v1407_v31 = vmul.f32 %v3030_v11, %v1406_v53 }
0x1493   :  { %v1408_v29 = vadd.f32 %v3030_v11, %v1407_v31 }
0x1495   :  { %v1412_v18 = vsel %vm1411_vm3, %v3030_v11, %v1408_v29  ;;  %v3153_v29 = vld [vmem:[%s4553_s0 + $0x8] sm:$0xff] }
0x1496   :  { %v1417_v0 = vsel %vm1414_vm4, %v1416_v60, %v1412_v18  ;;  %v1469_v18 = vmul.f32 %v1467_v22, %v3983_v38 }
0x1497   :  { %v4005_v40 = vmul.f32 %v1417_v0, %v1388_v21 }
0x1499   :  { %1459 = vst.msk [vmem:[%s4567_s14 + $0x8] sm:$0xff] %vm97_vm0, %v4005_v40 }
0x14d4   :  { %v1329_v37 = vpop.f32.mrf.mxu0 }
0x14d5   :  { %v1330_v55 = vadd.f32 %v1329_v37, %v1303_v46  ;;  %v2862_v37 = vld [vmem:[%s4555_s2 + $0x2] sm:$0x3] }
0x14d7   :  { %v1474_v59 = vmul.f32 %v1473_v17, %v1330_v55 }
0x14da   :  { %v1436_v43 = vpop.f32.mrf.mxu3 }
0x14db   :  { %v1454_v7 = vmul.f32 %v1436_v43, %v1403_v5  ;;  %v1304_v5 = vmul.f32 %v4037_v63, %v3983_v38  ;;  %v4061_v43 = vperm.slane %v2862_v37, 1  ;;  %v4063_v38 = vperm.slane %v2862_v37, 0 }
0x14dc   :  { %v1332_v58 = vpop.f32.mrf.mxu0 }
0x14dd   :  { %v1456_v8 = vadd.f32 %v1454_v7, %v1452_v16  ;;  %v1333_v31 = vadd.f32 %v1332_v58, %v1304_v5 }
0x14df   :  { %v1462_v41 = vmul.f32 %v1461_v10, %v1456_v8 }
0x14e1   :  { %v1464_v28 = vadd.f32 %v3152_v50, %v1462_v41 }
0x14e2   :  { %v1439_v11 = vpop.f32.mrf.mxu3 }
0x14e3   :  { %v1470_v54 = vadd.f32 %v1468_v33, %v1464_v28  ;;  %v1455_v23 = vmul.f32 %v1439_v11, %v4005_v40  ;;  %v1475_v40 = vmul.f32 %v1473_v17, %v1333_v31  ;;  %v1500_v17 = vmul.f32 %v4061_v43, %v3386_v27 }
0x14e4   :  { %v1520_v7 = vpop.f32.mrf.mxu0 }
0x14e5   :  { %v4042_v53 = vadd.f32 %v1474_v59, %v1470_v54  ;;  %v1457_v36 = vadd.f32 %v1455_v23, %v1453_v48 }
0x14e7   :  { %v1463_v60 = vmul.f32 %v1461_v10, %v1457_v36  ;;  %v1487_v4 = vmul.f32 %v4042_v53, %v3312_v6  ;;  %v1499_v10 = vmul.f32 %v4061_v43, %v3381_v24 }
0x14e9   :  { %v1465_v21 = vadd.f32 %v3153_v29, %v1463_v60  ;;  %v1489_v0 = vsel %vm97_vm0, %v1487_v4, 0.0 }
0x14ea   :  { %1490 = vadd.xlane.f32.xlu1 %v1489_v0 }
0x14eb   :  { %v1471_v51 = vadd.f32 %v1469_v18, %v1465_v21 }
0x14ec   :  { %v1523_v50 = vpop.f32.mrf.mxu0 }
0x14ed   :  { %v4053_v3 = vadd.f32 %v1475_v40, %v1471_v51 }
0x14ef   :  { %v1488_v52 = vmul.f32 %v4053_v3, %v3312_v6 }
0x14f1   :  { %v1492_v45 = vsel %vm97_vm0, %v1488_v52, 0.0 }
0x14f2   :  { %1493 = vadd.xlane.f32.xlu2 %v1492_v45 }
0x155d   :  { %v1491_v16 = vpop.xlane.xlu1 %1490 }
0x155e   :  { %v1496_v46 = vmul.f32 %v4063_v38, %v1491_v16  ;;  %v1573_v16 = vmul.f32 %v4053_v3, %v3412_v62 }
0x1560   :  { %v1501_v8 = vadd.f32 %v1499_v10, %v1496_v46 }
0x1562   :  { %v1526_v55 = vadd.f32 %v1520_v7, %v1501_v8  ;;  %v1577_v7 = vsel %vm97_vm0, %v1573_v16, 0.0 }
0x1564   :  { %3031 = vtanh.f32 %v1526_v55  ;;  %v1528_v24 = vmul.f32 0.5, %v1526_v55 }
0x1565   :  { %v1494_v41 = vpop.xlane.xlu2 %1493 }
0x1566   :  { %v1497_v22 = vmul.f32 %v4063_v38, %v1494_v41  ;;  %v1572_v41 = vmul.f32 %v4042_v53, %v3412_v62 }
0x1568   :  { %v1502_v28 = vadd.f32 %v1500_v17, %v1497_v22  ;;  %v1574_v17 = vsel %vm97_vm0, %v1572_v41, 0.0 }
0x156a   :  { %v3032_v33 = vpop.eup %3031  ;;  %v1527_v11 = vadd.f32 %v1523_v50, %v1502_v28 }
0x156b   :  { %1542 = vrot.lane.b32.xlu0 %v3032_v33, %s3203_s18 }
0x156c   :  { %3033 = vtanh.f32 %v1527_v11  ;;  %v1529_v59 = vmul.f32 0.5, %v1527_v11  ;;  %v1582_v11 = vmul.f32 %v4061_v43, %v3432_v20 }
0x156d   :  { %3035 = vtanh.f32 %v1528_v24 }
0x156e   :  { %3037 = vtanh.f32 %v1529_v59 }
0x1572   :  { %v3034_v48 = vpop.eup %3033 }
0x1573   :  { %1544 = vrot.lane.b32.xlu0 %v3034_v48, %s3203_s18  ;;  %v3036_v54 = vpop.eup %3035 }
0x1574   :  { %v1532_v23 = vmul.f32 0.5, %v3036_v54  ;;  %v3038_v27 = vpop.eup %3037 }
0x1575   :  { %v1533_v31 = vmul.f32 0.5, %v3038_v27 }
0x1576   :  { %v1534_v58 = vadd.f32 0.5, %v1532_v23 }
0x1577   :  { %v1535_v60 = vadd.f32 0.5, %v1533_v31 }
0x1578   :  { %v1538_v21 = vmul.f32 0.0, %v1534_v58 }
0x1579   :  { %v1539_v40 = vmul.f32 0.0, %v1535_v60 }
0x15dd   :  { %v1543_v5 = vpop.permute.xlu0 %1542 }
0x15de   :  { %v1548_v36 = vmul.f32 %v1543_v5, %v1534_v58 }
0x15e0   :  { %1552 = vrot.lane.b32.xlu0 %v1548_v36, %s3204_s19 }
0x15e5   :  { %v1545_v4 = vpop.permute.xlu0 %1544 }
0x15e6   :  { %v1549_v29 = vmul.f32 %v1545_v4, %v1535_v60 }
0x15e8   :  { %1554 = vrot.lane.b32.xlu0 %v1549_v29, %s3204_s19 }
0x1652   :  { %v1553_v18 = vpop.permute.xlu0 %1552 }
0x1653   :  { %v1558_v0 = vadd.f32 %v1553_v18, %v1538_v21 }
0x1655   :  { %3039 = vtanh.f32 %v1558_v0 }
0x165a   :  { %v1555_v51 = vpop.permute.xlu0 %1554 }
0x165b   :  { %v3040_v52 = vpop.eup %3039  ;;  %v1559_v45 = vadd.f32 %v1555_v51, %v1539_v40 }
0x165c   :  { %1564 = vrot.lane.b32.xlu1 %v3040_v52, %s3203_s18 }
0x165d   :  { %3041 = vtanh.f32 %v1559_v45 }
0x1663   :  { %v3042_v37 = vpop.eup %3041 }
0x1664   :  { %1566 = vrot.lane.b32.xlu2 %v3042_v37, %s3203_s18 }
0x1686   :  { %1578 = vadd.xlane.f32.xlu1 %v1577_v7 }
0x16be   :  { %v1567_v8 = vpop.permute.xlu2 %1566 }
0x16bf   :  { %v4084_v55 = vmul.f32 %v1567_v8, %v1535_v60 }
0x16ce   :  { %v1565_v10 = vpop.permute.xlu1 %1564 }
0x16cf   :  { %v4080_v46 = vmul.f32 %v1565_v10, %v1534_v58  ;;  %v1583_v58 = vmul.f32 %v4061_v43, %v3438_v1 }
0x16d1   :  { %1588 = vrot.lane.b32.xlu0 %v4080_v46, %s3204_s19 }
0x16d9   :  { %1590 = vrot.lane.b32.xlu0 %v4084_v55, %s3204_s19 }
0x16f9   :  { %v1579_v24 = vpop.xlane.xlu1 %1578 }
0x16fa   :  { %v1581_v23 = vmul.f32 %v1579_v24, %v4063_v38 }
0x16fc   :  { %v1585_v27 = vadd.f32 %v1583_v58, %v1581_v23 }
0x1703   :  { %1575 = vadd.xlane.f32.xlu0 %v1574_v17 }
0x1743   :  { %v1589_v22 = vpop.permute.xlu0 %1588 }
0x1744   :  { %2864 = vmatmul.msk.f32.vlgmr.msrb.gmra.mxu1 %vm120_vm1, %v1589_v22 }
0x174b   :  { %v1591_v50 = vpop.permute.xlu0 %1590 }
0x174c   :  { %2865 = vmatmul.msk.f32.gmra.mxu1 %vm120_vm1, %v1591_v50 }
0x1776   :  { %v1576_v28 = vpop.xlane.xlu0 %1575 }
0x1777   :  { %v1580_v33 = vmul.f32 %v1576_v28, %v4063_v38 }
0x1779   :  { %v1584_v48 = vadd.f32 %v1582_v11, %v1580_v33  ;;  %v1666_v11 = vmul.f32 %v4053_v3, %v3465_v56 }
0x17c1   :  { %v1613_v59 = vpop.f32.mrf.mxu1 }
0x17c2   :  { %v1619_v54 = vadd.f32 %v1613_v59, %v1584_v48  ;;  %v1670_v48 = vsel %vm97_vm0, %v1666_v11, 0.0 }
0x17c4   :  { %3043 = vtanh.f32 %v1619_v54  ;;  %v1621_v20 = vmul.f32 0.5, %v1619_v54  ;;  %v1665_v54 = vmul.f32 %v4042_v53, %v3465_v56 }
0x17c6   :  { %v1667_v23 = vsel %vm97_vm0, %v1665_v54, 0.0 }
0x17c9   :  { %v1616_v5 = vpop.f32.mrf.mxu1 }
0x17ca   :  { %v3044_v36 = vpop.eup %3043  ;;  %v1620_v31 = vadd.f32 %v1616_v5, %v1585_v27 }
0x17cb   :  { %1635 = vrot.lane.b32.xlu2 %v3044_v36, %s3203_s18 }
0x17cc   :  { %3045 = vtanh.f32 %v1620_v31  ;;  %v1622_v4 = vmul.f32 0.5, %v1620_v31  ;;  %v1675_v31 = vmul.f32 %v4061_v43, %v3481_v25 }
0x17cd   :  { %3047 = vtanh.f32 %v1621_v20 }
0x17ce   :  { %3049 = vtanh.f32 %v1622_v4 }
0x17d2   :  { %v3046_v60 = vpop.eup %3045 }
0x17d3   :  { %1637 = vrot.lane.b32.xlu2 %v3046_v60, %s3203_s18  ;;  %v3048_v29 = vpop.eup %3047 }
0x17d4   :  { %v1625_v21 = vmul.f32 0.5, %v3048_v29  ;;  %v3050_v40 = vpop.eup %3049 }
0x17d5   :  { %v1626_v52 = vmul.f32 0.5, %v3050_v40 }
0x17d6   :  { %v1627_v18 = vadd.f32 0.5, %v1625_v21 }
0x17d7   :  { %v1628_v37 = vadd.f32 0.5, %v1626_v52 }
0x17d8   :  { %v1631_v10 = vmul.f32 %v1627_v18, %v1558_v0 }
0x17d9   :  { %v1632_v17 = vmul.f32 %v1628_v37, %v1559_v45 }
0x1825   :  { %v1636_v51 = vpop.permute.xlu2 %1635 }
0x1826   :  { %v1641_v1 = vmul.f32 %v1636_v51, %v1627_v18 }
0x1828   :  { %1645 = vrot.lane.b32.xlu2 %v1641_v1, %s3204_s19 }
0x182d   :  { %v1638_v16 = vpop.permute.xlu2 %1637 }
0x182e   :  { %v1642_v7 = vmul.f32 %v1638_v16, %v1628_v37 }
0x1830   :  { %1647 = vrot.lane.b32.xlu2 %v1642_v7, %s3204_s19 }
0x1882   :  { %v1646_v8 = vpop.permute.xlu2 %1645 }
0x1883   :  { %v1651_v41 = vadd.f32 %v1646_v8, %v1631_v10 }
0x1885   :  { %3051 = vtanh.f32 %v1651_v41 }
0x188a   :  { %v1648_v22 = vpop.permute.xlu2 %1647 }
0x188b   :  { %v3052_v50 = vpop.eup %3051  ;;  %v1652_v28 = vadd.f32 %v1648_v22, %v1632_v17 }
0x188c   :  { %1657 = vrot.lane.b32.xlu2 %v3052_v50, %s3203_s18 }
0x188d   :  { %3053 = vtanh.f32 %v1652_v28 }
0x1893   :  { %v3054_v33 = vpop.eup %3053 }
0x1894   :  { %1659 = vrot.lane.b32.xlu0 %v3054_v33, %s3203_s18 }
0x18be   :  { %1671 = vadd.xlane.f32.xlu0 %v1670_v48 }
0x18e6   :  { %v1658_v0 = vpop.permute.xlu2 %1657 }
0x18e7   :  { %v4108_v24 = vmul.f32 %v1658_v0, %v1627_v18  ;;  %v1676_v18 = vmul.f32 %v4061_v43, %v3487_v32 }
0x18e9   :  { %1681 = vrot.lane.b32.xlu1 %v4108_v24, %s3204_s19 }
0x1906   :  { %v1660_v45 = vpop.permute.xlu0 %1659 }
0x1907   :  { %v4112_v59 = vmul.f32 %v1660_v45, %v1628_v37 }
0x1909   :  { %1683 = vrot.lane.b32.xlu2 %v4112_v59, %s3204_s19 }
0x1931   :  { %v1672_v20 = vpop.xlane.xlu0 %1671 }
0x1932   :  { %1668 = vadd.xlane.f32.xlu2 %v1667_v23  ;;  %v1674_v21 = vmul.f32 %v1672_v20, %v4063_v38 }
0x1934   :  { %v1678_v40 = vadd.f32 %v1676_v18, %v1674_v21 }
0x195b   :  { %v1682_v58 = vpop.permute.xlu1 %1681 }
0x195c   :  { %2866 = vmatmul.msk.f32.vlgmr.msra.gmra.mxu2 %vm120_vm1, %v1682_v58 }
0x1963   :  { %v1684_v27 = vpop.permute.xlu2 %1683 }
0x1964   :  { %2867 = vmatmul.msk.f32.gmra.mxu2 %vm120_vm1, %v1684_v27 }
0x19a5   :  { %v1669_v5 = vpop.xlane.xlu2 %1668 }
0x19a6   :  { %v1673_v36 = vmul.f32 %v1669_v5, %v4063_v38 }
0x19a8   :  { %v1677_v60 = vadd.f32 %v1675_v31, %v1673_v36  ;;  %v1759_v31 = vmul.f32 %v4053_v3, %v3510_v15 }
0x19df   :  { %v1706_v4 = vpop.f32.mrf.mxu2 }
0x19e0   :  { %v1712_v29 = vadd.f32 %v1706_v4, %v1677_v60  ;;  %v1763_v60 = vsel %vm97_vm0, %v1759_v31, 0.0 }
0x19e2   :  { %3055 = vtanh.f32 %v1712_v29  ;;  %v1714_v25 = vmul.f32 0.5, %v1712_v29  ;;  %v1758_v29 = vmul.f32 %v4042_v53, %v3510_v15 }
0x19e4   :  { %v1760_v21 = vsel %vm97_vm0, %v1758_v29, 0.0 }
0x19e7   :  { %v1709_v51 = vpop.f32.mrf.mxu2 }
0x19e8   :  { %v3056_v1 = vpop.eup %3055  ;;  %v1713_v52 = vadd.f32 %v1709_v51, %v1678_v40 }
0x19e9   :  { %1728 = vrot.lane.b32.xlu1 %v3056_v1, %s3203_s18 }
0x19ea   :  { %3057 = vtanh.f32 %v1713_v52  ;;  %v1715_v16 = vmul.f32 0.5, %v1713_v52  ;;  %v1768_v52 = vmul.f32 %v4061_v43, %v3530_v9 }
0x19eb   :  { %3059 = vtanh.f32 %v1714_v25 }
0x19ec   :  { %3061 = vtanh.f32 %v1715_v16 }
0x19f0   :  { %v3058_v37 = vpop.eup %3057 }
0x19f1   :  { %1730 = vrot.lane.b32.xlu1 %v3058_v37, %s3203_s18  ;;  %v3060_v7 = vpop.eup %3059 }
0x19f2   :  { %v1718_v10 = vmul.f32 0.5, %v3060_v7  ;;  %v3062_v17 = vpop.eup %3061 }
0x19f3   :  { %v1719_v50 = vmul.f32 0.5, %v3062_v17  ;;  %v1769_v17 = vmul.f32 %v4061_v43, %v3536_v39 }
0x19f4   :  { %v1720_v8 = vadd.f32 0.5, %v1718_v10 }
0x19f5   :  { %v1721_v33 = vadd.f32 0.5, %v1719_v50 }
0x19f6   :  { %v1724_v0 = vmul.f32 %v1720_v8, %v1651_v41 }
0x19f7   :  { %v1725_v23 = vmul.f32 %v1721_v33, %v1652_v28 }
0x1a5b   :  { %v1729_v22 = vpop.permute.xlu1 %1728 }
0x1a5c   :  { %v1734_v32 = vmul.f32 %v1729_v22, %v1720_v8 }
0x1a5e   :  { %1738 = vrot.lane.b32.xlu1 %v1734_v32, %s3204_s19 }
0x1a63   :  { %v1731_v11 = vpop.permute.xlu1 %1730 }
0x1a64   :  { %v1735_v48 = vmul.f32 %v1731_v11, %v1721_v33 }
0x1a66   :  { %1740 = vrot.lane.b32.xlu1 %v1735_v48, %s3204_s19 }
0x1ad0   :  { %v1739_v45 = vpop.permute.xlu1 %1738 }
0x1ad1   :  { %v1744_v54 = vadd.f32 %v1739_v45, %v1724_v0 }
0x1ad3   :  { %3063 = vtanh.f32 %v1744_v54 }
0x1ad8   :  { %v1741_v58 = vpop.permute.xlu1 %1740 }
0x1ad9   :  { %v3064_v27 = vpop.eup %3063  ;;  %v1745_v5 = vadd.f32 %v1741_v58, %v1725_v23 }
0x1ada   :  { %1750 = vrot.lane.b32.xlu2 %v3064_v27, %s3203_s18 }
0x1adb   :  { %3065 = vtanh.f32 %v1745_v5 }
0x1ae1   :  { %v3066_v36 = vpop.eup %3065 }
0x1ae2   :  { %1752 = vrot.lane.b32.xlu1 %v3066_v36, %s3203_s18 }
0x1b03   :  { %1764 = vadd.xlane.f32.xlu2 %v1763_v60 }
0x1b34   :  { %v1751_v41 = vpop.permute.xlu2 %1750 }
0x1b35   :  { %v4136_v20 = vmul.f32 %v1751_v41, %v1720_v8 }
0x1b37   :  { %1774 = vrot.lane.b32.xlu0 %v4136_v20, %s3204_s19 }
0x1b54   :  { %v1753_v28 = vpop.permute.xlu1 %1752 }
0x1b55   :  { %v4140_v4 = vmul.f32 %v1753_v28, %v1721_v33 }
0x1b57   :  { %1776 = vrot.lane.b32.xlu1 %v4140_v4, %s3204_s19 }
0x1b76   :  { %v1765_v10 = vpop.xlane.xlu2 %1764 }
0x1b77   :  { %v1767_v8 = vmul.f32 %v1765_v10, %v4063_v38 }
0x1b79   :  { %v1771_v22 = vadd.f32 %v1769_v17, %v1767_v8 }
0x1b81   :  { %1761 = vadd.xlane.f32.xlu1 %v1760_v21 }
0x1ba9   :  { %v1775_v18 = vpop.permute.xlu0 %1774 }
0x1baa   :  { %2868 = vmatmul.msk.f32.vlgmr.msra.gmra.mxu3 %vm120_vm1, %v1775_v18 }
0x1bc9   :  { %v1777_v40 = vpop.permute.xlu1 %1776 }
0x1bca   :  { %2869 = vmatmul.msk.f32.gmra.mxu3 %vm120_vm1, %v1777_v40 }
0x1bf4   :  { %v1762_v51 = vpop.xlane.xlu1 %1761 }
0x1bf5   :  { %v1766_v1 = vmul.f32 %v1762_v51, %v4063_v38 }
0x1bf7   :  { %v1770_v37 = vadd.f32 %v1768_v52, %v1766_v1 }
0x1c2d   :  { %v1799_v25 = vpop.f32.mrf.mxu3 }
0x1c2e   :  { %v1805_v16 = vadd.f32 %v1799_v25, %v1770_v37 }
0x1c30   :  { %3067 = vtanh.f32 %v1805_v16  ;;  %v1807_v9 = vmul.f32 0.5, %v1805_v16 }
0x1c36   :  { %v3068_v7 = vpop.eup %3067 }
0x1c37   :  { %1821 = vrot.lane.b32.xlu0 %v3068_v7, %s3203_s18  ;;  %v1851_v7 = vmul.f32 %v4042_v53, %v3556_v57 }
0x1c39   :  { %v1853_v10 = vsel %vm97_vm0, %v1851_v7, 0.0 }
0x1c4d   :  { %v1802_v32 = vpop.f32.mrf.mxu3 }
0x1c4e   :  { %v1806_v50 = vadd.f32 %v1802_v32, %v1771_v22 }
0x1c50   :  { %3069 = vtanh.f32 %v1806_v50  ;;  %v1808_v58 = vmul.f32 0.5, %v1806_v50  ;;  %v1861_v50 = vmul.f32 %v4061_v43, %v3576_v44 }
0x1c51   :  { %3071 = vtanh.f32 %v1807_v9 }
0x1c52   :  { %3073 = vtanh.f32 %v1808_v58 }
0x1c56   :  { %v3070_v33 = vpop.eup %3069 }
0x1c57   :  { %1823 = vrot.lane.b32.xlu0 %v3070_v33, %s3203_s18  ;;  %v3072_v11 = vpop.eup %3071 }
0x1c58   :  { %v1811_v48 = vmul.f32 0.5, %v3072_v11  ;;  %v3074_v27 = vpop.eup %3073 }
0x1c59   :  { %v1812_v39 = vmul.f32 0.5, %v3074_v27 }
0x1c5a   :  { %v1813_v0 = vadd.f32 0.5, %v1811_v48 }
0x1c5b   :  { %v1814_v36 = vadd.f32 0.5, %v1812_v39 }
0x1c5c   :  { %v1817_v41 = vmul.f32 %v1813_v0, %v1744_v54 }
0x1c5d   :  { %v1818_v18 = vmul.f32 %v1814_v36, %v1745_v5  ;;  %v1852_v5 = vmul.f32 %v4053_v3, %v3556_v57 }
0x1c5f   :  { %v1856_v16 = vsel %vm97_vm0, %v1852_v5, 0.0 }
0x1ca9   :  { %v1822_v45 = vpop.permute.xlu0 %1821 }
0x1caa   :  { %v1827_v23 = vmul.f32 %v1822_v45, %v1813_v0 }
0x1cac   :  { %1831 = vrot.lane.b32.xlu0 %v1827_v23, %s3204_s19  ;;  %v1862_v23 = vmul.f32 %v4061_v43, %v3582_v14 }
0x1cc9   :  { %v1824_v31 = vpop.permute.xlu0 %1823 }
0x1cca   :  { %v1828_v60 = vmul.f32 %v1824_v31, %v1814_v36 }
0x1ccc   :  { %1833 = vrot.lane.b32.xlu0 %v1828_v60, %s3204_s19 }
0x1d1e   :  { %v1832_v28 = vpop.permute.xlu0 %1831 }
0x1d1f   :  { %v1837_v29 = vadd.f32 %v1832_v28, %v1817_v41 }
0x1d21   :  { %3075 = vtanh.f32 %v1837_v29 }
0x1d27   :  { %v3076_v21 = vpop.eup %3075 }
0x1d28   :  { %1843 = vrot.lane.b32.xlu0 %v3076_v21, %s3203_s18 }
0x1d3e   :  { %v1834_v40 = vpop.permute.xlu0 %1833 }
0x1d3f   :  { %v4160_v51 = vadd.f32 %v1834_v40, %v1818_v18 }
0x1d41   :  { %3077 = vtanh.f32 %v4160_v51 }
0x1d47   :  { %v3078_v1 = vpop.eup %3077 }
0x1d48   :  { %1845 = vrot.lane.b32.xlu1 %v3078_v1, %s3203_s18 }
0x1d9a   :  { %v1844_v52 = vpop.permute.xlu0 %1843 }
0x1d9b   :  { %v4164_v37 = vmul.f32 %v1844_v52, %v1813_v0 }
0x1d9d   :  { %1867 = vrot.lane.b32.xlu2 %v4164_v37, %s3204_s19 }
0x1dba   :  { %v1846_v54 = vpop.permute.xlu1 %1845 }
0x1dbb   :  { %v4168_v25 = vmul.f32 %v1846_v54, %v1814_v36 }
0x1dbd   :  { %1869 = vrot.lane.b32.xlu0 %v4168_v25, %s3204_s19 }
0x1dc6   :  { %1857 = vadd.xlane.f32.xlu2 %v1856_v16 }
0x1de7   :  { %1854 = vadd.xlane.f32.xlu0 %v1853_v10 }
0x1df7   :  { %v1868_v8 = vpop.permute.xlu2 %1867 }
0x1df8   :  { %2870 = vmatmul.msk.f32.vlgmr.msra.gmra.mxu0 %vm120_vm1, %v1868_v8  ;;  %v1945_v8 = vmul.f32 %v4053_v3, %v3604_v49 }
0x1e2f   :  { %v1870_v17 = vpop.permute.xlu0 %1869 }
0x1e30   :  { %2871 = vmatmul.msk.f32.gmra.mxu0 %vm120_vm1, %v1870_v17  ;;  %v1949_v17 = vsel %vm97_vm0, %v1945_v8, 0.0 }
0x1e39   :  { %v1858_v0 = vpop.xlane.xlu2 %1857 }
0x1e3a   :  { %v1860_v45 = vmul.f32 %v1858_v0, %v4063_v38 }
0x1e3c   :  { %v1864_v58 = vadd.f32 %v1862_v23, %v1860_v45 }
0x1e5a   :  { %v1855_v22 = vpop.xlane.xlu0 %1854 }
0x1e5b   :  { %v1859_v32 = vmul.f32 %v1855_v22, %v4063_v38 }
0x1e5d   :  { %v1863_v33 = vadd.f32 %v1861_v50, %v1859_v32 }
0x1e75   :  { %v1892_v9 = vpop.f32.mrf.mxu0 }
0x1e76   :  { %v1898_v11 = vadd.f32 %v1892_v9, %v1863_v33 }
0x1e78   :  { %3079 = vtanh.f32 %v1898_v11  ;;  %v1900_v44 = vmul.f32 0.5, %v1898_v11  ;;  %v1944_v11 = vmul.f32 %v4042_v53, %v3604_v49 }
0x1e7e   :  { %v3080_v48 = vpop.eup %3079 }
0x1e7f   :  { %1914 = vrot.lane.b32.xlu1 %v3080_v48, %s3203_s18  ;;  %v1946_v48 = vsel %vm97_vm0, %v1944_v11, 0.0 }
0x1ead   :  { %v1895_v27 = vpop.f32.mrf.mxu0 }
0x1eae   :  { %v1899_v39 = vadd.f32 %v1895_v27, %v1864_v58 }
0x1eb0   :  { %3081 = vtanh.f32 %v1899_v39  ;;  %v1901_v18 = vmul.f32 0.5, %v1899_v39  ;;  %v1954_v39 = vmul.f32 %v4061_v43, %v3617_v13 }
0x1eb1   :  { %3083 = vtanh.f32 %v1900_v44 }
0x1eb2   :  { %3085 = vtanh.f32 %v1901_v18 }
0x1eb6   :  { %v3082_v36 = vpop.eup %3081 }
0x1eb7   :  { %1916 = vrot.lane.b32.xlu1 %v3082_v36, %s3203_s18  ;;  %v3084_v31 = vpop.eup %3083 }
0x1eb8   :  { %v1904_v60 = vmul.f32 0.5, %v3084_v31  ;;  %v3086_v40 = vpop.eup %3085 }
0x1eb9   :  { %v1905_v14 = vmul.f32 0.5, %v3086_v40 }
0x1eba   :  { %v1906_v41 = vadd.f32 0.5, %v1904_v60 }
0x1ebb   :  { %v1907_v1 = vadd.f32 0.5, %v1905_v14 }
0x1ebc   :  { %v1910_v5 = vmul.f32 %v1906_v41, %v1837_v29 }
0x1ebd   :  { %v1911_v22 = vmul.f32 %v1907_v1, %v4160_v51 }
0x1ef1   :  { %v1915_v28 = vpop.permute.xlu1 %1914 }
0x1ef2   :  { %v1920_v21 = vmul.f32 %v1915_v28, %v1906_v41 }
0x1ef4   :  { %1924 = vrot.lane.b32.xlu1 %v1920_v21, %s3204_s19  ;;  %v1955_v21 = vmul.f32 %v4061_v43, %v3631_v19 }
0x1f29   :  { %v1917_v52 = vpop.permute.xlu1 %1916 }
0x1f2a   :  { %v1921_v54 = vmul.f32 %v1917_v52, %v1907_v1 }
0x1f2c   :  { %1926 = vrot.lane.b32.xlu1 %v1921_v54, %s3204_s19 }
0x1f66   :  { %v1925_v16 = vpop.permute.xlu1 %1924 }
0x1f67   :  { %v1930_v7 = vadd.f32 %v1925_v16, %v1910_v5 }
0x1f69   :  { %3087 = vtanh.f32 %v1930_v7 }
0x1f6f   :  { %v3088_v10 = vpop.eup %3087 }
0x1f70   :  { %1936 = vrot.lane.b32.xlu0 %v3088_v10, %s3203_s18 }
0x1f9a   :  { %1950 = vadd.xlane.f32.xlu0 %v1949_v17 }
0x1f9e   :  { %v1927_v32 = vpop.permute.xlu1 %1926 }
0x1f9f   :  { %v1931_v50 = vadd.f32 %v1927_v32, %v1911_v22 }
0x1fa1   :  { %3089 = vtanh.f32 %v1931_v50 }
0x1fa7   :  { %v3090_v33 = vpop.eup %3089 }
0x1fa8   :  { %1938 = vrot.lane.b32.xlu1 %v3090_v33, %s3203_s18 }
0x1fe2   :  { %v1937_v29 = vpop.permute.xlu0 %1936 }
0x1fe3   :  { %v4196_v9 = vmul.f32 %v1937_v29, %v1906_v41 }
0x1fe5   :  { %1960 = vrot.lane.b32.xlu1 %v4196_v9, %s3204_s19 }
0x200d   :  { %v1951_v41 = vpop.xlane.xlu0 %1950 }
0x200e   :  { %v1953_v28 = vmul.f32 %v1951_v41, %v4063_v38 }
0x200f   :  { %1947 = vadd.xlane.f32.xlu1 %v1946_v48 }
0x2010   :  { %v1957_v18 = vadd.f32 %v1955_v21, %v1953_v28 }
0x201a   :  { %v1939_v0 = vpop.permute.xlu1 %1938 }
0x201b   :  { %v4203_v51 = vmul.f32 %v1939_v0, %v1907_v1 }
0x201d   :  { %1962 = vrot.lane.b32.xlu2 %v4203_v51, %s3204_s19 }
0x2057   :  { %v1961_v45 = vpop.permute.xlu1 %1960 }
0x2058   :  { %2872 = vmatmul.msk.f32.vlgmr.msra.gmra.mxu1 %vm120_vm1, %v1961_v45 }
0x2077   :  { %v1963_v23 = vpop.permute.xlu2 %1962 }
0x2078   :  { %2873 = vmatmul.msk.f32.gmra.mxu1 %vm120_vm1, %v1963_v23 }
0x2082   :  { %v1948_v58 = vpop.xlane.xlu1 %1947 }
0x2083   :  { %v1952_v27 = vmul.f32 %v1948_v58, %v4063_v38 }
0x2085   :  { %v1956_v36 = vadd.f32 %v1954_v39, %v1952_v27  ;;  %v2038_v39 = vmul.f32 %v4053_v3, %v3648_v34 }
0x20d5   :  { %v1985_v44 = vpop.f32.mrf.mxu1 }
0x20d6   :  { %v1991_v31 = vadd.f32 %v1985_v44, %v1956_v36  ;;  %v2042_v36 = vsel %vm97_vm0, %v2038_v39, 0.0 }
0x20d8   :  { %3091 = vtanh.f32 %v1991_v31  ;;  %v1993_v13 = vmul.f32 0.5, %v1991_v31 }
0x20de   :  { %v3092_v60 = vpop.eup %3091 }
0x20df   :  { %2007 = vrot.lane.b32.xlu2 %v3092_v60, %s3203_s18  ;;  %v2037_v60 = vmul.f32 %v4042_v53, %v3648_v34 }
0x20e1   :  { %v2039_v41 = vsel %vm97_vm0, %v2037_v60, 0.0 }
0x20f5   :  { %v1988_v40 = vpop.f32.mrf.mxu1 }
0x20f6   :  { %v1992_v14 = vadd.f32 %v1988_v40, %v1957_v18 }
0x20f8   :  { %3093 = vtanh.f32 %v1992_v14  ;;  %v1994_v8 = vmul.f32 0.5, %v1992_v14  ;;  %v2047_v14 = vmul.f32 %v4061_v43, %v3666_v47 }
0x20f9   :  { %3095 = vtanh.f32 %v1993_v13 }
0x20fa   :  { %3097 = vtanh.f32 %v1994_v8 }
0x20fe   :  { %v3094_v1 = vpop.eup %3093 }
0x20ff   :  { %2009 = vrot.lane.b32.xlu2 %v3094_v1, %s3203_s18  ;;  %v3096_v52 = vpop.eup %3095 }
0x2100   :  { %v1997_v54 = vmul.f32 0.5, %v3096_v52  ;;  %v3098_v17 = vpop.eup %3097 }
0x2101   :  { %v1998_v19 = vmul.f32 0.5, %v3098_v17 }
0x2102   :  { %v1999_v5 = vadd.f32 0.5, %v1997_v54 }
0x2103   :  { %v2000_v22 = vadd.f32 0.5, %v1998_v19 }
0x2104   :  { %v2003_v29 = vmul.f32 %v1999_v5, %v1930_v7 }
0x2105   :  { %v2004_v45 = vmul.f32 %v2000_v22, %v1931_v50 }
0x2139   :  { %v2008_v16 = vpop.permute.xlu2 %2007 }
0x213a   :  { %v2013_v10 = vmul.f32 %v2008_v16, %v1999_v5 }
0x213c   :  { %2017 = vrot.lane.b32.xlu2 %v2013_v10, %s3204_s19  ;;  %v2048_v10 = vmul.f32 %v4061_v43, %v3680_v2 }
0x2159   :  { %v2010_v32 = vpop.permute.xlu2 %2009 }
0x215a   :  { %v2014_v33 = vmul.f32 %v2010_v32, %v2000_v22 }
0x215c   :  { %2019 = vrot.lane.b32.xlu2 %v2014_v33, %s3204_s19 }
0x2196   :  { %v2018_v11 = vpop.permute.xlu2 %2017 }
0x2197   :  { %v2023_v48 = vadd.f32 %v2018_v11, %v2003_v29 }
0x2199   :  { %3099 = vtanh.f32 %v2023_v48 }
0x219f   :  { %v3100_v0 = vpop.eup %3099 }
0x21a0   :  { %2029 = vrot.lane.b32.xlu1 %v3100_v0, %s3203_s18 }
0x21b6   :  { %v2020_v23 = vpop.permute.xlu2 %2019 }
0x21b7   :  { %v2024_v58 = vadd.f32 %v2020_v23, %v2004_v45 }
0x21b9   :  { %3101 = vtanh.f32 %v2024_v58 }
0x21bf   :  { %v3102_v27 = vpop.eup %3101 }
0x21c0   :  { %2031 = vrot.lane.b32.xlu0 %v3102_v27, %s3203_s18 }
0x21ea   :  { %2043 = vadd.xlane.f32.xlu0 %v2042_v36 }
0x2212   :  { %v2030_v7 = vpop.permute.xlu1 %2029 }
0x2213   :  { %v4224_v44 = vmul.f32 %v2030_v7, %v1999_v5 }
0x2215   :  { %2053 = vrot.lane.b32.xlu2 %v4224_v44, %s3204_s19 }
0x2232   :  { %v2032_v31 = vpop.permute.xlu0 %2031 }
0x2233   :  { %v4228_v50 = vmul.f32 %v2032_v31, %v2000_v22 }
0x2235   :  { %2055 = vrot.lane.b32.xlu2 %v4228_v50, %s3204_s19 }
0x225d   :  { %v2044_v5 = vpop.xlane.xlu0 %2043 }
0x225e   :  { %2040 = vadd.xlane.f32.xlu2 %v2039_v41  ;;  %v2046_v16 = vmul.f32 %v2044_v5, %v4063_v38 }
0x2260   :  { %v2050_v8 = vadd.f32 %v2048_v10, %v2046_v16  ;;  %v4272_v16 = vld [vmem:[%s4557_s4 + $0x2] sm:$0x3] }
0x2261   :  { %v2248_v10 = vperm.slane %v4272_v16, 1 }
0x226f   :  { %v2054_v28 = vpop.permute.xlu2 %2053 }
0x2270   :  { %2874 = vmatmul.msk.f32.vlgmr.msrb.gmra.mxu2 %vm120_vm1, %v2054_v28 }
0x228f   :  { %v2056_v21 = vpop.permute.xlu2 %2055 }
0x2290   :  { %2875 = vmatmul.msk.f32.gmra.mxu2 %vm120_vm1, %v2056_v21 }
0x22d1   :  { %v2041_v18 = vpop.xlane.xlu2 %2040 }
0x22d2   :  { %v2045_v40 = vmul.f32 %v2041_v18, %v4063_v38 }
0x22d4   :  { %v2049_v1 = vadd.f32 %v2047_v14, %v2045_v40 }
0x22f3   :  { %v2078_v13 = vpop.f32.mrf.mxu2 }
0x22f4   :  { %v2084_v52 = vadd.f32 %v2078_v13, %v2049_v1 }
0x22f6   :  { %3103 = vtanh.f32 %v2084_v52  ;;  %v2086_v47 = vmul.f32 0.5, %v2084_v52 }
0x22fc   :  { %v3104_v54 = vpop.eup %3103 }
0x22fd   :  { %2100 = vrot.lane.b32.xlu1 %v3104_v54, %s3203_s18  ;;  %v2131_v54 = vmul.f32 %v4053_v3, %v3705_v35 }
0x22ff   :  { %v2135_v5 = vsel %vm97_vm0, %v2131_v54, 0.0 }
0x2313   :  { %v2081_v17 = vpop.f32.mrf.mxu2 }
0x2314   :  { %v2085_v19 = vadd.f32 %v2081_v17, %v2050_v8 }
0x2316   :  { %3105 = vtanh.f32 %v2085_v19  ;;  %v2087_v45 = vmul.f32 0.5, %v2085_v19 }
0x2317   :  { %3107 = vtanh.f32 %v2086_v47 }
0x2318   :  { %3109 = vtanh.f32 %v2087_v45 }
0x231c   :  { %v3106_v22 = vpop.eup %3105 }
0x231d   :  { %2102 = vrot.lane.b32.xlu1 %v3106_v22, %s3203_s18  ;;  %v3108_v32 = vpop.eup %3107 }
0x231e   :  { %v2090_v33 = vmul.f32 0.5, %v3108_v32  ;;  %v3110_v23 = vpop.eup %3109 }
0x231f   :  { %v2091_v2 = vmul.f32 0.5, %v3110_v23 }
0x2320   :  { %v2092_v29 = vadd.f32 0.5, %v2090_v33 }
0x2321   :  { %v2093_v27 = vadd.f32 0.5, %v2091_v2 }
0x2322   :  { %v2096_v7 = vmul.f32 %v2092_v29, %v2023_v48 }
0x2323   :  { %v2097_v28 = vmul.f32 %v2093_v27, %v2024_v58  ;;  %v2130_v58 = vmul.f32 %v4042_v53, %v3705_v35 }
0x2325   :  { %v2132_v52 = vsel %vm97_vm0, %v2130_v58, 0.0 }
0x236f   :  { %v2101_v11 = vpop.permute.xlu1 %2100 }
0x2370   :  { %v2106_v0 = vmul.f32 %v2101_v11, %v2092_v29 }
0x2372   :  { %2110 = vrot.lane.b32.xlu1 %v2106_v0, %s3204_s19 }
0x238f   :  { %v2103_v39 = vpop.permute.xlu1 %2102 }
0x2390   :  { %v2107_v36 = vmul.f32 %v2103_v39, %v2093_v27 }
0x2392   :  { %2112 = vrot.lane.b32.xlu1 %v2107_v36, %s3204_s19  ;;  %v2140_v36 = vmul.f32 %v4061_v43, %v3732_v12 }
0x23e4   :  { %v2111_v31 = vpop.permute.xlu1 %2110 }
0x23e5   :  { %v4247_v60 = vadd.f32 %v2111_v31, %v2096_v7 }
0x23e7   :  { %3111 = vtanh.f32 %v4247_v60 }
0x23ed   :  { %v3112_v41 = vpop.eup %3111 }
0x23ee   :  { %2122 = vrot.lane.b32.xlu1 %v3112_v41, %s3203_s18 }
0x2404   :  { %v2113_v21 = vpop.permute.xlu1 %2112 }
0x2405   :  { %v4251_v18 = vadd.f32 %v2113_v21, %v2097_v28  ;;  %v2141_v21 = vmul.f32 %v4061_v43, %v3738_v42 }
0x2407   :  { %3113 = vtanh.f32 %v4251_v18 }
0x240d   :  { %v3114_v40 = vpop.eup %3113 }
0x240e   :  { %2124 = vrot.lane.b32.xlu2 %v3114_v40, %s3203_s18 }
0x2460   :  { %v2123_v14 = vpop.permute.xlu1 %2122 }
0x2461   :  { %v4255_v1 = vmul.f32 %v2123_v14, %v2092_v29 }
0x2463   :  { %2146 = vrot.lane.b32.xlu0 %v4255_v1, %s3204_s19 }
0x2468   :  { %v2125_v48 = vpop.permute.xlu2 %2124 }
0x2469   :  { %v4259_v13 = vmul.f32 %v2125_v48, %v2093_v27 }
0x246b   :  { %2148 = vrot.lane.b32.xlu1 %v4259_v13, %s3204_s19 }
0x248d   :  { %2133 = vadd.xlane.f32.xlu0 %v2132_v52 }
0x2495   :  { %2136 = vadd.xlane.f32.xlu1 %v2135_v5 }
0x24ae   :  { %2250 = vrot.lane.b32.xlu1 %v2248_v10, %s3205_s28 }
0x24d5   :  { %v2147_v8 = vpop.permute.xlu0 %2146 }
0x24d6   :  { %2876 = vmatmul.msk.f32.vlgmr.msrb.gmra.mxu3 %vm120_vm1, %v2147_v8 }
0x24dd   :  { %v2149_v17 = vpop.permute.xlu1 %2148 }
0x24de   :  { %2877 = vmatmul.msk.f32.gmra.mxu3 %vm120_vm1, %v2149_v17 }
0x2500   :  { %v2134_v27 = vpop.xlane.xlu0 %2133 }
0x2501   :  { %v2138_v39 = vmul.f32 %v2134_v27, %v4063_v38 }
0x2503   :  { %v2142_v7 = vadd.f32 %v2140_v36, %v2138_v39 }
0x2508   :  { %v2137_v19 = vpop.xlane.xlu1 %2136 }
0x2509   :  { %v2139_v28 = vmul.f32 %v2137_v19, %v4063_v38 }
0x250b   :  { %v2143_v40 = vadd.f32 %v2141_v21, %v2139_v28 }
0x2520   :  { %v4278_v22 = vpop.permute.xlu1 %2250 }
0x2521   :  { %v2334_v47 = vmul.f32 %v4278_v22, %v4140_v4  ;;  %v2254_v32 = vmul.f32 %v4278_v22, %v4084_v55  ;;  %v2253_v33 = vmul.f32 %v4278_v22, %v4080_v46  ;;  %v2294_v29 = vmul.f32 %v4278_v22, %v4112_v59 }
0x2522   :  { %v2333_v11 = vmul.f32 %v4278_v22, %v4136_v20  ;;  %v2293_v0 = vmul.f32 %v4278_v22, %v4108_v24  ;;  %v2414_v45 = vmul.f32 %v4278_v22, %v4203_v51  ;;  %v2374_v23 = vmul.f32 %v4278_v22, %v4168_v25 }
0x2523   :  { %2339 = vrot.lane.b32.xlu0 %v2334_v47, %s3204_s19  ;;  %2259 = vrot.lane.b32.xlu2 %v2254_v32, %s3204_s19  ;;  %v2453_v2 = vmul.f32 %v4278_v22, %v4224_v44  ;;  %v2413_v27 = vmul.f32 %v4278_v22, %v4196_v9  ;;  %v2494_v39 = vmul.f32 %v4278_v22, %v4259_v13 }
0x2524   :  { %2257 = vrot.lane.b32.xlu1 %v2253_v33, %s3204_s19 }
0x252b   :  { %2299 = vrot.lane.b32.xlu2 %v2294_v29, %s3204_s19 }
0x252c   :  { %2337 = vrot.lane.b32.xlu1 %v2333_v11, %s3204_s19 }
0x2533   :  { %2297 = vrot.lane.b32.xlu2 %v2293_v0, %s3204_s19 }
0x2534   :  { %2419 = vrot.lane.b32.xlu1 %v2414_v45, %s3204_s19 }
0x253b   :  { %2379 = vrot.lane.b32.xlu2 %v2374_v23, %s3204_s19 }
0x253c   :  { %2457 = vrot.lane.b32.xlu1 %v2453_v2, %s3204_s19 }
0x2559   :  { %v2171_v31 = vpop.f32.mrf.mxu3 }
0x255a   :  { %v2177_v41 = vadd.f32 %v2171_v31, %v2142_v7 }
0x255c   :  { %3115 = vtanh.f32 %v2177_v41  ;;  %v2179_v42 = vmul.f32 0.5, %v2177_v41 }
0x2561   :  { %v2174_v14 = vpop.f32.mrf.mxu3 }
0x2562   :  { %v3116_v48 = vpop.eup %3115  ;;  %v2178_v58 = vadd.f32 %v2174_v14, %v2143_v40 }
0x2563   :  { %2193 = vrot.lane.b32.xlu2 %v3116_v48, %s3203_s18 }
0x2564   :  { %3117 = vtanh.f32 %v2178_v58  ;;  %v2180_v8 = vmul.f32 0.5, %v2178_v58  ;;  %v2373_v58 = vmul.f32 %v4278_v22, %v4164_v37 }
0x2565   :  { %3119 = vtanh.f32 %v2179_v42 }
0x2566   :  { %3121 = vtanh.f32 %v2180_v8 }
0x256a   :  { %v3118_v52 = vpop.eup %3117 }
0x256b   :  { %2195 = vrot.lane.b32.xlu2 %v3118_v52, %s3203_s18  ;;  %v3120_v17 = vpop.eup %3119 }
0x256c   :  { %v2183_v47 = vmul.f32 0.5, %v3120_v17  ;;  %v3122_v33 = vpop.eup %3121 }
0x256d   :  { %v2184_v0 = vmul.f32 0.5, %v3122_v33 }
0x256e   :  { %v2185_v32 = vadd.f32 0.5, %v2183_v47 }
0x256f   :  { %v2186_v45 = vadd.f32 0.5, %v2184_v0 }
0x2570   :  { %v2189_v31 = vmul.f32 %v2185_v32, %v4247_v60  ;;  %v2454_v60 = vmul.f32 %v4278_v22, %v4228_v50 }
0x2571   :  { %v2190_v21 = vmul.f32 %v2186_v45, %v4251_v18  ;;  %v2493_v18 = vmul.f32 %v4278_v22, %v4255_v1 }
0x257d   :  { %v2260_v12 = vpop.permute.xlu2 %2259 }
0x2585   :  { %v2300_v54 = vpop.permute.xlu2 %2299 }
0x2586   :  { %v2306_v5 = vsel %vm120_vm1, %v2300_v54, 0.0 }
0x2587   :  { %2307 = vadd.xlane.f32.xlu1 %v2306_v5 }
0x258d   :  { %v2298_v43 = vpop.permute.xlu2 %2297 }
0x258e   :  { %v2303_v42 = vsel %vm120_vm1, %v2298_v43, 0.0 }
0x2595   :  { %v2340_v38 = vpop.permute.xlu0 %2339  ;;  %v2380_v19 = vpop.permute.xlu2 %2379 }
0x2596   :  { %v2346_v10 = vsel %vm120_vm1, %v2340_v38, 0.0  ;;  %v2258_v36 = vpop.permute.xlu1 %2257  ;;  %v2266_v38 = vsel %vm120_vm1, %v2260_v12, 0.0  ;;  %v2386_v8 = vsel %vm120_vm1, %v2380_v19, 0.0 }
0x2597   :  { %2347 = vadd.xlane.f32.xlu1 %v2346_v10  ;;  %v2263_v7 = vsel %vm120_vm1, %v2258_v36, 0.0 }
0x259e   :  { %v2338_v54 = vpop.permute.xlu1 %2337 }
0x259f   :  { %v2343_v5 = vsel %vm120_vm1, %v2338_v54, 0.0 }
0x25a6   :  { %v2420_v36 = vpop.permute.xlu1 %2419 }
0x25bd   :  { %v2194_v29 = vpop.permute.xlu2 %2193 }
0x25be   :  { %v2199_v11 = vmul.f32 %v2194_v29, %v2185_v32 }
0x25c0   :  { %2203 = vrot.lane.b32.xlu2 %v2199_v11, %s3204_s19 }
0x25c5   :  { %v2196_v23 = vpop.permute.xlu2 %2195 }
0x25c6   :  { %v2200_v2 = vmul.f32 %v2196_v23, %v2186_v45 }
0x25c8   :  { %2205 = vrot.lane.b32.xlu2 %v2200_v2, %s3204_s19 }
0x25d0   :  { %2417 = vrot.lane.b32.xlu2 %v2413_v27, %s3204_s19 }
0x25d8   :  { %2499 = vrot.lane.b32.xlu2 %v2494_v39, %s3204_s19 }
0x2601   :  { %2264 = vadd.xlane.f32.xlu2 %v2263_v7 }
0x261a   :  { %v2204_v41 = vpop.permute.xlu2 %2203 }
0x261b   :  { %v2209_v28 = vadd.f32 %v2204_v41, %v2189_v31  ;;  %v2426_v31 = vsel %vm120_vm1, %v2420_v36, 0.0  ;;  %v2458_v41 = vpop.permute.xlu1 %2457 }
0x261d   :  { %3123 = vtanh.f32 %v2209_v28 }
0x2622   :  { %v2206_v40 = vpop.permute.xlu2 %2205 }
0x2623   :  { %v3124_v14 = vpop.eup %3123  ;;  %v2210_v48 = vadd.f32 %v2206_v40, %v2190_v21  ;;  %v2223_v21 = vperm.slane %v4272_v16, 0  ;;  %v2308_v54 = vpop.xlane.xlu1 %2307 }
0x2624   :  { %2215 = vrot.lane.b32.xlu0 %v3124_v14, %s3203_s18  ;;  %v2310_v36 = vmul.f32 %v2308_v54, %v3412_v62 }
0x2625   :  { %3125 = vtanh.f32 %v2210_v48 }
0x262a   :  { %v2418_v10 = vpop.permute.xlu2 %2417 }
0x262b   :  { %v3126_v52 = vpop.eup %3125  ;;  %v2423_v47 = vsel %vm120_vm1, %v2418_v10, 0.0 }
0x262c   :  { %2377 = vrot.lane.b32.xlu0 %v2373_v58, %s3204_s19  ;;  %2217 = vrot.lane.b32.xlu2 %v3126_v52, %s3203_s18 }
0x2632   :  { %v2500_v17 = vpop.permute.xlu2 %2499 }
0x2633   :  { %v2506_v29 = vsel %vm120_vm1, %v2500_v17, 0.0 }
0x2634   :  { %2459 = vrot.lane.b32.xlu0 %v2454_v60, %s3204_s19 }
0x263c   :  { %2497 = vrot.lane.b32.xlu0 %v2493_v18, %s3204_s19 }
0x2655   :  { %2344 = vadd.xlane.f32.xlu2 %v2343_v5  ;;  %v2348_v5 = vpop.xlane.xlu1 %2347 }
0x2666   :  { %2267 = vadd.xlane.f32.xlu0 %v2266_v38 }
0x266e   :  { %2304 = vadd.xlane.f32.xlu0 %v2303_v42 }
0x2674   :  { %v2265_v33 = vpop.xlane.xlu2 %2264 }
0x2675   :  { %v2269_v48 = vmul.f32 %v2265_v33, %v3312_v6 }
0x2676   :  { %2387 = vadd.xlane.f32.xlu0 %v2386_v8 }
0x267e   :  { %2424 = vadd.xlane.f32.xlu0 %v2423_v47 }
0x2686   :  { %2507 = vadd.xlane.f32.xlu0 %v2506_v29  ;;  %v2218_v11 = vpop.permute.xlu2 %2217 }
0x2687   :  { %v4345_v0 = vmul.f32 %v2218_v11, %v2186_v45 }
0x2689   :  { %v2534_v12 = vmul.f32 %v4278_v22, %v4345_v0 }
0x268b   :  { %2539 = vrot.lane.b32.xlu1 %v2534_v12, %s3204_s19 }
0x2696   :  { %v2216_v43 = vpop.permute.xlu0 %2215 }
0x2697   :  { %v4350_v23 = vmul.f32 %v2216_v43, %v2185_v32 }
0x2699   :  { %v2533_v19 = vmul.f32 %v4278_v22, %v4350_v23  ;;  %v2463_v22 = vsel %vm120_vm1, %v2458_v41, 0.0 }
0x269b   :  { %2537 = vrot.lane.b32.xlu2 %v2533_v19, %s3204_s19 }
0x269e   :  { %v2378_v2 = vpop.permute.xlu0 %2377 }
0x269f   :  { %v2383_v27 = vsel %vm120_vm1, %v2378_v2, 0.0 }
0x26a6   :  { %v2460_v39 = vpop.permute.xlu0 %2459 }
0x26a7   :  { %v2466_v45 = vsel %vm120_vm1, %v2460_v39, 0.0 }
0x26ae   :  { %v2498_v7 = vpop.permute.xlu0 %2497 }
0x26af   :  { %v2503_v32 = vsel %vm120_vm1, %v2498_v7, 0.0 }
0x26b5   :  { %2384 = vadd.xlane.f32.xlu1 %v2383_v27 }
0x26bd   :  { %2467 = vadd.xlane.f32.xlu1 %v2466_v45 }
0x26c4   :  { %2427 = vadd.xlane.f32.xlu2 %v2426_v31 }
0x26c5   :  { %2504 = vadd.xlane.f32.xlu1 %v2503_v32 }
0x26c8   :  { %v2345_v40 = vpop.xlane.xlu2 %2344 }
0x26c9   :  { %v2349_v52 = vmul.f32 %v2345_v40, %v3465_v56 }
0x26cc   :  { %2464 = vadd.xlane.f32.xlu2 %v2463_v22 }
0x26d9   :  { %v2268_v28 = vpop.xlane.xlu0 %2267 }
0x26da   :  { %v2270_v39 = vmul.f32 %v2268_v28, %v3312_v6 }
0x26dc   :  { %v2312_v32 = vadd.f32 %v2310_v36, %v2270_v39 }
0x26de   :  { %2225 = vrot.lane.b32.xlu1 %v2223_v21, %s3205_s28 }
0x26e1   :  { %v2305_v14 = vpop.xlane.xlu0 %2304 }
0x26e2   :  { %v2309_v58 = vmul.f32 %v2305_v14, %v3412_v62 }
0x26e4   :  { %v2311_v60 = vadd.f32 %v2309_v58, %v2269_v48 }
0x26e6   :  { %v2351_v18 = vadd.f32 %v2349_v52, %v2311_v60 }
0x26e9   :  { %v2388_v33 = vpop.xlane.xlu0 %2387 }
0x26ea   :  { %v2390_v28 = vmul.f32 %v2388_v33, %v3510_v15 }
0x26f1   :  { %v2425_v2 = vpop.xlane.xlu0 %2424 }
0x26f2   :  { %v2429_v41 = vmul.f32 %v2425_v2, %v3556_v57 }
0x26f5   :  { %v2538_v38 = vpop.permute.xlu2 %2537 }
0x26f6   :  { %v2543_v10 = vsel %vm120_vm1, %v2538_v38, 0.0 }
0x26f7   :  { %2544 = vadd.xlane.f32.xlu0 %v2543_v10 }
0x26f9   :  { %v2508_v7 = vpop.xlane.xlu0 %2507 }
0x26fd   :  { %v2540_v42 = vpop.permute.xlu1 %2539 }
0x26fe   :  { %v2546_v16 = vsel %vm120_vm1, %v2540_v42, 0.0 }
0x26ff   :  { %2547 = vadd.xlane.f32.xlu2 %v2546_v16 }
0x2728   :  { %v2385_v8 = vpop.xlane.xlu1 %2384 }
0x2730   :  { %v2468_v17 = vpop.xlane.xlu1 %2467 }
0x2731   :  { %v2470_v10 = vmul.f32 %v2468_v17, %v3604_v49 }
0x2737   :  { %v2428_v19 = vpop.xlane.xlu2 %2427 }
0x2738   :  { %v2505_v47 = vpop.xlane.xlu1 %2504  ;;  %v2430_v40 = vmul.f32 %v2428_v19, %v3556_v57 }
0x2739   :  { %v2509_v48 = vmul.f32 %v2505_v47, %v3648_v34 }
0x273f   :  { %v2465_v45 = vpop.xlane.xlu2 %2464 }
0x2740   :  { %v2469_v22 = vmul.f32 %v2465_v45, %v3604_v49 }
0x2750   :  { %v4367_v29 = vpop.permute.xlu1 %2225 }
0x2751   :  { %v2274_v11 = vmul.f32 %v4367_v29, %v4112_v59  ;;  %v2229_v12 = vmul.f32 %v4367_v29, %v4084_v55  ;;  %v2228_v43 = vmul.f32 %v4367_v29, %v4080_v46  ;;  %v2314_v27 = vmul.f32 %v4367_v29, %v4140_v4 }
0x2752   :  { %v2273_v59 = vmul.f32 %v4367_v29, %v4108_v24  ;;  %v2313_v55 = vmul.f32 %v4367_v29, %v4136_v20  ;;  %v2389_v46 = vmul.f32 %v2385_v8, %v3510_v15  ;;  %v2353_v24 = vmul.f32 %v4367_v29, %v4164_v37 }
0x2753   :  { %2279 = vrot.lane.b32.xlu0 %v2274_v11, %s3204_s19  ;;  %2234 = vrot.lane.b32.xlu2 %v2229_v12, %s3204_s19  ;;  %v2354_v20 = vmul.f32 %v4367_v29, %v4168_v25  ;;  %v2394_v31 = vmul.f32 %v4367_v29, %v4203_v51  ;;  %v2350_v37 = vmul.f32 %v2348_v5, %v3465_v56 }
0x2754   :  { %2232 = vrot.lane.b32.xlu1 %v2228_v43, %s3204_s19  ;;  %v2391_v4 = vadd.f32 %v2389_v46, %v2351_v18  ;;  %v2434_v58 = vmul.f32 %v4367_v29, %v4228_v50  ;;  %v2393_v52 = vmul.f32 %v4367_v29, %v4196_v9  ;;  %v2433_v18 = vmul.f32 %v4367_v29, %v4224_v44 }
0x2755   :  { %v2352_v21 = vadd.f32 %v2350_v37, %v2312_v32  ;;  %v2510_v9 = vmul.f32 %v2508_v7, %v3648_v34  ;;  %v2473_v44 = vmul.f32 %v4367_v29, %v4255_v1  ;;  %v2474_v47 = vmul.f32 %v4367_v29, %v4259_v13 }
0x2756   :  { %v2431_v25 = vadd.f32 %v2429_v41, %v2391_v4  ;;  %v2514_v11 = vmul.f32 %v4367_v29, %v4345_v0  ;;  %v2513_v13 = vmul.f32 %v4367_v29, %v4350_v23 }
0x2757   :  { %v2392_v14 = vadd.f32 %v2390_v28, %v2352_v21  ;;  %v4439_v28 = vld [vmem:[%s4559_s6] sm:$0xff] }
0x2758   :  { %v2471_v51 = vadd.f32 %v2469_v22, %v2431_v25  ;;  %v4446_v25 = vld [vmem:[%s4559_s6 + $0x8] sm:$0xff] }
0x2759   :  { %v2432_v54 = vadd.f32 %v2430_v40, %v2392_v14 }
0x275a   :  { %v2511_v5 = vadd.f32 %v2509_v48, %v2471_v51 }
0x275b   :  { %2319 = vrot.lane.b32.xlu0 %v2314_v27, %s3204_s19  ;;  %2277 = vrot.lane.b32.xlu2 %v2273_v59, %s3204_s19  ;;  %v2472_v42 = vadd.f32 %v2470_v10, %v2432_v54 }
0x275c   :  { %2317 = vrot.lane.b32.xlu1 %v2313_v55, %s3204_s19 }
0x275d   :  { %v2512_v12 = vadd.f32 %v2510_v9, %v2472_v42 }
0x2763   :  { %2357 = vrot.lane.b32.xlu0 %v2353_v24, %s3204_s19  ;;  %2359 = vrot.lane.b32.xlu2 %v2354_v20, %s3204_s19 }
0x2764   :  { %2399 = vrot.lane.b32.xlu1 %v2394_v31, %s3204_s19 }
0x276a   :  { %v2545_v60 = vpop.xlane.xlu0 %2544 }
0x276b   :  { %v2549_v38 = vmul.f32 %v2545_v60, %v3705_v35  ;;  %2439 = vrot.lane.b32.xlu0 %v2434_v58, %s3204_s19  ;;  %2397 = vrot.lane.b32.xlu2 %v2393_v52, %s3204_s19 }
0x276c   :  { %2437 = vrot.lane.b32.xlu1 %v2433_v18, %s3204_s19 }
0x276d   :  { %v2551_v50 = vadd.f32 %v2549_v38, %v2511_v5 }
0x276f   :  { %v2583_v16 = vmin.f32 %v2551_v50, 20.0  ;;  %vm2581_vm9 = vcmp.gt.f32.partialorder %v2551_v50, 20.0 }
0x2771   :  { %v2585_v8 = vmul.f32 1.442695, %v2583_v16 }
0x2772   :  { %v2548_v33 = vpop.xlane.xlu2 %2547 }
0x2773   :  { %3127 = vpow2.f32 %v2585_v8  ;;  %v2550_v17 = vmul.f32 %v2548_v33, %v3705_v35  ;;  %2477 = vrot.lane.b32.xlu0 %v2473_v44, %s3204_s19  ;;  %2479 = vrot.lane.b32.xlu2 %v2474_v47, %s3204_s19 }
0x2774   :  { %2519 = vrot.lane.b32.xlu1 %v2514_v11, %s3204_s19 }
0x2775   :  { %v2552_v43 = vadd.f32 %v2550_v17, %v2512_v12 }
0x2777   :  { %v2584_v19 = vmin.f32 %v2552_v43, 20.0  ;;  %vm2582_vm8 = vcmp.gt.f32.partialorder %v2552_v43, 20.0 }
0x2779   :  { %v3128_v1 = vpop.eup %3127  ;;  %v2587_v2 = vmul.f32 1.442695, %v2584_v19 }
0x277a   :  { %v2589_v0 = vadd.f32 1.0, %v3128_v1  ;;  %v2592_v46 = vmul.f32 -0.5, %v3128_v1  ;;  %v2595_v24 = vand.u32 2147483647, %v3128_v1 }
0x277b   :  { %3129 = vpow2.f32 %v2587_v2  ;;  %2517 = vrot.lane.b32.xlu2 %v2513_v13, %s3204_s19 }
0x277c   :  { %3131 = vlog2.f32 %v2589_v0  ;;  %v2593_v36 = vadd.f32 1.0, %v2592_v46  ;;  %vm2596_vm7 = vcmp.lt.f32.partialorder %v2595_v24, 0.0004427343 }
0x277e   :  { %v2594_v23 = vmul.f32 %v3128_v1, %v2593_v36 }
0x2781   :  { %v3130_v27 = vpop.eup %3129 }
0x2782   :  { %v2598_v59 = vadd.f32 1.0, %v3130_v27  ;;  %v2601_v55 = vmul.f32 -0.5, %v3130_v27  ;;  %v3132_v39 = vpop.eup %3131  ;;  %v2604_v4 = vand.u32 2147483647, %v3130_v27 }
0x2783   :  { %v2591_v20 = vmul.f32 0.6931472, %v3132_v39  ;;  %v4469_v39 = vld [vmem:[%s4558_s5] sm:$0xff] }
0x2784   :  { %3133 = vlog2.f32 %v2598_v59  ;;  %v2602_v45 = vadd.f32 1.0, %v2601_v55  ;;  %vm2605_vm5 = vcmp.lt.f32.partialorder %v2604_v4, 0.0004427343 }
0x2785   :  { %v2597_v41 = vsel %vm2596_vm7, %v2594_v23, %v2591_v20 }
0x2786   :  { %v2603_v32 = vmul.f32 %v3130_v27, %v2602_v45  ;;  %v4433_v37 = vsel %vm2581_vm9, %v2551_v50, %v2597_v41  ;;  %v4476_v45 = vld [vmem:[%s4558_s5 + $0x8] sm:$0xff] }
0x278a   :  { %v3134_v7 = vpop.eup %3133 }
0x278b   :  { %v2600_v31 = vmul.f32 0.6931472, %v3134_v7 }
0x278d   :  { %v2606_v29 = vsel %vm2605_vm5, %v2603_v32, %v2600_v31 }
0x278e   :  { %v4430_v22 = vsel %vm2582_vm8, %v2552_v43, %v2606_v29  ;;  %vm2825_vm8 = vcmask 31744  }
0x278f   :  { %2648 = vmatpush.msrb.mxu1 %v4430_v22 }
0x2791   :  { %2649 = vmatpush.msrb.mxu1 %v4433_v37 }
0x2792   :  { %2880 = vmatmul.msk.f32.vlgmr.msrb.gmra.mxu1 %vm1305_vm6, %v4439_v28 }
0x279a   :  { %2881 = vmatmul.msk.f32.gmra.mxu1 %vm1305_vm6, %v4446_v25 }
0x27ad   :  { %v2235_v21 = vpop.permute.xlu2 %2234 }
0x27ae   :  { %v2241_v40 = vsel %vm120_vm1, %v2235_v21, 0.0 }
0x27af   :  { %2242 = vadd.xlane.f32.xlu0 %v2241_v40 }
0x27b5   :  { %v2278_v51 = vpop.permute.xlu2 %2277 }
0x27b6   :  { %v2283_v14 = vsel %vm120_vm1, %v2278_v51, 0.0 }
0x27b7   :  { %2284 = vadd.xlane.f32.xlu0 %v2283_v14 }
0x27bd   :  { %v2360_v48 = vpop.permute.xlu2 %2359 }
0x27be   :  { %v2366_v58 = vsel %vm120_vm1, %v2360_v48, 0.0 }
0x27bf   :  { %2367 = vadd.xlane.f32.xlu0 %v2366_v58 }
0x27c5   :  { %v2280_v52 = vpop.permute.xlu0 %2279  ;;  %v2398_v60 = vpop.permute.xlu2 %2397 }
0x27c6   :  { %v2286_v18 = vsel %vm120_vm1, %v2280_v52, 0.0  ;;  %v2403_v54 = vsel %vm120_vm1, %v2398_v60, 0.0  ;;  %v2233_v5 = vpop.permute.xlu1 %2232 }
0x27c7   :  { %v2238_v38 = vsel %vm120_vm1, %v2233_v5, 0.0  ;;  %2404 = vadd.xlane.f32.xlu0 %v2403_v54  ;;  %2287 = vadd.xlane.f32.xlu1 %v2286_v18 }
0x27c8   :  { %2239 = vadd.xlane.f32.xlu2 %v2238_v38 }
0x27cd   :  { %v2320_v10 = vpop.permute.xlu0 %2319  ;;  %v2480_v50 = vpop.permute.xlu2 %2479 }
0x27ce   :  { %v2326_v42 = vsel %vm120_vm1, %v2320_v10, 0.0  ;;  %v2486_v16 = vsel %vm120_vm1, %v2480_v50, 0.0  ;;  %v2318_v9 = vpop.permute.xlu1 %2317 }
0x27cf   :  { %v2323_v8 = vsel %vm120_vm1, %v2318_v9, 0.0  ;;  %2487 = vadd.xlane.f32.xlu0 %v2486_v16  ;;  %2327 = vadd.xlane.f32.xlu1 %v2326_v42 }
0x27d0   :  { %2324 = vadd.xlane.f32.xlu2 %v2323_v8 }
0x27d5   :  { %v2358_v44 = vpop.permute.xlu0 %2357  ;;  %v2518_v47 = vpop.permute.xlu2 %2517 }
0x27d6   :  { %v2363_v33 = vsel %vm120_vm1, %v2358_v44, 0.0  ;;  %v2523_v11 = vsel %vm120_vm1, %v2518_v47, 0.0  ;;  %v2400_v12 = vpop.permute.xlu1 %2399 }
0x27d7   :  { %v2406_v17 = vsel %vm120_vm1, %v2400_v12, 0.0  ;;  %2524 = vadd.xlane.f32.xlu0 %v2523_v11  ;;  %2364 = vadd.xlane.f32.xlu1 %v2363_v33 }
0x27d8   :  { %2407 = vadd.xlane.f32.xlu2 %v2406_v17 }
0x27dd   :  { %v2440_v43 = vpop.permute.xlu0 %2439 }
0x27de   :  { %v2446_v19 = vsel %vm120_vm1, %v2440_v43, 0.0  ;;  %v2438_v1 = vpop.permute.xlu1 %2437 }
0x27df   :  { %v2443_v2 = vsel %vm120_vm1, %v2438_v1, 0.0  ;;  %2447 = vadd.xlane.f32.xlu1 %v2446_v19 }
0x27e0   :  { %2444 = vadd.xlane.f32.xlu2 %v2443_v2 }
0x27e5   :  { %v2478_v13 = vpop.permute.xlu0 %2477 }
0x27e6   :  { %v2483_v0 = vsel %vm120_vm1, %v2478_v13, 0.0  ;;  %v2520_v27 = vpop.permute.xlu1 %2519 }
0x27e7   :  { %v2526_v59 = vsel %vm120_vm1, %v2520_v27, 0.0  ;;  %2484 = vadd.xlane.f32.xlu1 %v2483_v0 }
0x27e8   :  { %2527 = vadd.xlane.f32.xlu2 %v2526_v59 }
0x280f   :  { %v2651_v55 = vpop.f32.mrf.mxu1 }
0x2817   :  { %v2654_v46 = vpop.f32.mrf.mxu1 }
0x2818   :  { %2671 = vmatpush.msra.mxu2 %v2654_v46 }
0x281a   :  { %2672 = vmatpush.msra.mxu2 %v2651_v55 }
0x281b   :  { %2882 = vmatmul.msk.f32.vlgmr.msra.gmra.mxu2 %vm1305_vm6, %v4469_v39 }
0x2822   :  { %v2243_v36 = vpop.xlane.xlu0 %2242 }
0x2823   :  { %2883 = vmatmul.msk.f32.gmra.mxu2 %vm1305_vm6, %v4476_v45  ;;  %v2245_v40 = vmul.f32 %v2243_v36, %v3312_v6 }
0x282a   :  { %v2285_v4 = vpop.xlane.xlu0 %2284 }
0x282b   :  { %v2289_v58 = vmul.f32 %v2285_v4, %v3412_v62 }
0x2832   :  { %v2368_v7 = vpop.xlane.xlu0 %2367 }
0x2833   :  { %v2370_v38 = vmul.f32 %v2368_v7, %v3510_v15 }
0x283a   :  { %v2288_v24 = vpop.xlane.xlu1 %2287  ;;  %v2405_v23 = vpop.xlane.xlu0 %2404 }
0x283b   :  { %v2240_v20 = vpop.xlane.xlu2 %2239  ;;  %v2290_v29 = vmul.f32 %v2288_v24, %v3412_v62  ;;  %v2409_v62 = vmul.f32 %v2405_v23, %v3556_v57 }
0x283c   :  { %v2244_v14 = vmul.f32 %v2240_v20, %v3312_v6 }
0x283d   :  { %v2292_v48 = vadd.f32 %v2290_v29, %v2245_v40 }
0x283e   :  { %v2291_v54 = vadd.f32 %v2289_v58, %v2244_v14 }
0x2842   :  { %v2328_v31 = vpop.xlane.xlu1 %2327  ;;  %v2488_v60 = vpop.xlane.xlu0 %2487 }
0x2843   :  { %v2325_v32 = vpop.xlane.xlu2 %2324  ;;  %v2330_v51 = vmul.f32 %v2328_v31, %v3465_v56  ;;  %v2490_v11 = vmul.f32 %v2488_v60, %v3648_v34 }
0x2844   :  { %v2329_v52 = vmul.f32 %v2325_v32, %v3465_v56 }
0x2845   :  { %v2332_v18 = vadd.f32 %v2330_v51, %v2292_v48 }
0x2846   :  { %v2331_v42 = vadd.f32 %v2329_v52, %v2291_v54 }
0x2847   :  { %v2372_v9 = vadd.f32 %v2370_v38, %v2332_v18 }
0x284a   :  { %v2365_v41 = vpop.xlane.xlu1 %2364  ;;  %v2525_v12 = vpop.xlane.xlu0 %2524 }
0x284b   :  { %v2408_v21 = vpop.xlane.xlu2 %2407  ;;  %v2369_v5 = vmul.f32 %v2365_v41, %v3510_v15  ;;  %v2529_v13 = vmul.f32 %v2525_v12, %v3705_v35 }
0x284c   :  { %v2410_v10 = vmul.f32 %v2408_v21, %v3556_v57 }
0x284d   :  { %v2371_v8 = vadd.f32 %v2369_v5, %v2331_v42 }
0x284e   :  { %v2412_v44 = vadd.f32 %v2410_v10, %v2372_v9 }
0x284f   :  { %v2411_v33 = vadd.f32 %v2409_v62, %v2371_v8 }
0x2852   :  { %v2448_v50 = vpop.xlane.xlu1 %2447 }
0x2853   :  { %v2445_v16 = vpop.xlane.xlu2 %2444  ;;  %v2450_v6 = vmul.f32 %v2448_v50, %v3604_v49 }
0x2854   :  { %v2449_v56 = vmul.f32 %v2445_v16, %v3604_v49 }
0x2855   :  { %v2452_v47 = vadd.f32 %v2450_v6, %v2412_v44 }
0x2856   :  { %v2451_v17 = vadd.f32 %v2449_v56, %v2411_v33 }
0x2857   :  { %v2492_v1 = vadd.f32 %v2490_v11, %v2452_v47 }
0x285a   :  { %v2485_v15 = vpop.xlane.xlu1 %2484 }
0x285b   :  { %v2528_v43 = vpop.xlane.xlu2 %2527  ;;  %v2489_v19 = vmul.f32 %v2485_v15, %v3648_v34 }
0x285c   :  { %v2530_v2 = vmul.f32 %v2528_v43, %v3705_v35 }
0x285d   :  { %v2491_v0 = vadd.f32 %v2489_v19, %v2451_v17 }
0x285e   :  { %v2532_v27 = vadd.f32 %v2530_v2, %v2492_v1 }
0x285f   :  { %v2531_v57 = vadd.f32 %v2529_v13, %v2491_v0 }
0x2860   :  { %v2556_v59 = vmin.f32 %v2532_v27, 20.0  ;;  %vm2554_vm10 = vcmp.gt.f32.partialorder %v2532_v27, 20.0 }
0x2861   :  { %v2555_v49 = vmin.f32 %v2531_v57, 20.0  ;;  %vm2553_vm12 = vcmp.gt.f32.partialorder %v2531_v57, 20.0 }
0x2862   :  { %v2559_v55 = vmul.f32 1.442695, %v2556_v59  ;;  %v2745_v59 = vstv %s2888_s8 }
0x2863   :  { %v2557_v46 = vmul.f32 1.442695, %v2555_v49 }
0x2864   :  { %3135 = vpow2.f32 %v2559_v55 }
0x2865   :  { %3137 = vpow2.f32 %v2557_v46 }
0x286a   :  { %v3136_v36 = vpop.eup %3135 }
0x286b   :  { %v3138_v4 = vpop.eup %3137  ;;  %v2570_v24 = vadd.f32 1.0, %v3136_v36  ;;  %v2573_v20 = vmul.f32 -0.5, %v3136_v36  ;;  %v2576_v32 = vand.u32 2147483647, %v3136_v36 }
0x286c   :  { %v2561_v7 = vadd.f32 1.0, %v3138_v4  ;;  %v2564_v34 = vmul.f32 -0.5, %v3138_v4  ;;  %v2567_v23 = vand.u32 2147483647, %v3138_v4 }
0x286d   :  { %3139 = vlog2.f32 %v2570_v24  ;;  %v2574_v31 = vadd.f32 1.0, %v2573_v20  ;;  %vm2577_vm1 = vcmp.lt.f32.partialorder %v2576_v32, 0.0004427343 }
0x286e   :  { %3141 = vlog2.f32 %v2561_v7  ;;  %v2565_v35 = vadd.f32 1.0, %v2564_v34  ;;  %vm2568_vm11 = vcmp.lt.f32.partialorder %v2567_v23, 0.0004427343  ;;  %v2751_v34 = vstv %s2889_s29 }
0x286f   :  { %v2575_v40 = vmul.f32 %v3136_v36, %v2574_v31 }
0x2870   :  { %v2566_v14 = vmul.f32 %v3138_v4, %v2565_v35 }
0x2873   :  { %v3140_v29 = vpop.eup %3139 }
0x2874   :  { %v3142_v41 = vpop.eup %3141  ;;  %v2572_v21 = vmul.f32 0.6931472, %v3140_v29  ;;  %v2757_v29 = vstv %s2890_s30 }
0x2875   :  { %v2563_v51 = vmul.f32 0.6931472, %v3142_v41 }
0x2876   :  { %v2578_v48 = vsel %vm2577_vm1, %v2575_v40, %v2572_v21 }
0x2877   :  { %v4496_v58 = vsel %vm2554_vm10, %v2532_v27, %v2578_v48  ;;  %v2569_v52 = vsel %vm2568_vm11, %v2566_v14, %v2563_v51 }
0x2878   :  { %2625 = vmatpush.msrb.mxu0 %v4496_v58  ;;  %2726 = vmatpush.msra.mxu3 %v4496_v58  ;;  %v4500_v60 = vsel %vm2553_vm12, %v2531_v57, %v2569_v52  ;;  %v2795_v57 = vld [vmem:[%s4563_s10] sm:$0xff]  ;;  %v2736_v46 = vmul.f32 %v4496_v58, %v4029_v26  ;;  %v2610_v20 = vmul.f32 %v4496_v58, %v4037_v63 }
0x2879   :  { %v2735_v0 = vmul.f32 %v4500_v60, %v4018_v61  ;;  %2817 = vmatpush.msra.mxu1 %v2795_v57  ;;  %v2609_v61 = vmul.f32 %v4500_v60, %v4022_v30  ;;  %v2752_v23 = vmul.f32 %v2751_v34, %v4500_v60  ;;  %v2753_v41 = vmul.f32 %v2751_v34, %v4496_v58  ;;  %v2764_v52 = vld [vmem:[%s4562_s9] sm:$0xff] }
0x287a   :  { %2626 = vmatpush.msrb.mxu0 %v4500_v60  ;;  %2727 = vmatpush.msra.mxu3 %v4500_v60 }
0x287b   :  { %2878 = vmatmul.msk.f32.vlgmr.msrb.gmra.mxu0 %vm1305_vm6, %v4439_v28  ;;  %2884 = vmatmul.msk.f32.vlgmr.msra.gmra.mxu3 %vm1305_vm6, %v4469_v39 }
0x2883   :  { %2879 = vmatmul.msk.f32.gmra.mxu0 %vm1305_vm6, %v4446_v25  ;;  %2885 = vmatmul.msk.f32.gmra.mxu3 %vm1305_vm6, %v4476_v45  ;;  %v2680_v45 = vadd.f32 1e-09, %v4433_v37  ;;  %v2681_v37 = vadd.f32 1e-09, %v4430_v22 }
0x289e   :  { %v2674_v18 = vpop.f32.mrf.mxu2 }
0x289f   :  { %v2675_v54 = vadd.f32 3e-09, %v2674_v18 }
0x28a1   :  { %3143 = vrcp.f32 %v2675_v54  ;;  %v2693_v42 = vand.u32 2147483648, %v2675_v54  ;;  %vm2687_vm13 = vweird.f32 %v2675_v54  ;;  %v2691_v28 = vand.u32 2147483647, %v2675_v54 }
0x28a3   :  { %v2694_v9 = vor.u32 1.1754944e-38, %v2693_v42  ;;  %vm2692_vm2 = vcmp.eq.f32.partialorder %v2691_v28, 8.507059e+37 }
0x28a6   :  { %v2677_v5 = vpop.f32.mrf.mxu2 }
0x28a7   :  { %v3144_v38 = vpop.eup %3143  ;;  %v2678_v10 = vadd.f32 3e-09, %v2677_v5 }
0x28a8   :  { %v2683_v50 = vmul.f32 %v3144_v38, %v2675_v54  ;;  %vm2688_vm14 = vweird.f32 %v3144_v38 }
0x28a9   :  { %3145 = vrcp.f32 %v2678_v10  ;;  %vm2689_vm15 = vmor %vm2687_vm13, %vm2688_vm14  ;;  %vm2702_vm3 = vweird.f32 %v2678_v10  ;;  %v2708_v56 = vand.u32 2147483648, %v2678_v10  ;;  %v2706_v11 = vand.u32 2147483647, %v2678_v10 }
0x28aa   :  { %v2684_v16 = vsub.f32 1.0, %v2683_v50 }
0x28ab   :  { %v2709_v15 = vor.u32 1.1754944e-38, %v2708_v56  ;;  %vm2707_vm7 = vcmp.eq.f32.partialorder %v2706_v11, 8.507059e+37 }
0x28ac   :  { %v2685_v39 = vmul.f32 %v3144_v38, %v2684_v16 }
0x28ae   :  { %v2686_v25 = vadd.f32 %v3144_v38, %v2685_v39 }
0x28af   :  { %v3146_v6 = vpop.eup %3145 }
0x28b0   :  { %v2698_v8 = vmul.f32 %v3146_v6, %v2678_v10  ;;  %v2690_v44 = vsel %vm2689_vm15, %v3144_v38, %v2686_v25  ;;  %vm2703_vm4 = vweird.f32 %v3146_v6 }
0x28b1   :  { %v2695_v62 = vsel %vm2692_vm2, %v2694_v9, %v2690_v44  ;;  %vm2704_vm5 = vmor %vm2702_vm3, %vm2703_vm4 }
0x28b2   :  { %v2699_v47 = vsub.f32 1.0, %v2698_v8  ;;  %v2696_v33 = vmul.f32 %v2695_v62, %v2680_v45 }
0x28b4   :  { %2886 = vst.msk [vmem:[%s4567_s14 + $0x10] sm:$0xff] %vm97_vm0, %v2696_v33  ;;  %v2700_v12 = vmul.f32 %v3146_v6, %v2699_v47 }
0x28b6   :  { %v2701_v17 = vadd.f32 %v3146_v6, %v2700_v12 }
0x28b8   :  { %v2705_v43 = vsel %vm2704_vm5, %v3146_v6, %v2701_v17 }
0x28b9   :  { %v2710_v19 = vsel %vm2707_vm7, %v2709_v15, %v2705_v43 }
0x28ba   :  { %v2711_v1 = vmul.f32 %v2710_v19, %v2681_v37 }
0x28bc   :  { %2887 = vst.msk [vmem:[%s4567_s14 + $0x18] sm:$0xff] %vm97_vm0, %v2711_v1 }
0x28f8   :  { %v2628_v2 = vpop.f32.mrf.mxu0 }
0x28f9   :  { %v2629_v31 = vadd.f32 %v2628_v2, %v2609_v61 }
0x28fb   :  { %v2758_v40 = vmul.f32 %v2757_v29, %v2629_v31 }
0x28fe   :  { %v2729_v13 = vpop.f32.mrf.mxu3 }
0x28ff   :  { %v2737_v27 = vmul.f32 %v2729_v13, %v2696_v33 }
0x2900   :  { %v2631_v4 = vpop.f32.mrf.mxu0 }
0x2901   :  { %v2739_v22 = vadd.f32 %v2737_v27, %v2735_v0  ;;  %v2632_v32 = vadd.f32 %v2631_v4, %v2610_v20 }
0x2903   :  { %v2746_v49 = vmul.f32 %v2745_v59, %v2739_v22  ;;  %v2759_v30 = vmul.f32 %v2757_v29, %v2632_v32 }
0x2905   :  { %v2748_v24 = vadd.f32 %v2746_v49, %v4042_v53 }
0x2906   :  { %v2732_v55 = vpop.f32.mrf.mxu3 }
0x2907   :  { %v2738_v36 = vmul.f32 %v2732_v55, %v2711_v1  ;;  %v2754_v21 = vadd.f32 %v2752_v23, %v2748_v24 }
0x2909   :  { %v2740_v7 = vadd.f32 %v2738_v36, %v2736_v46  ;;  %v2760_v14 = vadd.f32 %v2758_v40, %v2754_v21 }
0x290b   :  { %v2747_v35 = vmul.f32 %v2745_v59, %v2740_v7  ;;  %v2762_v63 = vmax.f32 %v2760_v14, 0.0 }
0x290d   :  { %v2749_v26 = vadd.f32 %v2747_v35, %v4053_v3  ;;  %v2765_v3 = vld [vmem:[%s4562_s9 + $0x8] sm:$0xff] }
0x290f   :  { %v2755_v51 = vadd.f32 %v2753_v41, %v2749_v26 }
0x2911   :  { %v2761_v53 = vadd.f32 %v2759_v30, %v2755_v51 }
0x2913   :  { %v2763_v48 = vmax.f32 %v2761_v53, 0.0 }
0x2915   :  { %2786 = vmatpush.msra.mxu0 %v2763_v48 }
0x2917   :  { %2787 = vmatpush.msra.mxu0 %v2762_v63 }
0x2918   :  { %2891 = vmatmul.msk.f32.vlgmr.msra.gmra.mxu0 %vm1305_vm6, %v2764_v52 }
0x2920   :  { %2892 = vmatmul.msk.f32.gmra.mxu0 %vm1305_vm6, %v2765_v3 }
0x2995   :  { %v2789_v58 = vpop.f32.mrf.mxu0 }
0x2996   :  { %2893 = vmatmul.msk.f32.vlgmr.msra.gmra.mxu1 %vm97_vm0, %v2789_v58 }
0x299d   :  { %v2792_v60 = vpop.f32.mrf.mxu0 }
0x299e   :  { %2894 = vmatmul.msk.f32.gmra.mxu1 %vm97_vm0, %v2792_v60 }
0x2a13   :  { %v2819_v18 = vpop.f32.mrf.mxu1 }
0x2a14   :  { %2826 = vst.msk [vmem:[%s4566_s13] sm:$0xff] %vm2825_vm8, %v2819_v18 }
0x2a1b   :  { %v2822_v54 = vpop.f32.mrf.mxu1 }
0x2a1c   :  { %2827 = vst.msk [vmem:[%s4566_s13 + $0x8] sm:$0xff] %vm2825_vm8, %v2822_v54 }
0x2a1d   :  { %2836 = vsyncpa [#allocation3], 1 }
0x2a1e   :  { %2837 = vsyncpa [#allocation4], 1 }

</bundles_post_ra>
